<compile_context>
chip_gen: v7x
topology: tpu7x:2x2x1
jax: 0.10.0
libtpu: 0.0.40
codegen_flags: <defaults>
</compile_context>

<pallas_src>
import numpy as np
import jax
import jax.numpy as jnp
from jax.experimental import pallas as pl
from jax.experimental.pallas import tpu as pltpu


# ---------------------------------------------------------------------------
# The fused Pallas kernel (single invocation, everything VMEM resident)
# ---------------------------------------------------------------------------
def _fused_ae_kernel(p1_ref, we1_ref, be1_ref,
                     ge2_ref, we2_ref, be2_ref,
                     ge3_ref, we3_ref, be3_ref,
                     gd1_ref, wd1_ref, bd1_ref, sc1_ref,
                     gd2_ref, wd2_ref, bd2_ref, sc2_ref,
                     gd3_ref, wd3_ref, bd3_ref,
                     out_ref):
    bf16 = jnp.bfloat16

    def mm(a, b):
        return jnp.dot(a, b, preferred_element_type=jnp.float32)

    def conv_taps(a, g_ref, w_ref, b_ref):
        """y = b + sum_t (G_t @ A) @ W_t  (bf16 MXU operands, f32 accumulation).

        G_t are constant 0/1 gather matrices (per conv tap, block-diag over
        batch, zero rows = zero padding / halo), so the gather is exact.
        """
        taps = g_ref.shape[0]
        c_in = w_ref.shape[0] // taps
        y = b_ref[...]                                     # (1, C_out) f32
        for t in range(taps):
            tap = mm(g_ref[t], a).astype(bf16)             # (S_out, C_in)
            y = y + mm(tap, w_ref[t * c_in:(t + 1) * c_in, :])
        return y

    def pixel_shuffle(y, s_ref):
        """A_next = sum_p S_p @ Y[:, phase p]  (exact scatter, disjoint rows)."""
        phases = s_ref.shape[0]
        c_out = y.shape[1] // phases
        a = mm(s_ref[0], y[:, :c_out].astype(bf16))
        for p in range(1, phases):
            a = a + mm(s_ref[p], y[:, p * c_out:(p + 1) * c_out].astype(bf16))
        return a

    relu = lambda v: jnp.maximum(v, 0.0)

    # ---- encoder ----
    a1 = relu(mm(p1_ref[...], we1_ref[...]) + be1_ref[...]).astype(bf16)  # (N*8*8, 16)
    a2 = relu(conv_taps(a1, ge2_ref, we2_ref, be2_ref)).astype(bf16)      # (N*4*4, 32)
    a3 = relu(conv_taps(a2, ge3_ref, we3_ref, be3_ref)).astype(bf16)      # (N*2*2, 64)
    # ---- decoder (phase-decomposed stride-2 transposed convs) ----
    y1 = relu(conv_taps(a3, gd1_ref, wd1_ref, bd1_ref))                   # (N*2*2, 4*32)
    a4 = pixel_shuffle(y1, sc1_ref).astype(bf16)                          # (N*4*4, 32)
    y2 = relu(conv_taps(a4, gd2_ref, wd2_ref, bd2_ref))                   # (N*4*4, 4*16)
    a5 = pixel_shuffle(y2, sc2_ref).astype(bf16)                          # (N*8*8, 16)
    y3 = conv_taps(a5, gd3_ref, wd3_ref, bd3_ref)                         # (N*8*8, 4)
    out_ref[...] = jax.nn.sigmoid(y3)                                     # f32 phases


# ---------------------------------------------------------------------------
# Wrapper-side glue (tiny adapter ops on the raw input / final output only)
# ---------------------------------------------------------------------------
def _im2col(x, kh, kw, stride, pad):
    """x: (N,H,W,C) -> patches (N*Ho*Wo, kh*kw*C) with (i,j,c) column order."""
    n, h, w, c = x.shape
    xp = jnp.pad(x, ((0, 0), (pad, pad), (pad, pad), (0, 0)))
    ho = (h + 2 * pad - kh) // stride + 1
    wo = (w + 2 * pad - kw) // stride + 1
    cols = []
    for i in range(kh):
        for j in range(kw):
            cols.append(xp[:, i:i + stride * ho:stride, j:j + stride * wo:stride, :])
    patches = jnp.stack(cols, axis=3)                      # (N,Ho,Wo,kh*kw,C)
    return patches.reshape(n * ho * wo, kh * kw * c), ho, wo


def _cost_estimate(p1, pp, out_elems):
    def conv_flops(g, w_):
        t, so, si = g.shape
        return 2 * t * so * si * (w_.shape[0] // t) + 2 * so * w_.shape[0] * w_.shape[1]

    def scat_flops(s, c):
        return 2 * s.shape[0] * s.shape[1] * s.shape[2] * c

    flops = 2 * p1.shape[0] * pp["we1"].shape[0] * pp["we1"].shape[1]
    flops += conv_flops(pp["ge2"], pp["we2"]) + conv_flops(pp["ge3"], pp["we3"])
    flops += conv_flops(pp["gd1"], pp["wd1"]) + scat_flops(pp["sc1"], pp["wd1"].shape[1] // 4)
    flops += conv_flops(pp["gd2"], pp["wd2"]) + scat_flops(pp["sc2"], pp["wd2"].shape[1] // 4)
    flops += conv_flops(pp["gd3"], pp["wd3"])
    nbytes = p1.size * p1.dtype.itemsize
    nbytes += sum(v.size * v.dtype.itemsize for v in pp.values()) + out_elems * 4
    return pl.CostEstimate(flops=int(flops), transcendentals=int(out_elems),
                           bytes_accessed=int(nbytes))


@jax.jit
def autoencoder_bw3_forward(x_nchw, pp):
    n, c, h, w = x_nchw.shape
    assert c == 1 and h % 8 == 0 and w % 8 == 0
    x = jnp.transpose(x_nchw, (0, 2, 3, 1))                # NCHW -> NHWC
    p1, _, _ = _im2col(x, 4, 4, 2, 1)                      # (N*(H/2)*(W/2), 16)
    p1 = p1.astype(jnp.bfloat16)

    hd, wd = h // 2, w // 2                                # d3 input resolution
    m_out = n * hd * wd
    assert pp["gd3"].shape[1] == m_out, "prepared params were built for another batch/size"

    operands = (p1,
                pp["we1"], pp["be1"],
                pp["ge2"], pp["we2"], pp["be2"],
                pp["ge3"], pp["we3"], pp["be3"],
                pp["gd1"], pp["wd1"], pp["bd1"], pp["sc1"],
                pp["gd2"], pp["wd2"], pp["bd2"], pp["sc2"],
                pp["gd3"], pp["wd3"], pp["bd3"])

    y3 = pl.pallas_call(
        _fused_ae_kernel,
        out_shape=jax.ShapeDtypeStruct((m_out, 4), jnp.float32),
        in_specs=[pl.BlockSpec(memory_space=pltpu.MemorySpace.VMEM) for _ in operands],
        out_specs=pl.BlockSpec(memory_space=pltpu.MemorySpace.VMEM),
        compiler_params=pltpu.CompilerParams(vmem_limit_bytes=16 * 1024 * 1024),
        cost_estimate=_cost_estimate(p1, pp, m_out * 4),
    )(*operands)

    # Final depth-to-space of the last layer's 4 phase columns (tiny, ~2 KiB).
    y = y3.reshape(n, hd, wd, 2, 2)                        # (n, y, x, py, px)
    y = jnp.transpose(y, (0, 1, 3, 2, 4)).reshape(n, h, w)
    return y[:, None, :, :]                                # NHWC(C=1) -> NCHW


# ---------------------------------------------------------------------------
# Parameters: PyTorch layouts + one-time prep into matmul-ready matrices
# ---------------------------------------------------------------------------
def init_params(key):
    ks = jax.random.split(key, 12)

    def w(k, shape):
        return (0.1 * jax.random.normal(k, shape)).astype(jnp.float32)

    return {
        # encoder: Conv2d(1,16,4,s2,p1), Conv2d(16,32,3,s2,p1), Conv2d(32,64,3,s2,p1)
        "e1_w": w(ks[0], (16, 1, 4, 4)),  "e1_b": w(ks[1], (16,)),
        "e2_w": w(ks[2], (32, 16, 3, 3)), "e2_b": w(ks[3], (32,)),
        "e3_w": w(ks[4], (64, 32, 3, 3)), "e3_b": w(ks[5], (64,)),
        # decoder: ConvTranspose2d(64,32,3,s2,p1,op1), (32,16,...), (16,1,...)
        "d1_w": w(ks[6], (64, 32, 3, 3)), "d1_b": w(ks[7], (32,)),
        "d2_w": w(ks[8], (32, 16, 3, 3)), "d2_b": w(ks[9], (16,)),
        "d3_w": w(ks[10], (16, 1, 3, 3)), "d3_b": w(ks[11], (1,)),
    }


def _conv_w_mat(w):
    """(Cout,Cin,kh,kw) -> (kh*kw*Cin, Cout) bf16 (tap-major blocks of Cin rows)."""
    c_out, c_in, kh, kw = w.shape
    return jnp.transpose(w, (2, 3, 1, 0)).reshape(kh * kw * c_in, c_out).astype(jnp.bfloat16)


def _deconv_phase_mat(w):
    """(Cin,Cout,3,3) -> (4*Cin, 4*Cout) bf16 phase matrix.

    Rows ordered (di,dj,ci); columns ordered (py,px,co).  Matches
    ConvTranspose2d(kernel=3, stride=2, padding=1, output_padding=1).
    """
    c_in, c_out = w.shape[:2]
    wp = jnp.zeros((2, 2, c_in, 2, 2, c_out), jnp.float32)
    for di in (0, 1):
        for dj in (0, 1):
            for py in (0, 1):
                for px in (0, 1):
                    kh = py + 1 - 2 * di
                    kw = px + 1 - 2 * dj
                    if 0 <= kh <= 2 and 0 <= kw <= 2:
                        wp = wp.at[di, dj, :, py, px, :].set(w[:, :, kh, kw])
    return wp.reshape(4 * c_in, 4 * c_out).astype(jnp.bfloat16)


def _conv_gather_mats(n, h, w, k, stride, pad):
    """0/1 gather matrices (k*k, n*Ho*Wo, n*H*W), block-diag over batch."""
    ho = (h + 2 * pad - k) // stride + 1
    wo = (w + 2 * pad - k) // stride + 1
    s_in, s_out = h * w, ho * wo
    g = np.zeros((k * k, n * s_out, n * s_in), np.float32)
    for b in range(n):
        for oy in range(ho):
            for ox in range(wo):
                ro = b * s_out + oy * wo + ox
                for i in range(k):
                    for j in range(k):
                        iy, ix = oy * stride + i - pad, ox * stride + j - pad
                        if 0 <= iy < h and 0 <= ix < w:
                            g[i * k + j, ro, b * s_in + iy * w + ix] = 1.0
    return jnp.asarray(g, jnp.bfloat16)


def _deconv_gather_mats(n, h, w):
    """2x2 neighbourhood gathers with bottom/right zero halo: (4, n*h*w, n*h*w)."""
    s = h * w
    g = np.zeros((4, n * s, n * s), np.float32)
    t = 0
    for di in (0, 1):
        for dj in (0, 1):
            for b in range(n):
                for y in range(h):
                    for x in range(w):
                        iy, ix = y + di, x + dj
                        if iy < h and ix < w:
                            g[t, b * s + y * w + x, b * s + iy * w + ix] = 1.0
            t += 1
    return jnp.asarray(g, jnp.bfloat16)


def _deconv_scatter_mats(n, h, w):
    """Pixel-shuffle scatters: phase (py,px), in row (y,x) -> out row (2y+py, 2x+px)."""
    s_in, s_out = h * w, 4 * h * w
    sm = np.zeros((4, n * s_out, n * s_in), np.float32)
    p = 0
    for py in (0, 1):
        for px in (0, 1):
            for b in range(n):
                for y in range(h):
                    for x in range(w):
                        ro = b * s_out + (2 * y + py) * (2 * w) + (2 * x + px)
                        sm[p, ro, b * s_in + y * w + x] = 1.0
            p += 1
    return jnp.asarray(sm, jnp.bfloat16)


def prepare_params(p, *, batch=2, height=16, width=16):
    """One-time prep: bf16 weight matrices, f32 bias rows and the constant
    gather/scatter selection matrices for this (batch, H, W)."""
    assert height % 8 == 0 and width % 8 == 0
    n = batch
    h1, w1 = height // 2, width // 2     # e1 output / d3 input resolution
    h2, w2 = h1 // 2, w1 // 2            # e2 output / d2 input resolution
    h3, w3 = h2 // 2, w2 // 2            # e3 output / d1 input resolution
    return {
        "we1": _conv_w_mat(p["e1_w"]), "be1": p["e1_b"].reshape(1, -1),
        "ge2": _conv_gather_mats(n, h1, w1, 3, 2, 1),
        "we2": _conv_w_mat(p["e2_w"]), "be2": p["e2_b"].reshape(1, -1),
        "ge3": _conv_gather_mats(n, h2, w2, 3, 2, 1),
        "we3": _conv_w_mat(p["e3_w"]), "be3": p["e3_b"].reshape(1, -1),
        "gd1": _deconv_gather_mats(n, h3, w3),
        "wd1": _deconv_phase_mat(p["d1_w"]),
        "bd1": jnp.tile(p["d1_b"].reshape(1, -1), (1, 4)),
        "sc1": _deconv_scatter_mats(n, h3, w3),
        "gd2": _deconv_gather_mats(n, h2, w2),
        "wd2": _deconv_phase_mat(p["d2_w"]),
        "bd2": jnp.tile(p["d2_b"].reshape(1, -1), (1, 4)),
        "sc2": _deconv_scatter_mats(n, h2, w2),
        "gd3": _deconv_gather_mats(n, h1, w1),
        "wd3": _deconv_phase_mat(p["d3_w"]),
        "bd3": jnp.tile(p["d3_b"].reshape(1, -1), (1, 4)),
    }


# ---------------------------------------------------------------------------
# Pure-XLA reference (same bf16 operands / f32 accumulation) for validation
# ---------------------------------------------------------------------------
def _reference_forward(x_nchw, p):
    x = jnp.transpose(x_nchw, (0, 2, 3, 1))

    def conv(x, w, b, stride, pad):
        w_hwio = jnp.transpose(w, (2, 3, 1, 0)).astype(jnp.bfloat16)
        y = jax.lax.conv_general_dilated(
            x.astype(jnp.bfloat16), w_hwio, (stride, stride),
            ((pad, pad), (pad, pad)),
            dimension_numbers=("NHWC", "HWIO", "NHWC"),
            preferred_element_type=jnp.float32)
        return y + b.reshape(1, 1, 1, -1)

    def deconv(x, w, b, stride, pad, out_pad):
        k = w.shape[-1]
        w_hwio = jnp.transpose(w, (2, 3, 0, 1))[::-1, ::-1, :, :].astype(jnp.bfloat16)
        lo, hi = k - 1 - pad, k - 1 - pad + out_pad
        y = jax.lax.conv_general_dilated(
            x.astype(jnp.bfloat16), w_hwio, (1, 1), ((lo, hi), (lo, hi)),
            lhs_dilation=(stride, stride),
            dimension_numbers=("NHWC", "HWIO", "NHWC"),
            preferred_element_type=jnp.float32)
        return y + b.reshape(1, 1, 1, -1)

    x = jax.nn.relu(conv(x, p["e1_w"], p["e1_b"], 2, 1))
    x = jax.nn.relu(conv(x, p["e2_w"], p["e2_b"], 2, 1))
    x = jax.nn.relu(conv(x, p["e3_w"], p["e3_b"], 2, 1))
    x = jax.nn.relu(deconv(x, p["d1_w"], p["d1_b"], 2, 1, 1))
    x = jax.nn.relu(deconv(x, p["d2_w"], p["d2_b"], 2, 1, 1))
    x = jax.nn.sigmoid(deconv(x, p["d3_w"], p["d3_b"], 2, 1, 1))
    return jnp.transpose(x, (0, 3, 1, 2))


if __name__ == "__main__":
    key = jax.random.PRNGKey(0)
    k_x, k_p = jax.random.split(key)
    # grayscale batch: N=2, C=1, H=W=16 (encoder -> 2x64x2x2 -> decoder -> 2x1x16x16)
    x = jax.random.uniform(k_x, (2, 1, 16, 16), dtype=jnp.float32)
    params = init_params(k_p)
    prepped = prepare_params(params, batch=2, height=16, width=16)  # one-time prep

    out = autoencoder_bw3_forward(x, prepped)
    out = jax.block_until_ready(out)

    assert out.shape == (2, 1, 16, 16), out.shape
    assert bool(jnp.all(out >= 0.0)) and bool(jnp.all(out <= 1.0))   # sigmoid range

    ref = jax.block_until_ready(jax.jit(_reference_forward)(x, params))
    assert jnp.allclose(out, ref, atol=2e-2, rtol=2e-2), \
        float(jnp.max(jnp.abs(out - ref)))

    print("KERNEL_OK")
</pallas_src>

<mosaic_0001>
module attributes {stable_mosaic.version = 11 : i64} {
  func.func @_fused_ae_kernel(%arg0: memref<128x16xbf16, #tpu.memory_space<vmem>>, %arg1: memref<16x16xbf16, #tpu.memory_space<vmem>>, %arg2: memref<1x16xf32, #tpu.memory_space<vmem>>, %arg3: memref<9x32x128xbf16, #tpu.memory_space<vmem>>, %arg4: memref<144x32xbf16, #tpu.memory_space<vmem>>, %arg5: memref<1x32xf32, #tpu.memory_space<vmem>>, %arg6: memref<9x8x32xbf16, #tpu.memory_space<vmem>>, %arg7: memref<288x64xbf16, #tpu.memory_space<vmem>>, %arg8: memref<1x64xf32, #tpu.memory_space<vmem>>, %arg9: memref<4x8x8xbf16, #tpu.memory_space<vmem>>, %arg10: memref<256x128xbf16, #tpu.memory_space<vmem>>, %arg11: memref<1x128xf32, #tpu.memory_space<vmem>>, %arg12: memref<4x32x8xbf16, #tpu.memory_space<vmem>>, %arg13: memref<4x32x32xbf16, #tpu.memory_space<vmem>>, %arg14: memref<128x64xbf16, #tpu.memory_space<vmem>>, %arg15: memref<1x64xf32, #tpu.memory_space<vmem>>, %arg16: memref<4x128x32xbf16, #tpu.memory_space<vmem>>, %arg17: memref<4x128x128xbf16, #tpu.memory_space<vmem>>, %arg18: memref<64x4xbf16, #tpu.memory_space<vmem>>, %arg19: memref<1x4xf32, #tpu.memory_space<vmem>>, %arg20: memref<128x4xf32, #tpu.memory_space<vmem>>) attributes {dimension_semantics = [], scalar_prefetch = 0 : i64, scratch_operands = 0 : i64, tpu.core_type = #tpu.core_type<tc>} {
    %c0 = arith.constant 0 : index
    %c0_0 = arith.constant 0 : index
    %0 = vector.load %arg0[%c0, %c0_0] : memref<128x16xbf16, #tpu.memory_space<vmem>>, vector<128x16xbf16>
    %c0_1 = arith.constant 0 : index
    %c0_2 = arith.constant 0 : index
    %1 = vector.load %arg1[%c0_1, %c0_2] : memref<16x16xbf16, #tpu.memory_space<vmem>>, vector<16x16xbf16>
    %cst = arith.constant dense<0.000000e+00> : vector<128x16xf32>
    %2 = tpu.matmul %0, %1, %cst {dimension_numbers = #tpu.dot_dimension_numbers<[1], [0], [0], [1], [0, 0, 1, 1], [], []>} : vector<128x16xbf16>, vector<16x16xbf16>, vector<128x16xf32> -> vector<128x16xf32>
    %c0_3 = arith.constant 0 : index
    %c0_4 = arith.constant 0 : index
    %3 = vector.load %arg2[%c0_3, %c0_4] : memref<1x16xf32, #tpu.memory_space<vmem>>, vector<1x16xf32>
    %4 = vector.broadcast %3 : vector<1x16xf32> to vector<128x16xf32>
    %5 = arith.addf %2, %4 : vector<128x16xf32>
    %cst_5 = arith.constant 0.000000e+00 : f32
    %6 = vector.broadcast %cst_5 : f32 to vector<128x16xf32>
    %7 = arith.maximumf %5, %6 : vector<128x16xf32>
    %8 = arith.truncf %7 : vector<128x16xf32> to vector<128x16xbf16>
    %c0_6 = arith.constant 0 : index
    %c0_7 = arith.constant 0 : index
    %9 = vector.load %arg5[%c0_6, %c0_7] : memref<1x32xf32, #tpu.memory_space<vmem>>, vector<1x32xf32>
    %c0_8 = arith.constant 0 : index
    %c0_9 = arith.constant 0 : index
    %c0_10 = arith.constant 0 : index
    %10 = vector.load %arg3[%c0_8, %c0_9, %c0_10] : memref<9x32x128xbf16, #tpu.memory_space<vmem>>, vector<1x32x128xbf16>
    %11 = vector.shape_cast %10 : vector<1x32x128xbf16> to vector<32x128xbf16>
    %cst_11 = arith.constant dense<0.000000e+00> : vector<32x16xf32>
    %12 = tpu.matmul %11, %8, %cst_11 {dimension_numbers = #tpu.dot_dimension_numbers<[1], [0], [0], [1], [0, 0, 1, 1], [], []>} : vector<32x128xbf16>, vector<128x16xbf16>, vector<32x16xf32> -> vector<32x16xf32>
    %13 = arith.truncf %12 : vector<32x16xf32> to vector<32x16xbf16>
    %c0_12 = arith.constant 0 : index
    %c0_13 = arith.constant 0 : index
    %14 = vector.load %arg4[%c0_12, %c0_13] : memref<144x32xbf16, #tpu.memory_space<vmem>>, vector<16x32xbf16>
    %cst_14 = arith.constant dense<0.000000e+00> : vector<32x32xf32>
    %15 = tpu.matmul %13, %14, %cst_14 {dimension_numbers = #tpu.dot_dimension_numbers<[1], [0], [0], [1], [0, 0, 1, 1], [], []>} : vector<32x16xbf16>, vector<16x32xbf16>, vector<32x32xf32> -> vector<32x32xf32>
    %16 = vector.broadcast %9 : vector<1x32xf32> to vector<32x32xf32>
    %17 = arith.addf %16, %15 : vector<32x32xf32>
    %c1 = arith.constant 1 : index
    %c0_15 = arith.constant 0 : index
    %c0_16 = arith.constant 0 : index
    %18 = vector.load %arg3[%c1, %c0_15, %c0_16] : memref<9x32x128xbf16, #tpu.memory_space<vmem>>, vector<1x32x128xbf16>
    %19 = vector.shape_cast %18 : vector<1x32x128xbf16> to vector<32x128xbf16>
    %cst_17 = arith.constant dense<0.000000e+00> : vector<32x16xf32>
    %20 = tpu.matmul %19, %8, %cst_17 {dimension_numbers = #tpu.dot_dimension_numbers<[1], [0], [0], [1], [0, 0, 1, 1], [], []>} : vector<32x128xbf16>, vector<128x16xbf16>, vector<32x16xf32> -> vector<32x16xf32>
    %21 = arith.truncf %20 : vector<32x16xf32> to vector<32x16xbf16>
    %c16 = arith.constant 16 : index
    %c0_18 = arith.constant 0 : index
    %22 = vector.load %arg4[%c16, %c0_18] : memref<144x32xbf16, #tpu.memory_space<vmem>>, vector<16x32xbf16>
    %cst_19 = arith.constant dense<0.000000e+00> : vector<32x32xf32>
    %23 = tpu.matmul %21, %22, %cst_19 {dimension_numbers = #tpu.dot_dimension_numbers<[1], [0], [0], [1], [0, 0, 1, 1], [], []>} : vector<32x16xbf16>, vector<16x32xbf16>, vector<32x32xf32> -> vector<32x32xf32>
    %24 = arith.addf %17, %23 : vector<32x32xf32>
    %c2 = arith.constant 2 : index
    %c0_20 = arith.constant 0 : index
    %c0_21 = arith.constant 0 : index
    %25 = vector.load %arg3[%c2, %c0_20, %c0_21] : memref<9x32x128xbf16, #tpu.memory_space<vmem>>, vector<1x32x128xbf16>
    %26 = vector.shape_cast %25 : vector<1x32x128xbf16> to vector<32x128xbf16>
    %cst_22 = arith.constant dense<0.000000e+00> : vector<32x16xf32>
    %27 = tpu.matmul %26, %8, %cst_22 {dimension_numbers = #tpu.dot_dimension_numbers<[1], [0], [0], [1], [0, 0, 1, 1], [], []>} : vector<32x128xbf16>, vector<128x16xbf16>, vector<32x16xf32> -> vector<32x16xf32>
    %28 = arith.truncf %27 : vector<32x16xf32> to vector<32x16xbf16>
    %c32 = arith.constant 32 : index
    %c0_23 = arith.constant 0 : index
    %29 = vector.load %arg4[%c32, %c0_23] : memref<144x32xbf16, #tpu.memory_space<vmem>>, vector<16x32xbf16>
    %cst_24 = arith.constant dense<0.000000e+00> : vector<32x32xf32>
    %30 = tpu.matmul %28, %29, %cst_24 {dimension_numbers = #tpu.dot_dimension_numbers<[1], [0], [0], [1], [0, 0, 1, 1], [], []>} : vector<32x16xbf16>, vector<16x32xbf16>, vector<32x32xf32> -> vector<32x32xf32>
    %31 = arith.addf %24, %30 : vector<32x32xf32>
    %c3 = arith.constant 3 : index
    %c0_25 = arith.constant 0 : index
    %c0_26 = arith.constant 0 : index
    %32 = vector.load %arg3[%c3, %c0_25, %c0_26] : memref<9x32x128xbf16, #tpu.memory_space<vmem>>, vector<1x32x128xbf16>
    %33 = vector.shape_cast %32 : vector<1x32x128xbf16> to vector<32x128xbf16>
    %cst_27 = arith.constant dense<0.000000e+00> : vector<32x16xf32>
    %34 = tpu.matmul %33, %8, %cst_27 {dimension_numbers = #tpu.dot_dimension_numbers<[1], [0], [0], [1], [0, 0, 1, 1], [], []>} : vector<32x128xbf16>, vector<128x16xbf16>, vector<32x16xf32> -> vector<32x16xf32>
    %35 = arith.truncf %34 : vector<32x16xf32> to vector<32x16xbf16>
    %c48 = arith.constant 48 : index
    %c0_28 = arith.constant 0 : index
    %36 = vector.load %arg4[%c48, %c0_28] : memref<144x32xbf16, #tpu.memory_space<vmem>>, vector<16x32xbf16>
    %cst_29 = arith.constant dense<0.000000e+00> : vector<32x32xf32>
    %37 = tpu.matmul %35, %36, %cst_29 {dimension_numbers = #tpu.dot_dimension_numbers<[1], [0], [0], [1], [0, 0, 1, 1], [], []>} : vector<32x16xbf16>, vector<16x32xbf16>, vector<32x32xf32> -> vector<32x32xf32>
    %38 = arith.addf %31, %37 : vector<32x32xf32>
    %c4 = arith.constant 4 : index
    %c0_30 = arith.constant 0 : index
    %c0_31 = arith.constant 0 : index
    %39 = vector.load %arg3[%c4, %c0_30, %c0_31] : memref<9x32x128xbf16, #tpu.memory_space<vmem>>, vector<1x32x128xbf16>
    %40 = vector.shape_cast %39 : vector<1x32x128xbf16> to vector<32x128xbf16>
    %cst_32 = arith.constant dense<0.000000e+00> : vector<32x16xf32>
    %41 = tpu.matmul %40, %8, %cst_32 {dimension_numbers = #tpu.dot_dimension_numbers<[1], [0], [0], [1], [0, 0, 1, 1], [], []>} : vector<32x128xbf16>, vector<128x16xbf16>, vector<32x16xf32> -> vector<32x16xf32>
    %42 = arith.truncf %41 : vector<32x16xf32> to vector<32x16xbf16>
    %c64 = arith.constant 64 : index
    %c0_33 = arith.constant 0 : index
    %43 = vector.load %arg4[%c64, %c0_33] : memref<144x32xbf16, #tpu.memory_space<vmem>>, vector<16x32xbf16>
    %cst_34 = arith.constant dense<0.000000e+00> : vector<32x32xf32>
    %44 = tpu.matmul %42, %43, %cst_34 {dimension_numbers = #tpu.dot_dimension_numbers<[1], [0], [0], [1], [0, 0, 1, 1], [], []>} : vector<32x16xbf16>, vector<16x32xbf16>, vector<32x32xf32> -> vector<32x32xf32>
    %45 = arith.addf %38, %44 : vector<32x32xf32>
    %c5 = arith.constant 5 : index
    %c0_35 = arith.constant 0 : index
    %c0_36 = arith.constant 0 : index
    %46 = vector.load %arg3[%c5, %c0_35, %c0_36] : memref<9x32x128xbf16, #tpu.memory_space<vmem>>, vector<1x32x128xbf16>
    %47 = vector.shape_cast %46 : vector<1x32x128xbf16> to vector<32x128xbf16>
    %cst_37 = arith.constant dense<0.000000e+00> : vector<32x16xf32>
    %48 = tpu.matmul %47, %8, %cst_37 {dimension_numbers = #tpu.dot_dimension_numbers<[1], [0], [0], [1], [0, 0, 1, 1], [], []>} : vector<32x128xbf16>, vector<128x16xbf16>, vector<32x16xf32> -> vector<32x16xf32>
    %49 = arith.truncf %48 : vector<32x16xf32> to vector<32x16xbf16>
    %c80 = arith.constant 80 : index
    %c0_38 = arith.constant 0 : index
    %50 = vector.load %arg4[%c80, %c0_38] : memref<144x32xbf16, #tpu.memory_space<vmem>>, vector<16x32xbf16>
    %cst_39 = arith.constant dense<0.000000e+00> : vector<32x32xf32>
    %51 = tpu.matmul %49, %50, %cst_39 {dimension_numbers = #tpu.dot_dimension_numbers<[1], [0], [0], [1], [0, 0, 1, 1], [], []>} : vector<32x16xbf16>, vector<16x32xbf16>, vector<32x32xf32> -> vector<32x32xf32>
    %52 = arith.addf %45, %51 : vector<32x32xf32>
    %c6 = arith.constant 6 : index
    %c0_40 = arith.constant 0 : index
    %c0_41 = arith.constant 0 : index
    %53 = vector.load %arg3[%c6, %c0_40, %c0_41] : memref<9x32x128xbf16, #tpu.memory_space<vmem>>, vector<1x32x128xbf16>
    %54 = vector.shape_cast %53 : vector<1x32x128xbf16> to vector<32x128xbf16>
    %cst_42 = arith.constant dense<0.000000e+00> : vector<32x16xf32>
    %55 = tpu.matmul %54, %8, %cst_42 {dimension_numbers = #tpu.dot_dimension_numbers<[1], [0], [0], [1], [0, 0, 1, 1], [], []>} : vector<32x128xbf16>, vector<128x16xbf16>, vector<32x16xf32> -> vector<32x16xf32>
    %56 = arith.truncf %55 : vector<32x16xf32> to vector<32x16xbf16>
    %c96 = arith.constant 96 : index
    %c0_43 = arith.constant 0 : index
    %57 = vector.load %arg4[%c96, %c0_43] : memref<144x32xbf16, #tpu.memory_space<vmem>>, vector<16x32xbf16>
    %cst_44 = arith.constant dense<0.000000e+00> : vector<32x32xf32>
    %58 = tpu.matmul %56, %57, %cst_44 {dimension_numbers = #tpu.dot_dimension_numbers<[1], [0], [0], [1], [0, 0, 1, 1], [], []>} : vector<32x16xbf16>, vector<16x32xbf16>, vector<32x32xf32> -> vector<32x32xf32>
    %59 = arith.addf %52, %58 : vector<32x32xf32>
    %c7 = arith.constant 7 : index
    %c0_45 = arith.constant 0 : index
    %c0_46 = arith.constant 0 : index
    %60 = vector.load %arg3[%c7, %c0_45, %c0_46] : memref<9x32x128xbf16, #tpu.memory_space<vmem>>, vector<1x32x128xbf16>
    %61 = vector.shape_cast %60 : vector<1x32x128xbf16> to vector<32x128xbf16>
    %cst_47 = arith.constant dense<0.000000e+00> : vector<32x16xf32>
    %62 = tpu.matmul %61, %8, %cst_47 {dimension_numbers = #tpu.dot_dimension_numbers<[1], [0], [0], [1], [0, 0, 1, 1], [], []>} : vector<32x128xbf16>, vector<128x16xbf16>, vector<32x16xf32> -> vector<32x16xf32>
    %63 = arith.truncf %62 : vector<32x16xf32> to vector<32x16xbf16>
    %c112 = arith.constant 112 : index
    %c0_48 = arith.constant 0 : index
    %64 = vector.load %arg4[%c112, %c0_48] : memref<144x32xbf16, #tpu.memory_space<vmem>>, vector<16x32xbf16>
    %cst_49 = arith.constant dense<0.000000e+00> : vector<32x32xf32>
    %65 = tpu.matmul %63, %64, %cst_49 {dimension_numbers = #tpu.dot_dimension_numbers<[1], [0], [0], [1], [0, 0, 1, 1], [], []>} : vector<32x16xbf16>, vector<16x32xbf16>, vector<32x32xf32> -> vector<32x32xf32>
    %66 = arith.addf %59, %65 : vector<32x32xf32>
    %c8 = arith.constant 8 : index
    %c0_50 = arith.constant 0 : index
    %c0_51 = arith.constant 0 : index
    %67 = vector.load %arg3[%c8, %c0_50, %c0_51] : memref<9x32x128xbf16, #tpu.memory_space<vmem>>, vector<1x32x128xbf16>
    %68 = vector.shape_cast %67 : vector<1x32x128xbf16> to vector<32x128xbf16>
    %cst_52 = arith.constant dense<0.000000e+00> : vector<32x16xf32>
    %69 = tpu.matmul %68, %8, %cst_52 {dimension_numbers = #tpu.dot_dimension_numbers<[1], [0], [0], [1], [0, 0, 1, 1], [], []>} : vector<32x128xbf16>, vector<128x16xbf16>, vector<32x16xf32> -> vector<32x16xf32>
    %70 = arith.truncf %69 : vector<32x16xf32> to vector<32x16xbf16>
    %c128 = arith.constant 128 : index
    %c0_53 = arith.constant 0 : index
    %71 = vector.load %arg4[%c128, %c0_53] : memref<144x32xbf16, #tpu.memory_space<vmem>>, vector<16x32xbf16>
    %cst_54 = arith.constant dense<0.000000e+00> : vector<32x32xf32>
    %72 = tpu.matmul %70, %71, %cst_54 {dimension_numbers = #tpu.dot_dimension_numbers<[1], [0], [0], [1], [0, 0, 1, 1], [], []>} : vector<32x16xbf16>, vector<16x32xbf16>, vector<32x32xf32> -> vector<32x32xf32>
    %73 = arith.addf %66, %72 : vector<32x32xf32>
    %cst_55 = arith.constant 0.000000e+00 : f32
    %74 = vector.broadcast %cst_55 : f32 to vector<32x32xf32>
    %75 = arith.maximumf %73, %74 : vector<32x32xf32>
    %76 = arith.truncf %75 : vector<32x32xf32> to vector<32x32xbf16>
    %c0_56 = arith.constant 0 : index
    %c0_57 = arith.constant 0 : index
    %77 = vector.load %arg8[%c0_56, %c0_57] : memref<1x64xf32, #tpu.memory_space<vmem>>, vector<1x64xf32>
    %c0_58 = arith.constant 0 : index
    %c0_59 = arith.constant 0 : index
    %c0_60 = arith.constant 0 : index
    %78 = vector.load %arg6[%c0_58, %c0_59, %c0_60] : memref<9x8x32xbf16, #tpu.memory_space<vmem>>, vector<1x8x32xbf16>
    %79 = vector.shape_cast %78 : vector<1x8x32xbf16> to vector<8x32xbf16>
    %cst_61 = arith.constant dense<0.000000e+00> : vector<8x32xf32>
    %80 = tpu.matmul %79, %76, %cst_61 {dimension_numbers = #tpu.dot_dimension_numbers<[1], [0], [0], [1], [0, 0, 1, 1], [], []>} : vector<8x32xbf16>, vector<32x32xbf16>, vector<8x32xf32> -> vector<8x32xf32>
    %81 = arith.truncf %80 : vector<8x32xf32> to vector<8x32xbf16>
    %c0_62 = arith.constant 0 : index
    %c0_63 = arith.constant 0 : index
    %82 = vector.load %arg7[%c0_62, %c0_63] : memref<288x64xbf16, #tpu.memory_space<vmem>>, vector<32x64xbf16>
    %cst_64 = arith.constant dense<0.000000e+00> : vector<8x64xf32>
    %83 = tpu.matmul %81, %82, %cst_64 {dimension_numbers = #tpu.dot_dimension_numbers<[1], [0], [0], [1], [0, 0, 1, 1], [], []>} : vector<8x32xbf16>, vector<32x64xbf16>, vector<8x64xf32> -> vector<8x64xf32>
    %84 = vector.broadcast %77 : vector<1x64xf32> to vector<8x64xf32>
    %85 = arith.addf %84, %83 : vector<8x64xf32>
    %c1_65 = arith.constant 1 : index
    %c0_66 = arith.constant 0 : index
    %c0_67 = arith.constant 0 : index
    %86 = vector.load %arg6[%c1_65, %c0_66, %c0_67] : memref<9x8x32xbf16, #tpu.memory_space<vmem>>, vector<1x8x32xbf16>
    %87 = vector.shape_cast %86 : vector<1x8x32xbf16> to vector<8x32xbf16>
    %cst_68 = arith.constant dense<0.000000e+00> : vector<8x32xf32>
    %88 = tpu.matmul %87, %76, %cst_68 {dimension_numbers = #tpu.dot_dimension_numbers<[1], [0], [0], [1], [0, 0, 1, 1], [], []>} : vector<8x32xbf16>, vector<32x32xbf16>, vector<8x32xf32> -> vector<8x32xf32>
    %89 = arith.truncf %88 : vector<8x32xf32> to vector<8x32xbf16>
    %c32_69 = arith.constant 32 : index
    %c0_70 = arith.constant 0 : index
    %90 = vector.load %arg7[%c32_69, %c0_70] : memref<288x64xbf16, #tpu.memory_space<vmem>>, vector<32x64xbf16>
    %cst_71 = arith.constant dense<0.000000e+00> : vector<8x64xf32>
    %91 = tpu.matmul %89, %90, %cst_71 {dimension_numbers = #tpu.dot_dimension_numbers<[1], [0], [0], [1], [0, 0, 1, 1], [], []>} : vector<8x32xbf16>, vector<32x64xbf16>, vector<8x64xf32> -> vector<8x64xf32>
    %92 = arith.addf %85, %91 : vector<8x64xf32>
    %c2_72 = arith.constant 2 : index
    %c0_73 = arith.constant 0 : index
    %c0_74 = arith.constant 0 : index
    %93 = vector.load %arg6[%c2_72, %c0_73, %c0_74] : memref<9x8x32xbf16, #tpu.memory_space<vmem>>, vector<1x8x32xbf16>
    %94 = vector.shape_cast %93 : vector<1x8x32xbf16> to vector<8x32xbf16>
    %cst_75 = arith.constant dense<0.000000e+00> : vector<8x32xf32>
    %95 = tpu.matmul %94, %76, %cst_75 {dimension_numbers = #tpu.dot_dimension_numbers<[1], [0], [0], [1], [0, 0, 1, 1], [], []>} : vector<8x32xbf16>, vector<32x32xbf16>, vector<8x32xf32> -> vector<8x32xf32>
    %96 = arith.truncf %95 : vector<8x32xf32> to vector<8x32xbf16>
    %c64_76 = arith.constant 64 : index
    %c0_77 = arith.constant 0 : index
    %97 = vector.load %arg7[%c64_76, %c0_77] : memref<288x64xbf16, #tpu.memory_space<vmem>>, vector<32x64xbf16>
    %cst_78 = arith.constant dense<0.000000e+00> : vector<8x64xf32>
    %98 = tpu.matmul %96, %97, %cst_78 {dimension_numbers = #tpu.dot_dimension_numbers<[1], [0], [0], [1], [0, 0, 1, 1], [], []>} : vector<8x32xbf16>, vector<32x64xbf16>, vector<8x64xf32> -> vector<8x64xf32>
    %99 = arith.addf %92, %98 : vector<8x64xf32>
    %c3_79 = arith.constant 3 : index
    %c0_80 = arith.constant 0 : index
    %c0_81 = arith.constant 0 : index
    %100 = vector.load %arg6[%c3_79, %c0_80, %c0_81] : memref<9x8x32xbf16, #tpu.memory_space<vmem>>, vector<1x8x32xbf16>
    %101 = vector.shape_cast %100 : vector<1x8x32xbf16> to vector<8x32xbf16>
    %cst_82 = arith.constant dense<0.000000e+00> : vector<8x32xf32>
    %102 = tpu.matmul %101, %76, %cst_82 {dimension_numbers = #tpu.dot_dimension_numbers<[1], [0], [0], [1], [0, 0, 1, 1], [], []>} : vector<8x32xbf16>, vector<32x32xbf16>, vector<8x32xf32> -> vector<8x32xf32>
    %103 = arith.truncf %102 : vector<8x32xf32> to vector<8x32xbf16>
    %c96_83 = arith.constant 96 : index
    %c0_84 = arith.constant 0 : index
    %104 = vector.load %arg7[%c96_83, %c0_84] : memref<288x64xbf16, #tpu.memory_space<vmem>>, vector<32x64xbf16>
    %cst_85 = arith.constant dense<0.000000e+00> : vector<8x64xf32>
    %105 = tpu.matmul %103, %104, %cst_85 {dimension_numbers = #tpu.dot_dimension_numbers<[1], [0], [0], [1], [0, 0, 1, 1], [], []>} : vector<8x32xbf16>, vector<32x64xbf16>, vector<8x64xf32> -> vector<8x64xf32>
    %106 = arith.addf %99, %105 : vector<8x64xf32>
    %c4_86 = arith.constant 4 : index
    %c0_87 = arith.constant 0 : index
    %c0_88 = arith.constant 0 : index
    %107 = vector.load %arg6[%c4_86, %c0_87, %c0_88] : memref<9x8x32xbf16, #tpu.memory_space<vmem>>, vector<1x8x32xbf16>
    %108 = vector.shape_cast %107 : vector<1x8x32xbf16> to vector<8x32xbf16>
    %cst_89 = arith.constant dense<0.000000e+00> : vector<8x32xf32>
    %109 = tpu.matmul %108, %76, %cst_89 {dimension_numbers = #tpu.dot_dimension_numbers<[1], [0], [0], [1], [0, 0, 1, 1], [], []>} : vector<8x32xbf16>, vector<32x32xbf16>, vector<8x32xf32> -> vector<8x32xf32>
    %110 = arith.truncf %109 : vector<8x32xf32> to vector<8x32xbf16>
    %c128_90 = arith.constant 128 : index
    %c0_91 = arith.constant 0 : index
    %111 = vector.load %arg7[%c128_90, %c0_91] : memref<288x64xbf16, #tpu.memory_space<vmem>>, vector<32x64xbf16>
    %cst_92 = arith.constant dense<0.000000e+00> : vector<8x64xf32>
    %112 = tpu.matmul %110, %111, %cst_92 {dimension_numbers = #tpu.dot_dimension_numbers<[1], [0], [0], [1], [0, 0, 1, 1], [], []>} : vector<8x32xbf16>, vector<32x64xbf16>, vector<8x64xf32> -> vector<8x64xf32>
    %113 = arith.addf %106, %112 : vector<8x64xf32>
    %c5_93 = arith.constant 5 : index
    %c0_94 = arith.constant 0 : index
    %c0_95 = arith.constant 0 : index
    %114 = vector.load %arg6[%c5_93, %c0_94, %c0_95] : memref<9x8x32xbf16, #tpu.memory_space<vmem>>, vector<1x8x32xbf16>
    %115 = vector.shape_cast %114 : vector<1x8x32xbf16> to vector<8x32xbf16>
    %cst_96 = arith.constant dense<0.000000e+00> : vector<8x32xf32>
    %116 = tpu.matmul %115, %76, %cst_96 {dimension_numbers = #tpu.dot_dimension_numbers<[1], [0], [0], [1], [0, 0, 1, 1], [], []>} : vector<8x32xbf16>, vector<32x32xbf16>, vector<8x32xf32> -> vector<8x32xf32>
    %117 = arith.truncf %116 : vector<8x32xf32> to vector<8x32xbf16>
    %c160 = arith.constant 160 : index
    %c0_97 = arith.constant 0 : index
    %118 = vector.load %arg7[%c160, %c0_97] : memref<288x64xbf16, #tpu.memory_space<vmem>>, vector<32x64xbf16>
    %cst_98 = arith.constant dense<0.000000e+00> : vector<8x64xf32>
    %119 = tpu.matmul %117, %118, %cst_98 {dimension_numbers = #tpu.dot_dimension_numbers<[1], [0], [0], [1], [0, 0, 1, 1], [], []>} : vector<8x32xbf16>, vector<32x64xbf16>, vector<8x64xf32> -> vector<8x64xf32>
    %120 = arith.addf %113, %119 : vector<8x64xf32>
    %c6_99 = arith.constant 6 : index
    %c0_100 = arith.constant 0 : index
    %c0_101 = arith.constant 0 : index
    %121 = vector.load %arg6[%c6_99, %c0_100, %c0_101] : memref<9x8x32xbf16, #tpu.memory_space<vmem>>, vector<1x8x32xbf16>
    %122 = vector.shape_cast %121 : vector<1x8x32xbf16> to vector<8x32xbf16>
    %cst_102 = arith.constant dense<0.000000e+00> : vector<8x32xf32>
    %123 = tpu.matmul %122, %76, %cst_102 {dimension_numbers = #tpu.dot_dimension_numbers<[1], [0], [0], [1], [0, 0, 1, 1], [], []>} : vector<8x32xbf16>, vector<32x32xbf16>, vector<8x32xf32> -> vector<8x32xf32>
    %124 = arith.truncf %123 : vector<8x32xf32> to vector<8x32xbf16>
    %c192 = arith.constant 192 : index
    %c0_103 = arith.constant 0 : index
    %125 = vector.load %arg7[%c192, %c0_103] : memref<288x64xbf16, #tpu.memory_space<vmem>>, vector<32x64xbf16>
    %cst_104 = arith.constant dense<0.000000e+00> : vector<8x64xf32>
    %126 = tpu.matmul %124, %125, %cst_104 {dimension_numbers = #tpu.dot_dimension_numbers<[1], [0], [0], [1], [0, 0, 1, 1], [], []>} : vector<8x32xbf16>, vector<32x64xbf16>, vector<8x64xf32> -> vector<8x64xf32>
    %127 = arith.addf %120, %126 : vector<8x64xf32>
    %c7_105 = arith.constant 7 : index
    %c0_106 = arith.constant 0 : index
    %c0_107 = arith.constant 0 : index
    %128 = vector.load %arg6[%c7_105, %c0_106, %c0_107] : memref<9x8x32xbf16, #tpu.memory_space<vmem>>, vector<1x8x32xbf16>
    %129 = vector.shape_cast %128 : vector<1x8x32xbf16> to vector<8x32xbf16>
    %cst_108 = arith.constant dense<0.000000e+00> : vector<8x32xf32>
    %130 = tpu.matmul %129, %76, %cst_108 {dimension_numbers = #tpu.dot_dimension_numbers<[1], [0], [0], [1], [0, 0, 1, 1], [], []>} : vector<8x32xbf16>, vector<32x32xbf16>, vector<8x32xf32> -> vector<8x32xf32>
    %131 = arith.truncf %130 : vector<8x32xf32> to vector<8x32xbf16>
    %c224 = arith.constant 224 : index
    %c0_109 = arith.constant 0 : index
    %132 = vector.load %arg7[%c224, %c0_109] : memref<288x64xbf16, #tpu.memory_space<vmem>>, vector<32x64xbf16>
    %cst_110 = arith.constant dense<0.000000e+00> : vector<8x64xf32>
    %133 = tpu.matmul %131, %132, %cst_110 {dimension_numbers = #tpu.dot_dimension_numbers<[1], [0], [0], [1], [0, 0, 1, 1], [], []>} : vector<8x32xbf16>, vector<32x64xbf16>, vector<8x64xf32> -> vector<8x64xf32>
    %134 = arith.addf %127, %133 : vector<8x64xf32>
    %c8_111 = arith.constant 8 : index
    %c0_112 = arith.constant 0 : index
    %c0_113 = arith.constant 0 : index
    %135 = vector.load %arg6[%c8_111, %c0_112, %c0_113] : memref<9x8x32xbf16, #tpu.memory_space<vmem>>, vector<1x8x32xbf16>
    %136 = vector.shape_cast %135 : vector<1x8x32xbf16> to vector<8x32xbf16>
    %cst_114 = arith.constant dense<0.000000e+00> : vector<8x32xf32>
    %137 = tpu.matmul %136, %76, %cst_114 {dimension_numbers = #tpu.dot_dimension_numbers<[1], [0], [0], [1], [0, 0, 1, 1], [], []>} : vector<8x32xbf16>, vector<32x32xbf16>, vector<8x32xf32> -> vector<8x32xf32>
    %138 = arith.truncf %137 : vector<8x32xf32> to vector<8x32xbf16>
    %c256 = arith.constant 256 : index
    %c0_115 = arith.constant 0 : index
    %139 = vector.load %arg7[%c256, %c0_115] : memref<288x64xbf16, #tpu.memory_space<vmem>>, vector<32x64xbf16>
    %cst_116 = arith.constant dense<0.000000e+00> : vector<8x64xf32>
    %140 = tpu.matmul %138, %139, %cst_116 {dimension_numbers = #tpu.dot_dimension_numbers<[1], [0], [0], [1], [0, 0, 1, 1], [], []>} : vector<8x32xbf16>, vector<32x64xbf16>, vector<8x64xf32> -> vector<8x64xf32>
    %141 = arith.addf %134, %140 : vector<8x64xf32>
    %cst_117 = arith.constant 0.000000e+00 : f32
    %142 = vector.broadcast %cst_117 : f32 to vector<8x64xf32>
    %143 = arith.maximumf %141, %142 : vector<8x64xf32>
    %144 = arith.truncf %143 : vector<8x64xf32> to vector<8x64xbf16>
    %c0_118 = arith.constant 0 : index
    %c0_119 = arith.constant 0 : index
    %145 = vector.load %arg11[%c0_118, %c0_119] : memref<1x128xf32, #tpu.memory_space<vmem>>, vector<1x128xf32>
    %c0_120 = arith.constant 0 : index
    %c0_121 = arith.constant 0 : index
    %c0_122 = arith.constant 0 : index
    %146 = vector.load %arg9[%c0_120, %c0_121, %c0_122] : memref<4x8x8xbf16, #tpu.memory_space<vmem>>, vector<1x8x8xbf16>
    %147 = vector.shape_cast %146 : vector<1x8x8xbf16> to vector<8x8xbf16>
    %cst_123 = arith.constant dense<0.000000e+00> : vector<8x64xf32>
    %148 = tpu.matmul %147, %144, %cst_123 {dimension_numbers = #tpu.dot_dimension_numbers<[1], [0], [0], [1], [0, 0, 1, 1], [], []>} : vector<8x8xbf16>, vector<8x64xbf16>, vector<8x64xf32> -> vector<8x64xf32>
    %149 = arith.truncf %148 : vector<8x64xf32> to vector<8x64xbf16>
    %c0_124 = arith.constant 0 : index
    %c0_125 = arith.constant 0 : index
    %150 = vector.load %arg10[%c0_124, %c0_125] : memref<256x128xbf16, #tpu.memory_space<vmem>>, vector<64x128xbf16>
    %cst_126 = arith.constant dense<0.000000e+00> : vector<8x128xf32>
    %151 = tpu.matmul %149, %150, %cst_126 {dimension_numbers = #tpu.dot_dimension_numbers<[1], [0], [0], [1], [0, 0, 1, 1], [], []>} : vector<8x64xbf16>, vector<64x128xbf16>, vector<8x128xf32> -> vector<8x128xf32>
    %152 = vector.broadcast %145 : vector<1x128xf32> to vector<8x128xf32>
    %153 = arith.addf %152, %151 : vector<8x128xf32>
    %c1_127 = arith.constant 1 : index
    %c0_128 = arith.constant 0 : index
    %c0_129 = arith.constant 0 : index
    %154 = vector.load %arg9[%c1_127, %c0_128, %c0_129] : memref<4x8x8xbf16, #tpu.memory_space<vmem>>, vector<1x8x8xbf16>
    %155 = vector.shape_cast %154 : vector<1x8x8xbf16> to vector<8x8xbf16>
    %cst_130 = arith.constant dense<0.000000e+00> : vector<8x64xf32>
    %156 = tpu.matmul %155, %144, %cst_130 {dimension_numbers = #tpu.dot_dimension_numbers<[1], [0], [0], [1], [0, 0, 1, 1], [], []>} : vector<8x8xbf16>, vector<8x64xbf16>, vector<8x64xf32> -> vector<8x64xf32>
    %157 = arith.truncf %156 : vector<8x64xf32> to vector<8x64xbf16>
    %c64_131 = arith.constant 64 : index
    %c0_132 = arith.constant 0 : index
    %158 = vector.load %arg10[%c64_131, %c0_132] : memref<256x128xbf16, #tpu.memory_space<vmem>>, vector<64x128xbf16>
    %cst_133 = arith.constant dense<0.000000e+00> : vector<8x128xf32>
    %159 = tpu.matmul %157, %158, %cst_133 {dimension_numbers = #tpu.dot_dimension_numbers<[1], [0], [0], [1], [0, 0, 1, 1], [], []>} : vector<8x64xbf16>, vector<64x128xbf16>, vector<8x128xf32> -> vector<8x128xf32>
    %160 = arith.addf %153, %159 : vector<8x128xf32>
    %c2_134 = arith.constant 2 : index
    %c0_135 = arith.constant 0 : index
    %c0_136 = arith.constant 0 : index
    %161 = vector.load %arg9[%c2_134, %c0_135, %c0_136] : memref<4x8x8xbf16, #tpu.memory_space<vmem>>, vector<1x8x8xbf16>
    %162 = vector.shape_cast %161 : vector<1x8x8xbf16> to vector<8x8xbf16>
    %cst_137 = arith.constant dense<0.000000e+00> : vector<8x64xf32>
    %163 = tpu.matmul %162, %144, %cst_137 {dimension_numbers = #tpu.dot_dimension_numbers<[1], [0], [0], [1], [0, 0, 1, 1], [], []>} : vector<8x8xbf16>, vector<8x64xbf16>, vector<8x64xf32> -> vector<8x64xf32>
    %164 = arith.truncf %163 : vector<8x64xf32> to vector<8x64xbf16>
    %c128_138 = arith.constant 128 : index
    %c0_139 = arith.constant 0 : index
    %165 = vector.load %arg10[%c128_138, %c0_139] : memref<256x128xbf16, #tpu.memory_space<vmem>>, vector<64x128xbf16>
    %cst_140 = arith.constant dense<0.000000e+00> : vector<8x128xf32>
    %166 = tpu.matmul %164, %165, %cst_140 {dimension_numbers = #tpu.dot_dimension_numbers<[1], [0], [0], [1], [0, 0, 1, 1], [], []>} : vector<8x64xbf16>, vector<64x128xbf16>, vector<8x128xf32> -> vector<8x128xf32>
    %167 = arith.addf %160, %166 : vector<8x128xf32>
    %c3_141 = arith.constant 3 : index
    %c0_142 = arith.constant 0 : index
    %c0_143 = arith.constant 0 : index
    %168 = vector.load %arg9[%c3_141, %c0_142, %c0_143] : memref<4x8x8xbf16, #tpu.memory_space<vmem>>, vector<1x8x8xbf16>
    %169 = vector.shape_cast %168 : vector<1x8x8xbf16> to vector<8x8xbf16>
    %cst_144 = arith.constant dense<0.000000e+00> : vector<8x64xf32>
    %170 = tpu.matmul %169, %144, %cst_144 {dimension_numbers = #tpu.dot_dimension_numbers<[1], [0], [0], [1], [0, 0, 1, 1], [], []>} : vector<8x8xbf16>, vector<8x64xbf16>, vector<8x64xf32> -> vector<8x64xf32>
    %171 = arith.truncf %170 : vector<8x64xf32> to vector<8x64xbf16>
    %c192_145 = arith.constant 192 : index
    %c0_146 = arith.constant 0 : index
    %172 = vector.load %arg10[%c192_145, %c0_146] : memref<256x128xbf16, #tpu.memory_space<vmem>>, vector<64x128xbf16>
    %cst_147 = arith.constant dense<0.000000e+00> : vector<8x128xf32>
    %173 = tpu.matmul %171, %172, %cst_147 {dimension_numbers = #tpu.dot_dimension_numbers<[1], [0], [0], [1], [0, 0, 1, 1], [], []>} : vector<8x64xbf16>, vector<64x128xbf16>, vector<8x128xf32> -> vector<8x128xf32>
    %174 = arith.addf %167, %173 : vector<8x128xf32>
    %cst_148 = arith.constant 0.000000e+00 : f32
    %175 = vector.broadcast %cst_148 : f32 to vector<8x128xf32>
    %176 = arith.maximumf %174, %175 : vector<8x128xf32>
    %c0_149 = arith.constant 0 : index
    %c0_150 = arith.constant 0 : index
    %c0_151 = arith.constant 0 : index
    %177 = vector.load %arg12[%c0_149, %c0_150, %c0_151] : memref<4x32x8xbf16, #tpu.memory_space<vmem>>, vector<1x32x8xbf16>
    %178 = vector.shape_cast %177 : vector<1x32x8xbf16> to vector<32x8xbf16>
    %179 = vector.extract_strided_slice %176 {offsets = [0, 0], sizes = [8, 32], strides = [1, 1]} : vector<8x128xf32> to vector<8x32xf32>
    %180 = arith.truncf %179 : vector<8x32xf32> to vector<8x32xbf16>
    %cst_152 = arith.constant dense<0.000000e+00> : vector<32x32xf32>
    %181 = tpu.matmul %178, %180, %cst_152 {dimension_numbers = #tpu.dot_dimension_numbers<[1], [0], [0], [1], [0, 0, 1, 1], [], []>} : vector<32x8xbf16>, vector<8x32xbf16>, vector<32x32xf32> -> vector<32x32xf32>
    %c1_153 = arith.constant 1 : index
    %c0_154 = arith.constant 0 : index
    %c0_155 = arith.constant 0 : index
    %182 = vector.load %arg12[%c1_153, %c0_154, %c0_155] : memref<4x32x8xbf16, #tpu.memory_space<vmem>>, vector<1x32x8xbf16>
    %183 = vector.shape_cast %182 : vector<1x32x8xbf16> to vector<32x8xbf16>
    %184 = vector.extract_strided_slice %176 {offsets = [0, 32], sizes = [8, 32], strides = [1, 1]} : vector<8x128xf32> to vector<8x32xf32>
    %185 = arith.truncf %184 : vector<8x32xf32> to vector<8x32xbf16>
    %cst_156 = arith.constant dense<0.000000e+00> : vector<32x32xf32>
    %186 = tpu.matmul %183, %185, %cst_156 {dimension_numbers = #tpu.dot_dimension_numbers<[1], [0], [0], [1], [0, 0, 1, 1], [], []>} : vector<32x8xbf16>, vector<8x32xbf16>, vector<32x32xf32> -> vector<32x32xf32>
    %187 = arith.addf %181, %186 : vector<32x32xf32>
    %c2_157 = arith.constant 2 : index
    %c0_158 = arith.constant 0 : index
    %c0_159 = arith.constant 0 : index
    %188 = vector.load %arg12[%c2_157, %c0_158, %c0_159] : memref<4x32x8xbf16, #tpu.memory_space<vmem>>, vector<1x32x8xbf16>
    %189 = vector.shape_cast %188 : vector<1x32x8xbf16> to vector<32x8xbf16>
    %190 = vector.extract_strided_slice %176 {offsets = [0, 64], sizes = [8, 32], strides = [1, 1]} : vector<8x128xf32> to vector<8x32xf32>
    %191 = arith.truncf %190 : vector<8x32xf32> to vector<8x32xbf16>
    %cst_160 = arith.constant dense<0.000000e+00> : vector<32x32xf32>
    %192 = tpu.matmul %189, %191, %cst_160 {dimension_numbers = #tpu.dot_dimension_numbers<[1], [0], [0], [1], [0, 0, 1, 1], [], []>} : vector<32x8xbf16>, vector<8x32xbf16>, vector<32x32xf32> -> vector<32x32xf32>
    %193 = arith.addf %187, %192 : vector<32x32xf32>
    %c3_161 = arith.constant 3 : index
    %c0_162 = arith.constant 0 : index
    %c0_163 = arith.constant 0 : index
    %194 = vector.load %arg12[%c3_161, %c0_162, %c0_163] : memref<4x32x8xbf16, #tpu.memory_space<vmem>>, vector<1x32x8xbf16>
    %195 = vector.shape_cast %194 : vector<1x32x8xbf16> to vector<32x8xbf16>
    %196 = vector.extract_strided_slice %176 {offsets = [0, 96], sizes = [8, 32], strides = [1, 1]} : vector<8x128xf32> to vector<8x32xf32>
    %197 = arith.truncf %196 : vector<8x32xf32> to vector<8x32xbf16>
    %cst_164 = arith.constant dense<0.000000e+00> : vector<32x32xf32>
    %198 = tpu.matmul %195, %197, %cst_164 {dimension_numbers = #tpu.dot_dimension_numbers<[1], [0], [0], [1], [0, 0, 1, 1], [], []>} : vector<32x8xbf16>, vector<8x32xbf16>, vector<32x32xf32> -> vector<32x32xf32>
    %199 = arith.addf %193, %198 : vector<32x32xf32>
    %200 = arith.truncf %199 : vector<32x32xf32> to vector<32x32xbf16>
    %c0_165 = arith.constant 0 : index
    %c0_166 = arith.constant 0 : index
    %201 = vector.load %arg15[%c0_165, %c0_166] : memref<1x64xf32, #tpu.memory_space<vmem>>, vector<1x64xf32>
    %c0_167 = arith.constant 0 : index
    %c0_168 = arith.constant 0 : index
    %c0_169 = arith.constant 0 : index
    %202 = vector.load %arg13[%c0_167, %c0_168, %c0_169] : memref<4x32x32xbf16, #tpu.memory_space<vmem>>, vector<1x32x32xbf16>
    %203 = vector.shape_cast %202 : vector<1x32x32xbf16> to vector<32x32xbf16>
    %cst_170 = arith.constant dense<0.000000e+00> : vector<32x32xf32>
    %204 = tpu.matmul %203, %200, %cst_170 {dimension_numbers = #tpu.dot_dimension_numbers<[1], [0], [0], [1], [0, 0, 1, 1], [], []>} : vector<32x32xbf16>, vector<32x32xbf16>, vector<32x32xf32> -> vector<32x32xf32>
    %205 = arith.truncf %204 : vector<32x32xf32> to vector<32x32xbf16>
    %c0_171 = arith.constant 0 : index
    %c0_172 = arith.constant 0 : index
    %206 = vector.load %arg14[%c0_171, %c0_172] : memref<128x64xbf16, #tpu.memory_space<vmem>>, vector<32x64xbf16>
    %cst_173 = arith.constant dense<0.000000e+00> : vector<32x64xf32>
    %207 = tpu.matmul %205, %206, %cst_173 {dimension_numbers = #tpu.dot_dimension_numbers<[1], [0], [0], [1], [0, 0, 1, 1], [], []>} : vector<32x32xbf16>, vector<32x64xbf16>, vector<32x64xf32> -> vector<32x64xf32>
    %208 = vector.broadcast %201 : vector<1x64xf32> to vector<32x64xf32>
    %209 = arith.addf %208, %207 : vector<32x64xf32>
    %c1_174 = arith.constant 1 : index
    %c0_175 = arith.constant 0 : index
    %c0_176 = arith.constant 0 : index
    %210 = vector.load %arg13[%c1_174, %c0_175, %c0_176] : memref<4x32x32xbf16, #tpu.memory_space<vmem>>, vector<1x32x32xbf16>
    %211 = vector.shape_cast %210 : vector<1x32x32xbf16> to vector<32x32xbf16>
    %cst_177 = arith.constant dense<0.000000e+00> : vector<32x32xf32>
    %212 = tpu.matmul %211, %200, %cst_177 {dimension_numbers = #tpu.dot_dimension_numbers<[1], [0], [0], [1], [0, 0, 1, 1], [], []>} : vector<32x32xbf16>, vector<32x32xbf16>, vector<32x32xf32> -> vector<32x32xf32>
    %213 = arith.truncf %212 : vector<32x32xf32> to vector<32x32xbf16>
    %c32_178 = arith.constant 32 : index
    %c0_179 = arith.constant 0 : index
    %214 = vector.load %arg14[%c32_178, %c0_179] : memref<128x64xbf16, #tpu.memory_space<vmem>>, vector<32x64xbf16>
    %cst_180 = arith.constant dense<0.000000e+00> : vector<32x64xf32>
    %215 = tpu.matmul %213, %214, %cst_180 {dimension_numbers = #tpu.dot_dimension_numbers<[1], [0], [0], [1], [0, 0, 1, 1], [], []>} : vector<32x32xbf16>, vector<32x64xbf16>, vector<32x64xf32> -> vector<32x64xf32>
    %216 = arith.addf %209, %215 : vector<32x64xf32>
    %c2_181 = arith.constant 2 : index
    %c0_182 = arith.constant 0 : index
    %c0_183 = arith.constant 0 : index
    %217 = vector.load %arg13[%c2_181, %c0_182, %c0_183] : memref<4x32x32xbf16, #tpu.memory_space<vmem>>, vector<1x32x32xbf16>
    %218 = vector.shape_cast %217 : vector<1x32x32xbf16> to vector<32x32xbf16>
    %cst_184 = arith.constant dense<0.000000e+00> : vector<32x32xf32>
    %219 = tpu.matmul %218, %200, %cst_184 {dimension_numbers = #tpu.dot_dimension_numbers<[1], [0], [0], [1], [0, 0, 1, 1], [], []>} : vector<32x32xbf16>, vector<32x32xbf16>, vector<32x32xf32> -> vector<32x32xf32>
    %220 = arith.truncf %219 : vector<32x32xf32> to vector<32x32xbf16>
    %c64_185 = arith.constant 64 : index
    %c0_186 = arith.constant 0 : index
    %221 = vector.load %arg14[%c64_185, %c0_186] : memref<128x64xbf16, #tpu.memory_space<vmem>>, vector<32x64xbf16>
    %cst_187 = arith.constant dense<0.000000e+00> : vector<32x64xf32>
    %222 = tpu.matmul %220, %221, %cst_187 {dimension_numbers = #tpu.dot_dimension_numbers<[1], [0], [0], [1], [0, 0, 1, 1], [], []>} : vector<32x32xbf16>, vector<32x64xbf16>, vector<32x64xf32> -> vector<32x64xf32>
    %223 = arith.addf %216, %222 : vector<32x64xf32>
    %c3_188 = arith.constant 3 : index
    %c0_189 = arith.constant 0 : index
    %c0_190 = arith.constant 0 : index
    %224 = vector.load %arg13[%c3_188, %c0_189, %c0_190] : memref<4x32x32xbf16, #tpu.memory_space<vmem>>, vector<1x32x32xbf16>
    %225 = vector.shape_cast %224 : vector<1x32x32xbf16> to vector<32x32xbf16>
    %cst_191 = arith.constant dense<0.000000e+00> : vector<32x32xf32>
    %226 = tpu.matmul %225, %200, %cst_191 {dimension_numbers = #tpu.dot_dimension_numbers<[1], [0], [0], [1], [0, 0, 1, 1], [], []>} : vector<32x32xbf16>, vector<32x32xbf16>, vector<32x32xf32> -> vector<32x32xf32>
    %227 = arith.truncf %226 : vector<32x32xf32> to vector<32x32xbf16>
    %c96_192 = arith.constant 96 : index
    %c0_193 = arith.constant 0 : index
    %228 = vector.load %arg14[%c96_192, %c0_193] : memref<128x64xbf16, #tpu.memory_space<vmem>>, vector<32x64xbf16>
    %cst_194 = arith.constant dense<0.000000e+00> : vector<32x64xf32>
    %229 = tpu.matmul %227, %228, %cst_194 {dimension_numbers = #tpu.dot_dimension_numbers<[1], [0], [0], [1], [0, 0, 1, 1], [], []>} : vector<32x32xbf16>, vector<32x64xbf16>, vector<32x64xf32> -> vector<32x64xf32>
    %230 = arith.addf %223, %229 : vector<32x64xf32>
    %cst_195 = arith.constant 0.000000e+00 : f32
    %231 = vector.broadcast %cst_195 : f32 to vector<32x64xf32>
    %232 = arith.maximumf %230, %231 : vector<32x64xf32>
    %c0_196 = arith.constant 0 : index
    %c0_197 = arith.constant 0 : index
    %c0_198 = arith.constant 0 : index
    %233 = vector.load %arg16[%c0_196, %c0_197, %c0_198] : memref<4x128x32xbf16, #tpu.memory_space<vmem>>, vector<1x128x32xbf16>
    %234 = vector.shape_cast %233 : vector<1x128x32xbf16> to vector<128x32xbf16>
    %235 = vector.extract_strided_slice %232 {offsets = [0, 0], sizes = [32, 16], strides = [1, 1]} : vector<32x64xf32> to vector<32x16xf32>
    %236 = arith.truncf %235 : vector<32x16xf32> to vector<32x16xbf16>
    %cst_199 = arith.constant dense<0.000000e+00> : vector<128x16xf32>
    %237 = tpu.matmul %234, %236, %cst_199 {dimension_numbers = #tpu.dot_dimension_numbers<[1], [0], [0], [1], [0, 0, 1, 1], [], []>} : vector<128x32xbf16>, vector<32x16xbf16>, vector<128x16xf32> -> vector<128x16xf32>
    %c1_200 = arith.constant 1 : index
    %c0_201 = arith.constant 0 : index
    %c0_202 = arith.constant 0 : index
    %238 = vector.load %arg16[%c1_200, %c0_201, %c0_202] : memref<4x128x32xbf16, #tpu.memory_space<vmem>>, vector<1x128x32xbf16>
    %239 = vector.shape_cast %238 : vector<1x128x32xbf16> to vector<128x32xbf16>
    %240 = vector.extract_strided_slice %232 {offsets = [0, 16], sizes = [32, 16], strides = [1, 1]} : vector<32x64xf32> to vector<32x16xf32>
    %241 = arith.truncf %240 : vector<32x16xf32> to vector<32x16xbf16>
    %cst_203 = arith.constant dense<0.000000e+00> : vector<128x16xf32>
    %242 = tpu.matmul %239, %241, %cst_203 {dimension_numbers = #tpu.dot_dimension_numbers<[1], [0], [0], [1], [0, 0, 1, 1], [], []>} : vector<128x32xbf16>, vector<32x16xbf16>, vector<128x16xf32> -> vector<128x16xf32>
    %243 = arith.addf %237, %242 : vector<128x16xf32>
    %c2_204 = arith.constant 2 : index
    %c0_205 = arith.constant 0 : index
    %c0_206 = arith.constant 0 : index
    %244 = vector.load %arg16[%c2_204, %c0_205, %c0_206] : memref<4x128x32xbf16, #tpu.memory_space<vmem>>, vector<1x128x32xbf16>
    %245 = vector.shape_cast %244 : vector<1x128x32xbf16> to vector<128x32xbf16>
    %246 = vector.extract_strided_slice %232 {offsets = [0, 32], sizes = [32, 16], strides = [1, 1]} : vector<32x64xf32> to vector<32x16xf32>
    %247 = arith.truncf %246 : vector<32x16xf32> to vector<32x16xbf16>
    %cst_207 = arith.constant dense<0.000000e+00> : vector<128x16xf32>
    %248 = tpu.matmul %245, %247, %cst_207 {dimension_numbers = #tpu.dot_dimension_numbers<[1], [0], [0], [1], [0, 0, 1, 1], [], []>} : vector<128x32xbf16>, vector<32x16xbf16>, vector<128x16xf32> -> vector<128x16xf32>
    %249 = arith.addf %243, %248 : vector<128x16xf32>
    %c3_208 = arith.constant 3 : index
    %c0_209 = arith.constant 0 : index
    %c0_210 = arith.constant 0 : index
    %250 = vector.load %arg16[%c3_208, %c0_209, %c0_210] : memref<4x128x32xbf16, #tpu.memory_space<vmem>>, vector<1x128x32xbf16>
    %251 = vector.shape_cast %250 : vector<1x128x32xbf16> to vector<128x32xbf16>
    %252 = vector.extract_strided_slice %232 {offsets = [0, 48], sizes = [32, 16], strides = [1, 1]} : vector<32x64xf32> to vector<32x16xf32>
    %253 = arith.truncf %252 : vector<32x16xf32> to vector<32x16xbf16>
    %cst_211 = arith.constant dense<0.000000e+00> : vector<128x16xf32>
    %254 = tpu.matmul %251, %253, %cst_211 {dimension_numbers = #tpu.dot_dimension_numbers<[1], [0], [0], [1], [0, 0, 1, 1], [], []>} : vector<128x32xbf16>, vector<32x16xbf16>, vector<128x16xf32> -> vector<128x16xf32>
    %255 = arith.addf %249, %254 : vector<128x16xf32>
    %256 = arith.truncf %255 : vector<128x16xf32> to vector<128x16xbf16>
    %c0_212 = arith.constant 0 : index
    %c0_213 = arith.constant 0 : index
    %257 = vector.load %arg19[%c0_212, %c0_213] : memref<1x4xf32, #tpu.memory_space<vmem>>, vector<1x4xf32>
    %c0_214 = arith.constant 0 : index
    %c0_215 = arith.constant 0 : index
    %c0_216 = arith.constant 0 : index
    %258 = vector.load %arg17[%c0_214, %c0_215, %c0_216] : memref<4x128x128xbf16, #tpu.memory_space<vmem>>, vector<1x128x128xbf16>
    %259 = vector.shape_cast %258 : vector<1x128x128xbf16> to vector<128x128xbf16>
    %cst_217 = arith.constant dense<0.000000e+00> : vector<128x16xf32>
    %260 = tpu.matmul %259, %256, %cst_217 {dimension_numbers = #tpu.dot_dimension_numbers<[1], [0], [0], [1], [0, 0, 1, 1], [], []>} : vector<128x128xbf16>, vector<128x16xbf16>, vector<128x16xf32> -> vector<128x16xf32>
    %261 = arith.truncf %260 : vector<128x16xf32> to vector<128x16xbf16>
    %c0_218 = arith.constant 0 : index
    %c0_219 = arith.constant 0 : index
    %262 = vector.load %arg18[%c0_218, %c0_219] : memref<64x4xbf16, #tpu.memory_space<vmem>>, vector<16x4xbf16>
    %cst_220 = arith.constant dense<0.000000e+00> : vector<128x4xf32>
    %263 = tpu.matmul %261, %262, %cst_220 {dimension_numbers = #tpu.dot_dimension_numbers<[1], [0], [0], [1], [0, 0, 1, 1], [], []>} : vector<128x16xbf16>, vector<16x4xbf16>, vector<128x4xf32> -> vector<128x4xf32>
    %264 = vector.broadcast %257 : vector<1x4xf32> to vector<128x4xf32>
    %265 = arith.addf %264, %263 : vector<128x4xf32>
    %c1_221 = arith.constant 1 : index
    %c0_222 = arith.constant 0 : index
    %c0_223 = arith.constant 0 : index
    %266 = vector.load %arg17[%c1_221, %c0_222, %c0_223] : memref<4x128x128xbf16, #tpu.memory_space<vmem>>, vector<1x128x128xbf16>
    %267 = vector.shape_cast %266 : vector<1x128x128xbf16> to vector<128x128xbf16>
    %cst_224 = arith.constant dense<0.000000e+00> : vector<128x16xf32>
    %268 = tpu.matmul %267, %256, %cst_224 {dimension_numbers = #tpu.dot_dimension_numbers<[1], [0], [0], [1], [0, 0, 1, 1], [], []>} : vector<128x128xbf16>, vector<128x16xbf16>, vector<128x16xf32> -> vector<128x16xf32>
    %269 = arith.truncf %268 : vector<128x16xf32> to vector<128x16xbf16>
    %c16_225 = arith.constant 16 : index
    %c0_226 = arith.constant 0 : index
    %270 = vector.load %arg18[%c16_225, %c0_226] : memref<64x4xbf16, #tpu.memory_space<vmem>>, vector<16x4xbf16>
    %cst_227 = arith.constant dense<0.000000e+00> : vector<128x4xf32>
    %271 = tpu.matmul %269, %270, %cst_227 {dimension_numbers = #tpu.dot_dimension_numbers<[1], [0], [0], [1], [0, 0, 1, 1], [], []>} : vector<128x16xbf16>, vector<16x4xbf16>, vector<128x4xf32> -> vector<128x4xf32>
    %272 = arith.addf %265, %271 : vector<128x4xf32>
    %c2_228 = arith.constant 2 : index
    %c0_229 = arith.constant 0 : index
    %c0_230 = arith.constant 0 : index
    %273 = vector.load %arg17[%c2_228, %c0_229, %c0_230] : memref<4x128x128xbf16, #tpu.memory_space<vmem>>, vector<1x128x128xbf16>
    %274 = vector.shape_cast %273 : vector<1x128x128xbf16> to vector<128x128xbf16>
    %cst_231 = arith.constant dense<0.000000e+00> : vector<128x16xf32>
    %275 = tpu.matmul %274, %256, %cst_231 {dimension_numbers = #tpu.dot_dimension_numbers<[1], [0], [0], [1], [0, 0, 1, 1], [], []>} : vector<128x128xbf16>, vector<128x16xbf16>, vector<128x16xf32> -> vector<128x16xf32>
    %276 = arith.truncf %275 : vector<128x16xf32> to vector<128x16xbf16>
    %c32_232 = arith.constant 32 : index
    %c0_233 = arith.constant 0 : index
    %277 = vector.load %arg18[%c32_232, %c0_233] : memref<64x4xbf16, #tpu.memory_space<vmem>>, vector<16x4xbf16>
    %cst_234 = arith.constant dense<0.000000e+00> : vector<128x4xf32>
    %278 = tpu.matmul %276, %277, %cst_234 {dimension_numbers = #tpu.dot_dimension_numbers<[1], [0], [0], [1], [0, 0, 1, 1], [], []>} : vector<128x16xbf16>, vector<16x4xbf16>, vector<128x4xf32> -> vector<128x4xf32>
    %279 = arith.addf %272, %278 : vector<128x4xf32>
    %c3_235 = arith.constant 3 : index
    %c0_236 = arith.constant 0 : index
    %c0_237 = arith.constant 0 : index
    %280 = vector.load %arg17[%c3_235, %c0_236, %c0_237] : memref<4x128x128xbf16, #tpu.memory_space<vmem>>, vector<1x128x128xbf16>
    %281 = vector.shape_cast %280 : vector<1x128x128xbf16> to vector<128x128xbf16>
    %cst_238 = arith.constant dense<0.000000e+00> : vector<128x16xf32>
    %282 = tpu.matmul %281, %256, %cst_238 {dimension_numbers = #tpu.dot_dimension_numbers<[1], [0], [0], [1], [0, 0, 1, 1], [], []>} : vector<128x128xbf16>, vector<128x16xbf16>, vector<128x16xf32> -> vector<128x16xf32>
    %283 = arith.truncf %282 : vector<128x16xf32> to vector<128x16xbf16>
    %c48_239 = arith.constant 48 : index
    %c0_240 = arith.constant 0 : index
    %284 = vector.load %arg18[%c48_239, %c0_240] : memref<64x4xbf16, #tpu.memory_space<vmem>>, vector<16x4xbf16>
    %cst_241 = arith.constant dense<0.000000e+00> : vector<128x4xf32>
    %285 = tpu.matmul %283, %284, %cst_241 {dimension_numbers = #tpu.dot_dimension_numbers<[1], [0], [0], [1], [0, 0, 1, 1], [], []>} : vector<128x16xbf16>, vector<16x4xbf16>, vector<128x4xf32> -> vector<128x4xf32>
    %286 = arith.addf %279, %285 : vector<128x4xf32>
    %287 = arith.negf %286 : vector<128x4xf32>
    %288 = math.exp %287 : vector<128x4xf32>
    %cst_242 = arith.constant 1.000000e+00 : f32
    %289 = vector.broadcast %cst_242 : f32 to vector<128x4xf32>
    %290 = arith.addf %289, %288 : vector<128x4xf32>
    %291 = arith.divf %289, %290 : vector<128x4xf32>
    %c0_243 = arith.constant 0 : index
    %c0_244 = arith.constant 0 : index
    %292 = vector.load %arg20[%c0_243, %c0_244] : memref<128x4xf32, #tpu.memory_space<vmem>>, vector<128x4xf32>
    tpu.vector_store %arg20[%c0_243, %c0_244], %291 {strides = array<i32>} : memref<128x4xf32, #tpu.memory_space<vmem>>, vector<128x4xf32>,
    return
  }
}

</mosaic_0001>

<bundles_post_ra>
// kernel: autoencoder_bw3_forward.1
= control target key start
LH: loop header
LB: loop body
LE: loop exit
PB: predicated region body
PF: predicated region fallthrough
CT: control target
= control target key end

     0   :  { %vm137_vm0 = vcmask 130048   ;;  %vm8212_vm1 = vmmov 0   ;;  %vm1512_vm2 = vcmask 261120   ;;  %vm2479_vm3 = vcmask 1043456   ;;  %s8214_s24 = smov 96   ;;  %s9553_s1 = inlined_call_operand.vmem [shape: bf16[16,16], index: 1, kind: input, shape index: {}]   ;;  %s9554_s0 = inlined_call_operand.vmem [shape: bf16[128,16], index: 0, kind: input, shape index: {}]   ;;  %s9555_s3 = inlined_call_operand.vmem [shape: bf16[9,32,128], index: 3, kind: input, shape index: {}]   ;;  %s9556_s2 = inlined_call_operand.vmem [shape: f32[1,16], index: 2, kind: input, shape index: {}]   ;;  %s9557_s4 = inlined_call_operand.vmem [shape: bf16[144,32], index: 4, kind: input, shape index: {}]   ;;  %s9558_s7 = inlined_call_operand.vmem [shape: bf16[288,64], index: 7, kind: input, shape index: {}]   ;;  %s9559_s5 = inlined_call_operand.vmem [shape: f32[1,32], index: 5, kind: input, shape index: {}]   ;;  %s9560_s6 = inlined_call_operand.vmem [shape: bf16[9,8,32], index: 6, kind: input, shape index: {}]   ;;  %s9561_s10 = inlined_call_operand.vmem [shape: bf16[256,128], index: 10, kind: input, shape index: {}]   ;;  %s9562_s8 = inlined_call_operand.vmem [shape: f32[1,64], index: 8, kind: input, shape index: {}]   ;;  %s9563_s9 = inlined_call_operand.vmem [shape: bf16[4,8,8], index: 9, kind: input, shape index: {}]   ;;  %s9564_s11 = inlined_call_operand.vmem [shape: f32[1,128], index: 11, kind: input, shape index: {}]   ;;  %s9565_s12 = inlined_call_operand.vmem [shape: bf16[4,32,8], index: 12, kind: input, shape index: {}]   ;;  %s9566_s13 = inlined_call_operand.vmem [shape: bf16[4,32,32], index: 13, kind: input, shape index: {}]   ;;  %s9567_s14 = inlined_call_operand.vmem [shape: bf16[128,64], index: 14, kind: input, shape index: {}]   ;;  %s9568_s15 = inlined_call_operand.vmem [shape: f32[1,64], index: 15, kind: input, shape index: {}]   ;;  %s9569_s16 = inlined_call_operand.vmem [shape: bf16[4,128,32], index: 16, kind: input, shape index: {}]   ;;  %s9570_s17 = inlined_call_operand.vmem [shape: bf16[4,128,128], index: 17, kind: input, shape index: {}]   ;;  %s9571_s18 = inlined_call_operand.vmem [shape: bf16[64,4], index: 18, kind: input, shape index: {}]   ;;  %s9572_s19 = inlined_call_operand.vmem [shape: f32[1,4], index: 19, kind: input, shape index: {}]   ;;  %s9573_s20 = inlined_call_operand.vmem [shape: f32[128,4], index: 20, kind: output, shape index: {}]  }
   0x1   :  { %9577 = sst [smem:[#allocation2_spill]] %s9553_s1  ;;  %vm2475_vm4 = vcmask 64512   ;;  %vm2556_vm5 = vcmask 523264   ;;  %vm6016_vm6 = vcmask 31744  }
   0x2   :  { %9578 = sst [smem:[#allocation3_spill]] %s9554_s0  ;;  %s9582_s23 = sld [smem:[#allocation2_spill]] }
   0x3   :  { %9579 = sst [smem:[#allocation4_spill]] %s9555_s3  ;;  %s9583_s25 = sld [smem:[#allocation3_spill]] }
   0x4   :  { %9580 = sst [smem:[#allocation5_spill]] %s9556_s2  ;;  %s9584_s27 = sld [smem:[#allocation4_spill]] }
   0x5   :  { %9581 = sst [smem:[#allocation6_spill]] %s9557_s4  ;;  %s9585_s29 = sld [smem:[#allocation5_spill]] }
   0x6   :  { %s8215_s3 = smov 64   ;;  %s8217_s4 = smov 80  }
   0x8   :  { %v7985_v0 = vld [vmem:[%s9582_s23] sm:$0xff]  }
   0x9   :  { %v7986_v1 = vld [vmem:[%s9583_s25] sm:$0xff]   ;;  %6916 = vmatprep.subr.bf16.mxu1 %v7985_v0  ;;  %v7987_v2 = vld [vmem:[%s9583_s25 + $0x8] sm:$0xff]   ;;  %v7988_v3 = vld [vmem:[%s9583_s25 + $0x10] sm:$0xff]  }
   0xa   :  { %6917 = vmatpush3.bf16.msra.mxu1 %v7985_v0  ;;  %6918 = vmatprep.mubr.msk.bf16.mxu1 %vm137_vm0, %v7986_v1  ;;  %v7989_v4 = vld [vmem:[%s9583_s25 + $0x18] sm:$0xff]   ;;  %v7990_v5 = vld [vmem:[%s9583_s25 + $0x20] sm:$0xff]   ;;  %v7991_v6 = vld [vmem:[%s9583_s25 + $0x28] sm:$0xff]  }
   0xb   :  { %v7992_v7 = vld [vmem:[%s9583_s25 + $0x30] sm:$0xff]   ;;  %v7993_v8 = vld [vmem:[%s9583_s25 + $0x38] sm:$0xff]   ;;  %v7994_v9 = vld [vmem:[%s9584_s27] sm:$0xff]   ;;  %s9586_s25 = sld [smem:[#allocation6_spill]] }
   0xc   :  { %v6037_v10 = vld [vmem:[%s9585_s29] ss:$0 sm:$0xff] }
   0xd   :  { %6919 = vmatmul.mubr.msk.bf16.vlgmr.msra.gmra.mrb[0].mxu1 %vm137_vm0, %v7987_v2 }
   0xe   :  { %6922 = vmatprep.mubr.msk.bf16.mxu1 %vm137_vm0, %v7988_v3  ;;  %v7995_v3 = vld [vmem:[%s9584_s27 + $0x8] sm:$0xff]  }
  0x15   :  { %6923 = vmatmul.mubr.msk.bf16.gmra.mrb[4].mxu1 %vm137_vm0, %v7989_v4  ;;  %v7996_v4 = vld [vmem:[%s9584_s27 + $0x10] sm:$0xff]  }
  0x16   :  { %6926 = vmatprep.mubr.msk.bf16.mxu1 %vm137_vm0, %v7990_v5  ;;  %v7997_v5 = vld [vmem:[%s9584_s27 + $0x18] sm:$0xff]  }
  0x1d   :  { %6927 = vmatmul.mubr.msk.bf16.gmra.mrb[8].mxu1 %vm137_vm0, %v7991_v6  ;;  %v7998_v6 = vld [vmem:[%s9584_s27 + $0x30] sm:$0xff]  }
  0x1e   :  { %6930 = vmatprep.mubr.msk.bf16.mxu1 %vm137_vm0, %v7992_v7  ;;  %v7999_v7 = vld [vmem:[%s9584_s27 + $0x38] sm:$0xff]  }
  0x25   :  { %6931 = vmatmul.mubr.msk.bf16.gmra.mrb[12].mxu1 %vm137_vm0, %v7993_v8  ;;  %v8000_v8 = vld [vmem:[%s9584_s27 + $0x50] sm:$0xff]  }
  0x26   :  { %6950 = vmatprep.mubr.bf16.mxu1 %v7994_v9  ;;  %v8004_v9 = vld [vmem:[%s9586_s25] sm:$0xff]  }
  0x27   :  { %6954 = vmatprep.subr.bf16.mxu0 %v8004_v9 }
  0x28   :  { %6955 = vmatpush3.bf16.msra.mxu0 %v8004_v9 }
  0xe0   :  { %v6920_v11 = vpop.f32.mrb[0].mxu1 }
  0xe1   :  { %v205_v12 = vadd.f32 %v6920_v11, %v6037_v10  ;;  %v196_v13 = vpop.f32.mrb[1].mxu1  ;;  %v8001_v11 = vld [vmem:[%s9584_s27 + $0x58] sm:$0xff]  }
  0xe2   :  { %v197_v14 = vadd.f32 %v6037_v10, %v196_v13  ;;  %v6921_v15 = vpop.f32.mrb[2].mxu1  ;;  %v8003_v13 = vld [vmem:[%s9584_s27 + $0x68] sm:$0xff]  }
  0xe3   :  { %v208_v16 = vadd.f32 %v6921_v15, %v6037_v10  ;;  %v199_v17 = vpop.f32.mrb[3].mxu1  ;;  %v261_v19 = vmax.f32 %v205_v12, 0.0  ;;  %v8002_v12 = vld [vmem:[%s9584_s27 + $0x60] sm:$0xff]  }
  0xe4   :  { %v200_v18 = vadd.f32 %v6037_v10, %v199_v17  ;;  %v259_v21 = vmax.f32 %v197_v14, 0.0 }
  0xe5   :  { %v262_v20 = vmax.f32 %v208_v16, 0.0 }
  0xe6   :  { %v260_v22 = vmax.f32 %v200_v18, 0.0 }
  0xe7   :  { %v8364_v23 = vpack.c.bf16 %v262_v20, %v261_v19 }
  0xe8   :  { %v8366_v24 = vpack.c.bf16 %v260_v22, %v259_v21  ;;  %v6924_v25 = vpop.f32.mrb[4].mxu1 }
  0xe9   :  { %v221_v26 = vadd.f32 %v6924_v25, %v6037_v10  ;;  %v212_v27 = vpop.f32.mrb[5].mxu1 }
  0xea   :  { %v213_v28 = vadd.f32 %v6037_v10, %v212_v27  ;;  %v6925_v29 = vpop.f32.mrb[6].mxu1  ;;  %6934 = vmatprep.subr.bf16.mxu1 %v8366_v24 }
  0xeb   :  { %v224_v30 = vadd.f32 %v6925_v29, %v6037_v10  ;;  %v215_v31 = vpop.f32.mrb[7].mxu1  ;;  %6935 = vmatpush3.bf16.msra.mxu1 %v8366_v24  ;;  %v265_v33 = vmax.f32 %v221_v26, 0.0  ;;  %v8007_v29 = vld [vmem:[%s9584_s27 + $0x28] sm:$0xff]  }
  0xec   :  { %v216_v32 = vadd.f32 %v6037_v10, %v215_v31  ;;  %6936 = vmatprep.subr.bf16.mxu1 %v8364_v23  ;;  %v263_v35 = vmax.f32 %v213_v28, 0.0  ;;  %v8006_v28 = vld [vmem:[%s9584_s27 + $0x20] sm:$0xff]   ;;  %v8009_v31 = vld [vmem:[%s9586_s25 + $0x18] sm:$0xff]  }
  0xed   :  { %v266_v34 = vmax.f32 %v224_v30, 0.0  ;;  %v8008_v30 = vld [vmem:[%s9586_s25 + $0x10] sm:$0xff]  }
  0xee   :  { %v264_v36 = vmax.f32 %v216_v32, 0.0 }
  0xef   :  { %v8371_v37 = vpack.c.bf16 %v266_v34, %v265_v33  ;;  %6937 = vmatpush3.bf16.msra.mxu1 %v8364_v23 }
  0xf0   :  { %v8374_v38 = vpack.c.bf16 %v264_v36, %v263_v35  ;;  %v6928_v39 = vpop.f32.mrb[8].mxu1 }
  0xf1   :  { %v237_v40 = vadd.f32 %v6928_v39, %v6037_v10  ;;  %v228_v41 = vpop.f32.mrb[9].mxu1 }
  0xf2   :  { %v229_v42 = vadd.f32 %v6037_v10, %v228_v41  ;;  %v6929_v43 = vpop.f32.mrb[10].mxu1  ;;  %6938 = vmatprep.subr.bf16.mxu1 %v8374_v38 }
  0xf3   :  { %v240_v44 = vadd.f32 %v6929_v43, %v6037_v10  ;;  %v231_v45 = vpop.f32.mrb[11].mxu1  ;;  %6939 = vmatpush3.bf16.msra.mxu1 %v8374_v38  ;;  %v269_v47 = vmax.f32 %v237_v40, 0.0 }
  0xf4   :  { %v232_v46 = vadd.f32 %v6037_v10, %v231_v45  ;;  %6940 = vmatprep.subr.bf16.mxu1 %v8371_v37  ;;  %v267_v49 = vmax.f32 %v229_v42, 0.0 }
  0xf5   :  { %v270_v48 = vmax.f32 %v240_v44, 0.0 }
  0xf6   :  { %v268_v50 = vmax.f32 %v232_v46, 0.0 }
  0xf7   :  { %v8379_v51 = vpack.c.bf16 %v270_v48, %v269_v47  ;;  %6941 = vmatpush3.bf16.msra.mxu1 %v8371_v37 }
  0xf8   :  { %v8382_v52 = vpack.c.bf16 %v268_v50, %v267_v49  ;;  %v6932_v53 = vpop.f32.mrb[12].mxu1 }
  0xf9   :  { %v253_v54 = vadd.f32 %v6932_v53, %v6037_v10  ;;  %v244_v55 = vpop.f32.mrb[13].mxu1 }
  0xfa   :  { %v245_v56 = vadd.f32 %v6037_v10, %v244_v55  ;;  %v6933_v57 = vpop.f32.mrb[14].mxu1  ;;  %6942 = vmatprep.subr.bf16.mxu1 %v8382_v52  ;;  %v8011_v55 = vld [vmem:[%s9584_s27 + $0x48] sm:$0xff]  }
  0xfb   :  { %v256_v58 = vadd.f32 %v6933_v57, %v6037_v10  ;;  %v247_v59 = vpop.f32.mrb[15].mxu1  ;;  %6943 = vmatpush3.bf16.msra.mxu1 %v8382_v52  ;;  %v273_v61 = vmax.f32 %v253_v54, 0.0  ;;  %v8010_v54 = vld [vmem:[%s9584_s27 + $0x40] sm:$0xff]   ;;  %v8013_v57 = vld [vmem:[%s9586_s25 + $0x28] sm:$0xff]  }
  0xfc   :  { %v248_v60 = vadd.f32 %v6037_v10, %v247_v59  ;;  %6944 = vmatprep.subr.bf16.mxu1 %v8379_v51  ;;  %v271_v63 = vmax.f32 %v245_v56, 0.0  ;;  %v8005_v10 = vld [vmem:[%s9586_s25 + $0x8] sm:$0xff]   ;;  %v8012_v56 = vld [vmem:[%s9586_s25 + $0x20] sm:$0xff]  }
  0xfd   :  { %v274_v62 = vmax.f32 %v256_v58, 0.0  ;;  %6980 = vmatprep.subr.bf16.mxu0 %v8005_v10 }
  0xfe   :  { %v272_v0 = vmax.f32 %v248_v60, 0.0 }
  0xff   :  { %v8387_v1 = vpack.c.bf16 %v274_v62, %v273_v61  ;;  %6945 = vmatpush3.bf16.msra.mxu1 %v8379_v51 }
 0x100   :  { %v8390_v2 = vpack.c.bf16 %v272_v0, %v271_v63  ;;  %v8017_v0 = vld [vmem:[%s9584_s27 + $0x80] sm:$0xff]  }
 0x102   :  { %6946 = vmatprep.subr.bf16.mxu1 %v8390_v2 }
 0x103   :  { %6947 = vmatpush3.bf16.msra.mxu1 %v8390_v2 }
 0x104   :  { %6948 = vmatprep.subr.bf16.mxu1 %v8387_v1 }
 0x107   :  { %6949 = vmatpush3.bf16.msra.mxu1 %v8387_v1 }
 0x108   :  { %6960 = vmatprep.subr.bf16.mxu1 %v8366_v24 }
 0x10a   :  { %6951 = vmatmul.mubr.bf16.vlgmr.msra.gmra.mrb[16].mxu1 %v7995_v3  ;;  %v8018_v3 = vld [vmem:[%s9584_s27 + $0x88] sm:$0xff]  }
 0x10b   :  { %6961 = vmatpush3.bf16.msra.mxu1 %v8366_v24  ;;  %6976 = vmatprep.mubr.bf16.mxu1 %v7996_v4 }
 0x10c   :  { %6962 = vmatprep.subr.bf16.mxu1 %v8364_v23 }
 0x10f   :  { %6963 = vmatpush3.bf16.msra.mxu1 %v8364_v23 }
 0x110   :  { %6964 = vmatprep.subr.bf16.mxu1 %v8374_v38 }
 0x113   :  { %6965 = vmatpush3.bf16.msra.mxu1 %v8374_v38 }
 0x114   :  { %6966 = vmatprep.subr.bf16.mxu1 %v8371_v37 }
 0x117   :  { %6967 = vmatpush3.bf16.msra.mxu1 %v8371_v37 }
 0x118   :  { %6968 = vmatprep.subr.bf16.mxu1 %v8382_v52 }
 0x11b   :  { %6969 = vmatpush3.bf16.msra.mxu1 %v8382_v52 }
 0x11c   :  { %6970 = vmatprep.subr.bf16.mxu1 %v8379_v51 }
 0x11f   :  { %6971 = vmatpush3.bf16.msra.mxu1 %v8379_v51 }
 0x120   :  { %6972 = vmatprep.subr.bf16.mxu1 %v8390_v2 }
 0x123   :  { %6973 = vmatpush3.bf16.msra.mxu1 %v8390_v2 }
 0x124   :  { %6974 = vmatprep.subr.bf16.mxu1 %v8387_v1 }
 0x127   :  { %6975 = vmatpush3.bf16.msra.mxu1 %v8387_v1 }
 0x128   :  { %7012 = vmatprep.subr.bf16.mxu1 %v8366_v24 }
 0x12a   :  { %6977 = vmatmul.mubr.bf16.vlgmr.msra.gmra.mrb[20].mxu1 %v7997_v5 }
 0x12b   :  { %7013 = vmatpush3.bf16.msra.mxu1 %v8366_v24  ;;  %7028 = vmatprep.mubr.bf16.mxu1 %v7998_v6 }
 0x12c   :  { %7014 = vmatprep.subr.bf16.mxu1 %v8364_v23 }
 0x12f   :  { %7015 = vmatpush3.bf16.msra.mxu1 %v8364_v23 }
 0x130   :  { %7016 = vmatprep.subr.bf16.mxu1 %v8374_v38 }
 0x133   :  { %7017 = vmatpush3.bf16.msra.mxu1 %v8374_v38 }
 0x134   :  { %7018 = vmatprep.subr.bf16.mxu1 %v8371_v37 }
 0x137   :  { %7019 = vmatpush3.bf16.msra.mxu1 %v8371_v37 }
 0x138   :  { %7020 = vmatprep.subr.bf16.mxu1 %v8382_v52 }
 0x13b   :  { %7021 = vmatpush3.bf16.msra.mxu1 %v8382_v52 }
 0x13c   :  { %7022 = vmatprep.subr.bf16.mxu1 %v8379_v51 }
 0x13f   :  { %7023 = vmatpush3.bf16.msra.mxu1 %v8379_v51 }
 0x140   :  { %7024 = vmatprep.subr.bf16.mxu1 %v8390_v2 }
 0x143   :  { %7025 = vmatpush3.bf16.msra.mxu1 %v8390_v2 }
 0x144   :  { %7026 = vmatprep.subr.bf16.mxu1 %v8387_v1 }
 0x147   :  { %7027 = vmatpush3.bf16.msra.mxu1 %v8387_v1 }
 0x148   :  { %7064 = vmatprep.subr.bf16.mxu1 %v8366_v24 }
 0x14a   :  { %7029 = vmatmul.mubr.bf16.vlgmr.msra.gmra.mrb[24].mxu1 %v7999_v7 }
 0x14b   :  { %7065 = vmatpush3.bf16.msra.mxu1 %v8366_v24  ;;  %7080 = vmatprep.mubr.bf16.mxu1 %v8000_v8 }
 0x14c   :  { %7066 = vmatprep.subr.bf16.mxu1 %v8364_v23 }
 0x14f   :  { %7067 = vmatpush3.bf16.msra.mxu1 %v8364_v23 }
 0x150   :  { %7068 = vmatprep.subr.bf16.mxu1 %v8374_v38 }
 0x153   :  { %7069 = vmatpush3.bf16.msra.mxu1 %v8374_v38 }
 0x154   :  { %7070 = vmatprep.subr.bf16.mxu1 %v8371_v37 }
 0x157   :  { %7071 = vmatpush3.bf16.msra.mxu1 %v8371_v37 }
 0x158   :  { %7072 = vmatprep.subr.bf16.mxu1 %v8382_v52 }
 0x15b   :  { %7073 = vmatpush3.bf16.msra.mxu1 %v8382_v52 }
 0x15c   :  { %7074 = vmatprep.subr.bf16.mxu1 %v8379_v51 }
 0x15f   :  { %7075 = vmatpush3.bf16.msra.mxu1 %v8379_v51 }
 0x160   :  { %7076 = vmatprep.subr.bf16.mxu1 %v8390_v2 }
 0x163   :  { %7077 = vmatpush3.bf16.msra.mxu1 %v8390_v2 }
 0x164   :  { %7078 = vmatprep.subr.bf16.mxu1 %v8387_v1 }
 0x167   :  { %7079 = vmatpush3.bf16.msra.mxu1 %v8387_v1 }
 0x168   :  { %7090 = vmatprep.subr.bf16.mxu1 %v8366_v24 }
 0x16a   :  { %7081 = vmatmul.mubr.bf16.vlgmr.msra.gmra.mrb[28].mxu1 %v8001_v11  ;;  %v8015_v11 = vld [vmem:[%s9584_s27 + $0x70] sm:$0xff]  }
 0x16b   :  { %7091 = vmatpush3.bf16.msra.mxu1 %v8366_v24  ;;  %7106 = vmatprep.mubr.bf16.mxu1 %v8002_v12 }
 0x16c   :  { %7092 = vmatprep.subr.bf16.mxu1 %v8364_v23 }
 0x16f   :  { %7093 = vmatpush3.bf16.msra.mxu1 %v8364_v23 }
 0x170   :  { %7094 = vmatprep.subr.bf16.mxu1 %v8374_v38 }
 0x173   :  { %7095 = vmatpush3.bf16.msra.mxu1 %v8374_v38 }
 0x174   :  { %7096 = vmatprep.subr.bf16.mxu1 %v8371_v37 }
 0x177   :  { %7097 = vmatpush3.bf16.msra.mxu1 %v8371_v37 }
 0x178   :  { %7098 = vmatprep.subr.bf16.mxu1 %v8382_v52 }
 0x17b   :  { %7099 = vmatpush3.bf16.msra.mxu1 %v8382_v52 }
 0x17c   :  { %7100 = vmatprep.subr.bf16.mxu1 %v8379_v51 }
 0x17f   :  { %7101 = vmatpush3.bf16.msra.mxu1 %v8379_v51 }
 0x180   :  { %7102 = vmatprep.subr.bf16.mxu1 %v8390_v2 }
 0x183   :  { %7103 = vmatpush3.bf16.msra.mxu1 %v8390_v2 }
 0x184   :  { %7104 = vmatprep.subr.bf16.mxu1 %v8387_v1 }
 0x187   :  { %7105 = vmatpush3.bf16.msra.mxu1 %v8387_v1 }
 0x188   :  { %7142 = vmatprep.subr.bf16.mxu1 %v8366_v24 }
 0x18a   :  { %7107 = vmatmul.mubr.bf16.vlgmr.msra.gmra.mrb[32].mxu1 %v8003_v13 }
 0x18b   :  { %7143 = vmatpush3.bf16.msra.mxu1 %v8366_v24  ;;  %7158 = vmatprep.mubr.bf16.mxu1 %v8017_v0  ;;  %v8025_v0 = vld [vmem:[%s9558_s7 + $0x20] sm:$0xff]  }
 0x18c   :  { %7144 = vmatprep.subr.bf16.mxu1 %v8364_v23 }
 0x18f   :  { %7145 = vmatpush3.bf16.msra.mxu1 %v8364_v23 }
 0x190   :  { %7146 = vmatprep.subr.bf16.mxu1 %v8374_v38 }
 0x193   :  { %7147 = vmatpush3.bf16.msra.mxu1 %v8374_v38 }
 0x194   :  { %7148 = vmatprep.subr.bf16.mxu1 %v8371_v37 }
 0x197   :  { %7149 = vmatpush3.bf16.msra.mxu1 %v8371_v37 }
 0x198   :  { %7150 = vmatprep.subr.bf16.mxu1 %v8382_v52 }
 0x19b   :  { %7151 = vmatpush3.bf16.msra.mxu1 %v8382_v52 }
 0x19c   :  { %7152 = vmatprep.subr.bf16.mxu1 %v8379_v51 }
 0x19f   :  { %7153 = vmatpush3.bf16.msra.mxu1 %v8379_v51 }
 0x1a0   :  { %7154 = vmatprep.subr.bf16.mxu1 %v8390_v2 }
 0x1a3   :  { %7155 = vmatpush3.bf16.msra.mxu1 %v8390_v2 }
 0x1a4   :  { %7156 = vmatprep.subr.bf16.mxu1 %v8387_v1 }
 0x1a7   :  { %7157 = vmatpush3.bf16.msra.mxu1 %v8387_v1 }
 0x1aa   :  { %7159 = vmatmul.mubr.bf16.vlgmr.msra.gmra.mrb[36].mxu1 %v8018_v3 }
 0x1dd   :  { %v6952_v14 = vpop.f32.mrb[16].mxu1 }
 0x1de   :  { %v334_v15 = vpop.f32.mrb[17].mxu1 }
 0x1df   :  { %v6953_v16 = vpop.f32.mrb[18].mxu1 }
 0x1e0   :  { %v350_v17 = vpack.c.bf16 %v6953_v16, %v6952_v14  ;;  %v337_v18 = vpop.f32.mrb[19].mxu1 }
 0x1e1   :  { %v349_v19 = vpack.c.bf16 %v337_v18, %v334_v15 }
 0x1e3   :  { %6956 = vmatprep.mubr.msk.bf16.mxu0 %vm137_vm0, %v349_v19  ;;  %v8211_v19 = vmov 0.0  }
 0x1e4   :  { %6957 = vmatmul.mubr.msk.bf16.vlgmr.msra.gmra.mrb[0].mxu0 %vm137_vm0, %v350_v17  ;;  %7168 = vmatprep.subr.bf16.mxu1 %v8211_v19 }
 0x1e5   :  { %6981 = vmatpush3.bf16.msra.mxu0 %v8005_v10  ;;  %v8014_v10 = vld [vmem:[%s9586_s25 + $0x30] sm:$0xff]   ;;  %7172 = vmatprep.mubr.msk.bf16.mxu1 %vm8212_vm1, %v8211_v19 }
 0x1e6   :  { %6986 = vmatprep.subr.bf16.mxu0 %v8366_v24 }
 0x1fd   :  { %v6978_v20 = vpop.f32.mrb[20].mxu1 }
 0x1fe   :  { %v475_v21 = vpop.f32.mrb[21].mxu1 }
 0x1ff   :  { %v6979_v22 = vpop.f32.mrb[22].mxu1 }
 0x200   :  { %v491_v25 = vpack.c.bf16 %v6979_v22, %v6978_v20  ;;  %v478_v26 = vpop.f32.mrb[23].mxu1  ;;  %v8021_v20 = vld [vmem:[%s9558_s7] sm:$0xff]  }
 0x201   :  { %v490_v27 = vpack.c.bf16 %v478_v26, %v475_v21  ;;  %v6060_v21 = vld [vmem:[%s9559_s5] ss:$0 sm:$0xff] }
 0x203   :  { %6982 = vmatprep.mubr.msk.bf16.mxu0 %vm137_vm0, %v490_v27 }
 0x204   :  { %6983 = vmatmul.mubr.msk.bf16.vlgmr.msra.gmra.mrb[0].mxu0 %vm137_vm0, %v491_v25 }
 0x205   :  { %6987 = vmatpush3.bf16.msra.mxu0 %v8366_v24  ;;  %7002 = vmatprep.mubr.bf16.mxu0 %v8006_v28 }
 0x206   :  { %6988 = vmatprep.subr.bf16.mxu0 %v8364_v23 }
 0x209   :  { %6989 = vmatpush3.bf16.msra.mxu0 %v8364_v23 }
 0x20a   :  { %6990 = vmatprep.subr.bf16.mxu0 %v8374_v38 }
 0x20d   :  { %6991 = vmatpush3.bf16.msra.mxu0 %v8374_v38 }
 0x20e   :  { %6992 = vmatprep.subr.bf16.mxu0 %v8371_v37 }
 0x211   :  { %6993 = vmatpush3.bf16.msra.mxu0 %v8371_v37 }
 0x212   :  { %6994 = vmatprep.subr.bf16.mxu0 %v8382_v52 }
 0x215   :  { %6995 = vmatpush3.bf16.msra.mxu0 %v8382_v52 }
 0x216   :  { %6996 = vmatprep.subr.bf16.mxu0 %v8379_v51 }
 0x219   :  { %6997 = vmatpush3.bf16.msra.mxu0 %v8379_v51 }
 0x21a   :  { %6998 = vmatprep.subr.bf16.mxu0 %v8390_v2 }
 0x21d   :  { %6999 = vmatpush3.bf16.msra.mxu0 %v8390_v2  ;;  %v7030_v32 = vpop.f32.mrb[24].mxu1 }
 0x21e   :  { %7000 = vmatprep.subr.bf16.mxu0 %v8387_v1  ;;  %v745_v33 = vpop.f32.mrb[25].mxu1 }
 0x21f   :  { %v7031_v34 = vpop.f32.mrb[26].mxu1 }
 0x220   :  { %v761_v35 = vpack.c.bf16 %v7031_v34, %v7030_v32  ;;  %v748_v36 = vpop.f32.mrb[27].mxu1 }
 0x221   :  { %7001 = vmatpush3.bf16.msra.mxu0 %v8387_v1  ;;  %v760_v39 = vpack.c.bf16 %v748_v36, %v745_v33 }
 0x222   :  { %7006 = vmatprep.subr.bf16.mxu0 %v8008_v30 }
 0x224   :  { %7003 = vmatmul.mubr.bf16.vlgmr.msra.gmra.mrb[4].mxu0 %v8007_v29 }
 0x225   :  { %7007 = vmatpush3.bf16.msra.mxu0 %v8008_v30 }
 0x226   :  { %7032 = vmatprep.subr.bf16.mxu0 %v8009_v31 }
 0x23d   :  { %v8541_v40 = vpop.f32.mrb[28].mxu1 }
 0x23e   :  { %v1015_v41 = vpop.f32.mrb[29].mxu1 }
 0x23f   :  { %v8543_v42 = vpop.f32.mrb[30].mxu1 }
 0x240   :  { %v1031_v43 = vpack.c.bf16 %v8543_v42, %v8541_v40  ;;  %v1018_v44 = vpop.f32.mrb[31].mxu1  ;;  %v1511_v40 = vld [vmem:[%s9560_s6] sm:$0xf]  ;;  %v6143_v42 = vld [vmem:[%s9560_s6 + $0x8] sm:$0xf] }
 0x241   :  { %v1030_v45 = vpack.c.bf16 %v1018_v44, %v1015_v41  ;;  %v6138_v41 = vld [vmem:[%s9560_s6 + $0x4] sm:$0xf]  ;;  %v6153_v44 = vld [vmem:[%s9560_s6 + $0x10] sm:$0xf] }
 0x25d   :  { %v7108_v58 = vpop.f32.mrb[32].mxu1 }
 0x25e   :  { %v1150_v59 = vpop.f32.mrb[33].mxu1 }
 0x25f   :  { %v7109_v60 = vpop.f32.mrb[34].mxu1 }
 0x260   :  { %v1166_v61 = vpack.c.bf16 %v7109_v60, %v7108_v58  ;;  %v1153_v62 = vpop.f32.mrb[35].mxu1  ;;  %v8024_v58 = vld [vmem:[%s9558_s7 + $0x18] sm:$0xff]  }
 0x261   :  { %v1165_v63 = vpack.c.bf16 %v1153_v62, %v1150_v59 }
 0x2f7   :  { %v7004_v46 = vpop.f32.mrb[4].mxu0 }
 0x2f8   :  { %v610_v47 = vpop.f32.mrb[5].mxu0 }
 0x2f9   :  { %v7005_v48 = vpop.f32.mrb[6].mxu0 }
 0x2fa   :  { %v626_v49 = vpack.c.bf16 %v7005_v48, %v7004_v46  ;;  %v613_v50 = vpop.f32.mrb[7].mxu0  ;;  %v6163_v46 = vld [vmem:[%s9560_s6 + $0x18] sm:$0xf]  ;;  %v6173_v48 = vld [vmem:[%s9560_s6 + $0x20] sm:$0xf] }
 0x2fb   :  { %v625_v53 = vpack.c.bf16 %v613_v50, %v610_v47  ;;  %v6168_v47 = vld [vmem:[%s9560_s6 + $0x1c] sm:$0xf] }
 0x2fd   :  { %7008 = vmatprep.mubr.msk.bf16.mxu0 %vm137_vm0, %v625_v53  ;;  %v8023_v53 = vld [vmem:[%s9558_s7 + $0x10] sm:$0xff]  }
 0x2fe   :  { %7009 = vmatmul.mubr.msk.bf16.vlgmr.msra.gmra.mrb[0].mxu0 %vm137_vm0, %v626_v49  ;;  %v8022_v49 = vld [vmem:[%s9558_s7 + $0x8] sm:$0xff]  }
 0x2ff   :  { %7033 = vmatpush3.bf16.msra.mxu0 %v8009_v31  ;;  %7034 = vmatprep.mubr.msk.bf16.mxu0 %vm137_vm0, %v760_v39 }
 0x300   :  { %7038 = vmatprep.subr.bf16.mxu0 %v8366_v24 }
 0x30a   :  { %7035 = vmatmul.mubr.msk.bf16.vlgmr.msra.gmra.mrb[0].mxu0 %vm137_vm0, %v761_v35 }
 0x30b   :  { %7039 = vmatpush3.bf16.msra.mxu0 %v8366_v24  ;;  %7054 = vmatprep.mubr.bf16.mxu0 %v8010_v54 }
 0x30c   :  { %7040 = vmatprep.subr.bf16.mxu0 %v8364_v23 }
 0x30f   :  { %7041 = vmatpush3.bf16.msra.mxu0 %v8364_v23 }
 0x310   :  { %7042 = vmatprep.subr.bf16.mxu0 %v8374_v38 }
 0x313   :  { %7043 = vmatpush3.bf16.msra.mxu0 %v8374_v38 }
 0x314   :  { %7044 = vmatprep.subr.bf16.mxu0 %v8371_v37 }
 0x317   :  { %7045 = vmatpush3.bf16.msra.mxu0 %v8371_v37 }
 0x318   :  { %7046 = vmatprep.subr.bf16.mxu0 %v8382_v52 }
 0x31b   :  { %7047 = vmatpush3.bf16.msra.mxu0 %v8382_v52 }
 0x31c   :  { %7048 = vmatprep.subr.bf16.mxu0 %v8379_v51 }
 0x31f   :  { %7049 = vmatpush3.bf16.msra.mxu0 %v8379_v51 }
 0x320   :  { %7050 = vmatprep.subr.bf16.mxu0 %v8390_v2 }
 0x323   :  { %7051 = vmatpush3.bf16.msra.mxu0 %v8390_v2 }
 0x324   :  { %7052 = vmatprep.subr.bf16.mxu0 %v8387_v1 }
 0x327   :  { %7053 = vmatpush3.bf16.msra.mxu0 %v8387_v1 }
 0x328   :  { %7058 = vmatprep.subr.bf16.mxu0 %v8012_v56 }
 0x32a   :  { %7055 = vmatmul.mubr.bf16.vlgmr.msra.gmra.mrb[8].mxu0 %v8011_v55 }
 0x32b   :  { %7059 = vmatpush3.bf16.msra.mxu0 %v8012_v56 }
 0x32c   :  { %7084 = vmatprep.subr.bf16.mxu0 %v8013_v57 }
 0x3fd   :  { %v7056_v4 = vpop.f32.mrb[8].mxu0 }
 0x3fe   :  { %v880_v5 = vpop.f32.mrb[9].mxu0 }
 0x3ff   :  { %v7057_v6 = vpop.f32.mrb[10].mxu0 }
 0x400   :  { %v896_v7 = vpack.c.bf16 %v7057_v6, %v7056_v4  ;;  %v883_v8 = vpop.f32.mrb[11].mxu0  ;;  %v8026_v4 = vld [vmem:[%s9558_s7 + $0x28] sm:$0xff]  }
 0x401   :  { %v895_v9 = vpack.c.bf16 %v883_v8, %v880_v5 }
 0x403   :  { %7060 = vmatprep.mubr.msk.bf16.mxu0 %vm137_vm0, %v895_v9  ;;  %v8027_v9 = vld [vmem:[%s9558_s7 + $0x30] sm:$0xff]  }
 0x404   :  { %7061 = vmatmul.mubr.msk.bf16.vlgmr.msra.gmra.mrb[0].mxu0 %vm137_vm0, %v896_v7 }
 0x405   :  { %7086 = vmatprep.mubr.msk.bf16.mxu0 %vm137_vm0, %v1030_v45  ;;  %7085 = vmatpush3.bf16.msra.mxu0 %v8013_v57  ;;  %v6158_v45 = vld [vmem:[%s9560_s6 + $0x14] sm:$0xf] }
 0x406   :  { %7110 = vmatprep.subr.bf16.mxu0 %v8014_v10 }
 0x410   :  { %7087 = vmatmul.mubr.msk.bf16.vlgmr.msra.gmra.mrb[0].mxu0 %vm137_vm0, %v1031_v43  ;;  %v6148_v43 = vld [vmem:[%s9560_s6 + $0xc] sm:$0xf] }
 0x411   :  { %7111 = vmatpush3.bf16.msra.mxu0 %v8014_v10  ;;  %7112 = vmatprep.mubr.msk.bf16.mxu0 %vm137_vm0, %v1165_v63 }
 0x412   :  { %7116 = vmatprep.subr.bf16.mxu0 %v8366_v24 }
 0x41c   :  { %7113 = vmatmul.mubr.msk.bf16.vlgmr.msra.gmra.mrb[0].mxu0 %vm137_vm0, %v1166_v61 }
 0x41d   :  { %7117 = vmatpush3.bf16.msra.mxu0 %v8366_v24  ;;  %7132 = vmatprep.mubr.bf16.mxu0 %v8015_v11  ;;  %v8019_v24 = vld [vmem:[%s9586_s25 + $0x38] sm:$0xff]  }
 0x41e   :  { %7118 = vmatprep.subr.bf16.mxu0 %v8364_v23 }
 0x421   :  { %7119 = vmatpush3.bf16.msra.mxu0 %v8364_v23  ;;  %v8016_v23 = vld [vmem:[%s9584_s27 + $0x78] sm:$0xff]  }
 0x422   :  { %7120 = vmatprep.subr.bf16.mxu0 %v8374_v38 }
 0x425   :  { %7121 = vmatpush3.bf16.msra.mxu0 %v8374_v38  ;;  %v8020_v38 = vld [vmem:[%s9586_s25 + $0x40] sm:$0xff]  }
 0x426   :  { %7122 = vmatprep.subr.bf16.mxu0 %v8371_v37 }
 0x429   :  { %7123 = vmatpush3.bf16.msra.mxu0 %v8371_v37  ;;  %v7160_v37 = vpop.f32.mrb[36].mxu1 }
 0x42a   :  { %7124 = vmatprep.subr.bf16.mxu0 %v8382_v52 }
 0x42d   :  { %7125 = vmatpush3.bf16.msra.mxu0 %v8382_v52 }
 0x42e   :  { %7126 = vmatprep.subr.bf16.mxu0 %v8379_v51 }
 0x431   :  { %7127 = vmatpush3.bf16.msra.mxu0 %v8379_v51  ;;  %v1420_v51 = vpop.f32.mrb[37].mxu1 }
 0x432   :  { %7128 = vmatprep.subr.bf16.mxu0 %v8390_v2  ;;  %v7161_v52 = vpop.f32.mrb[38].mxu1 }
 0x433   :  { %v1423_v12 = vpop.f32.mrb[39].mxu1 }
 0x434   :  { %v1435_v13 = vpack.c.bf16 %v1423_v12, %v1420_v51 }
 0x435   :  { %7129 = vmatpush3.bf16.msra.mxu0 %v8390_v2  ;;  %v1436_v2 = vpack.c.bf16 %v7161_v52, %v7160_v37  ;;  %v8028_v37 = vld [vmem:[%s9558_s7 + $0x38] sm:$0xff]  }
 0x436   :  { %7130 = vmatprep.subr.bf16.mxu0 %v8387_v1 }
 0x439   :  { %7131 = vmatpush3.bf16.msra.mxu0 %v8387_v1 }
 0x43a   :  { %7136 = vmatprep.subr.bf16.mxu0 %v8019_v24 }
 0x43c   :  { %7133 = vmatmul.mubr.bf16.vlgmr.msra.gmra.mrb[12].mxu0 %v8016_v23 }
 0x43d   :  { %7137 = vmatpush3.bf16.msra.mxu0 %v8019_v24 }
 0x43e   :  { %7162 = vmatprep.subr.bf16.mxu0 %v8020_v38 }
 0x50f   :  { %v7134_v14 = vpop.f32.mrb[12].mxu0 }
 0x510   :  { %v1285_v1 = vpop.f32.mrb[13].mxu0 }
 0x511   :  { %v7135_v15 = vpop.f32.mrb[14].mxu0 }
 0x512   :  { %v1301_v16 = vpack.c.bf16 %v7135_v15, %v7134_v14  ;;  %v1288_v17 = vpop.f32.mrb[15].mxu0  ;;  %v8030_v14 = vld [vmem:[%s9558_s7 + $0x48] sm:$0xff]  }
 0x513   :  { %v1300_v18 = vpack.c.bf16 %v1288_v17, %v1285_v1 }
 0x515   :  { %7138 = vmatprep.mubr.msk.bf16.mxu0 %vm137_vm0, %v1300_v18 }
 0x516   :  { %7139 = vmatmul.mubr.msk.bf16.vlgmr.msra.gmra.mrb[0].mxu0 %vm137_vm0, %v1301_v16 }
 0x517   :  { %7163 = vmatpush3.bf16.msra.mxu0 %v8020_v38  ;;  %7164 = vmatprep.mubr.msk.bf16.mxu0 %vm137_vm0, %v1435_v13  ;;  %v8029_v13 = vld [vmem:[%s9558_s7 + $0x40] sm:$0xff]  }
 0x518   :  { %7176 = vmatprep.subr.bf16.mxu0 %v8211_v19 }
 0x522   :  { %7165 = vmatmul.mubr.msk.bf16.vlgmr.msra.gmra.mrb[0].mxu0 %vm137_vm0, %v1436_v2 }
 0x523   :  { %7180 = vmatprep.mubr.msk.bf16.mxu0 %vm8212_vm1, %v8211_v19  ;;  %7177 = vmatpush3.bf16.msra.mxu0 %v8021_v20  ;;  %v8031_v20 = vld [vmem:[%s9558_s7 + $0x50] sm:$0xff]  }
 0x524   :  { %7178 = vmatprep.subr.bf16.mxu0 %v8211_v19 }
 0x527   :  { %7179 = vmatpush3.bf16.msra.mxu0 %v8022_v49  ;;  %v8040_v49 = vld [vmem:[%s9561_s10 + $0x8] sm:$0xff]  }
 0x528   :  { %7192 = vmatprep.subr.bf16.mxu0 %v8211_v19 }
 0x5f5   :  { %v7166_v22 = vpop.f32.mrb[0].mxu0 }
 0x5f6   :  { %v7752_v25 = vadd.f32 %v7166_v22, %v6060_v21  ;;  %v1485_v26 = vpop.f32.mrb[1].mxu0 }
 0x5f7   :  { %v7753_v27 = vadd.f32 %v6060_v21, %v1485_v26  ;;  %v7167_v28 = vpop.f32.mrb[2].mxu0 }
 0x5f8   :  { %v7754_v29 = vadd.f32 %v7167_v28, %v6060_v21  ;;  %v1488_v30 = vpop.f32.mrb[3].mxu0  ;;  %v1506_v32 = vmax.f32 %v7752_v25, 0.0 }
 0x5f9   :  { %v7755_v31 = vadd.f32 %v6060_v21, %v1488_v30  ;;  %v1504_v34 = vmax.f32 %v7753_v27, 0.0  ;;  %v8032_v27 = vld [vmem:[%s9558_s7 + $0x58] sm:$0xff]  }
 0x5fa   :  { %v1507_v33 = vmax.f32 %v7754_v29, 0.0 }
 0x5fb   :  { %v1505_v35 = vmax.f32 %v7755_v31, 0.0 }
 0x5fc   :  { %v1509_v36 = vpack.c.bf16 %v1507_v33, %v1506_v32  ;;  %v8033_v33 = vld [vmem:[%s9558_s7 + $0x60] sm:$0xff]  }
 0x5fd   :  { %v1508_v39 = vpack.c.bf16 %v1505_v35, %v1504_v34  ;;  %v8034_v34 = vld [vmem:[%s9558_s7 + $0x68] sm:$0xff]  }
 0x5ff   :  { %7169 = vmatpush3.bf16.msra.mxu1 %v1508_v39 }
 0x600   :  { %7170 = vmatprep.subr.bf16.mxu1 %v8211_v19 }
 0x603   :  { %7171 = vmatpush3.bf16.msra.mxu1 %v1509_v36 }
 0x604   :  { %7184 = vmatprep.subr.bf16.mxu1 %v8211_v19 }
 0x606   :  { %7173 = vmatmul.mubr.msk.bf16.vlgmr.msra.gmra.mrb[40].mxu1 %vm1512_vm2, %v1511_v40 }
 0x607   :  { %7185 = vmatpush3.bf16.msra.mxu1 %v1508_v39  ;;  %7188 = vmatprep.mubr.msk.bf16.mxu1 %vm8212_vm1, %v8211_v19 }
 0x608   :  { %7186 = vmatprep.subr.bf16.mxu1 %v8211_v19 }
 0x60b   :  { %7187 = vmatpush3.bf16.msra.mxu1 %v1509_v36 }
 0x60c   :  { %7200 = vmatprep.subr.bf16.mxu1 %v8211_v19 }
 0x60e   :  { %7189 = vmatmul.mubr.msk.bf16.vlgmr.msra.gmra.mrb[44].mxu1 %vm1512_vm2, %v6138_v41 }
 0x60f   :  { %7201 = vmatpush3.bf16.msra.mxu1 %v1508_v39  ;;  %7204 = vmatprep.mubr.msk.bf16.mxu1 %vm8212_vm1, %v8211_v19 }
 0x610   :  { %7202 = vmatprep.subr.bf16.mxu1 %v8211_v19 }
 0x613   :  { %7203 = vmatpush3.bf16.msra.mxu1 %v1509_v36 }
 0x614   :  { %7216 = vmatprep.subr.bf16.mxu1 %v8211_v19 }
 0x616   :  { %7205 = vmatmul.mubr.msk.bf16.vlgmr.msra.gmra.mrb[48].mxu1 %vm1512_vm2, %v6143_v42  ;;  %v8035_v42 = vld [vmem:[%s9558_s7 + $0x70] sm:$0xff]  }
 0x617   :  { %7217 = vmatpush3.bf16.msra.mxu1 %v1508_v39  ;;  %7220 = vmatprep.mubr.msk.bf16.mxu1 %vm8212_vm1, %v8211_v19 }
 0x618   :  { %7218 = vmatprep.subr.bf16.mxu1 %v8211_v19 }
 0x61b   :  { %7219 = vmatpush3.bf16.msra.mxu1 %v1509_v36 }
 0x61c   :  { %7232 = vmatprep.subr.bf16.mxu1 %v8211_v19 }
 0x61e   :  { %7221 = vmatmul.mubr.msk.bf16.vlgmr.msra.gmra.mrb[52].mxu1 %vm1512_vm2, %v6148_v43  ;;  %v8036_v43 = vld [vmem:[%s9558_s7 + $0x78] sm:$0xff]  }
 0x61f   :  { %7233 = vmatpush3.bf16.msra.mxu1 %v1508_v39  ;;  %7236 = vmatprep.mubr.msk.bf16.mxu1 %vm8212_vm1, %v8211_v19 }
 0x620   :  { %7234 = vmatprep.subr.bf16.mxu1 %v8211_v19 }
 0x623   :  { %7235 = vmatpush3.bf16.msra.mxu1 %v1509_v36 }
 0x624   :  { %7248 = vmatprep.subr.bf16.mxu1 %v8211_v19 }
 0x626   :  { %7237 = vmatmul.mubr.msk.bf16.vlgmr.msra.gmra.mrb[56].mxu1 %vm1512_vm2, %v6153_v44 }
 0x627   :  { %7249 = vmatpush3.bf16.msra.mxu1 %v1508_v39  ;;  %7252 = vmatprep.mubr.msk.bf16.mxu1 %vm8212_vm1, %v8211_v19 }
 0x628   :  { %7250 = vmatprep.subr.bf16.mxu1 %v8211_v19 }
 0x62b   :  { %7251 = vmatpush3.bf16.msra.mxu1 %v1509_v36 }
 0x62c   :  { %7264 = vmatprep.subr.bf16.mxu1 %v8211_v19 }
 0x62e   :  { %7253 = vmatmul.mubr.msk.bf16.vlgmr.msra.gmra.mrb[60].mxu1 %vm1512_vm2, %v6158_v45  ;;  %v8037_v45 = vld [vmem:[%s9558_s7 + $0x80] sm:$0xff]  }
 0x62f   :  { %7265 = vmatpush3.bf16.msra.mxu1 %v1508_v39  ;;  %7268 = vmatprep.mubr.msk.bf16.mxu1 %vm8212_vm1, %v8211_v19 }
 0x630   :  { %7266 = vmatprep.subr.bf16.mxu1 %v8211_v19 }
 0x633   :  { %7267 = vmatpush3.bf16.msra.mxu1 %v1509_v36 }
 0x634   :  { %7280 = vmatprep.subr.bf16.mxu1 %v8211_v19 }
 0x636   :  { %7269 = vmatmul.mubr.msk.bf16.vlgmr.msra.gmra.mrb[64].mxu1 %vm1512_vm2, %v6163_v46  ;;  %v8038_v46 = vld [vmem:[%s9558_s7 + $0x88] sm:$0xff]  }
 0x637   :  { %7281 = vmatpush3.bf16.msra.mxu1 %v1508_v39  ;;  %7284 = vmatprep.mubr.msk.bf16.mxu1 %vm8212_vm1, %v8211_v19 }
 0x638   :  { %7282 = vmatprep.subr.bf16.mxu1 %v8211_v19 }
 0x63b   :  { %7283 = vmatpush3.bf16.msra.mxu1 %v1509_v36 }
 0x63c   :  { %7296 = vmatprep.subr.bf16.mxu1 %v8211_v19 }
 0x63e   :  { %7285 = vmatmul.mubr.msk.bf16.vlgmr.msra.gmra.mrb[68].mxu1 %vm1512_vm2, %v6168_v47 }
 0x63f   :  { %7297 = vmatpush3.bf16.msra.mxu1 %v1508_v39  ;;  %7300 = vmatprep.mubr.msk.bf16.mxu1 %vm8212_vm1, %v8211_v19 }
 0x640   :  { %7298 = vmatprep.subr.bf16.mxu1 %v8211_v19 }
 0x643   :  { %7299 = vmatpush3.bf16.msra.mxu1 %v1509_v36 }
 0x644   :  { %7312 = vmatprep.subr.bf16.mxu1 %v8211_v19 }
 0x646   :  { %7301 = vmatmul.mubr.msk.bf16.vlgmr.msra.gmra.mrb[72].mxu1 %vm1512_vm2, %v6173_v48  ;;  %v8039_v48 = vld [vmem:[%s9561_s10] sm:$0xff]  }
 0x647   :  { %7314 = vmatprep.mubr.msk.bf16.mxu1 %vm8212_vm1, %v8211_v19 }
 0x6d9   :  { %v1550_v50 = vpop.f32.mrb[40].mxu1 }
 0x6da   :  { %v1556_v54 = vpack.c.bf16 %v1550_v50, %v1550_v50  ;;  %v7174_v55 = vpop.f32.mrb[41].mxu1  ;;  %v8041_v50 = vld [vmem:[%s9561_s10 + $0x10] sm:$0xff]  }
 0x6db   :  { %v1553_v56 = vpop.f32.mrb[42].mxu1 }
 0x6dc   :  { %v7175_v57 = vpop.f32.mrb[43].mxu1  ;;  %7181 = vmatmul.mubr.msk.bf16.vlgmr.msra.gmra.mrb[16].mxu0 %vm1512_vm2, %v1556_v54  ;;  %v6137_v54 = vld [vmem:[%s9562_s8] ss:$0 sm:$0xff] }
 0x6dd   :  { %7193 = vmatpush3.bf16.msra.mxu0 %v8023_v53  ;;  %7196 = vmatprep.mubr.msk.bf16.mxu0 %vm8212_vm1, %v8211_v19  ;;  %v8042_v53 = vld [vmem:[%s9561_s10 + $0x18] sm:$0xff]  }
 0x6de   :  { %7194 = vmatprep.subr.bf16.mxu0 %v8211_v19 }
 0x6e1   :  { %v1662_v59 = vpop.f32.mrb[44].mxu1  ;;  %7195 = vmatpush3.bf16.msra.mxu0 %v8024_v58 }
 0x6e2   :  { %v7190_v60 = vpop.f32.mrb[45].mxu1  ;;  %7208 = vmatprep.subr.bf16.mxu0 %v8211_v19  ;;  %v1668_v62 = vpack.c.bf16 %v1662_v59, %v1662_v59 }
 0x6e3   :  { %v1665_v61 = vpop.f32.mrb[46].mxu1 }
 0x6e4   :  { %v7191_v63 = vpop.f32.mrb[47].mxu1 }
 0x6e5   :  { %v2474_v63 = vld [vmem:[%s9563_s9] sm:$0xf] }
 0x6e8   :  { %7197 = vmatmul.mubr.msk.bf16.vlgmr.msra.gmra.mrb[16].mxu0 %vm1512_vm2, %v1668_v62 }
 0x6e9   :  { %7209 = vmatpush3.bf16.msra.mxu0 %v8025_v0  ;;  %v1768_v3 = vpop.f32.mrb[48].mxu1  ;;  %7212 = vmatprep.mubr.msk.bf16.mxu0 %vm8212_vm1, %v8211_v19  ;;  %v6185_v0 = vld [vmem:[%s9563_s9 + $0x4] sm:$0xf] }
 0x6ea   :  { %v7206_v5 = vpop.f32.mrb[49].mxu1  ;;  %7210 = vmatprep.subr.bf16.mxu0 %v8211_v19  ;;  %v1774_v8 = vpack.c.bf16 %v1768_v3, %v1768_v3  ;;  %v6192_v3 = vld [vmem:[%s9563_s9 + $0x8] sm:$0xf] }
 0x6eb   :  { %v1771_v6 = vpop.f32.mrb[50].mxu1 }
 0x6ec   :  { %v7207_v7 = vpop.f32.mrb[51].mxu1  ;;  %v8043_v6 = vld [vmem:[%s9561_s10 + $0x20] sm:$0xff]  }
 0x6ed   :  { %7211 = vmatpush3.bf16.msra.mxu0 %v8026_v4  ;;  %v6199_v4 = vld [vmem:[%s9563_s9 + $0xc] sm:$0xf] }
 0x6ee   :  { %7224 = vmatprep.subr.bf16.mxu0 %v8211_v19 }
 0x6f1   :  { %v1874_v10 = vpop.f32.mrb[52].mxu1 }
 0x6f2   :  { %v7222_v11 = vpop.f32.mrb[53].mxu1  ;;  %v1880_v2 = vpack.c.bf16 %v1874_v10, %v1874_v10 }
 0x6f3   :  { %v1877_v23 = vpop.f32.mrb[54].mxu1  ;;  %v8044_v11 = vld [vmem:[%s9561_s10 + $0x28] sm:$0xff]  }
 0x6f4   :  { %7213 = vmatmul.mubr.msk.bf16.vlgmr.msra.gmra.mrb[16].mxu0 %vm1512_vm2, %v1774_v8  ;;  %v7223_v24 = vpop.f32.mrb[55].mxu1  ;;  %v8045_v23 = vld [vmem:[%s9561_s10 + $0x30] sm:$0xff]  }
 0x6f5   :  { %7225 = vmatpush3.bf16.msra.mxu0 %v8027_v9  ;;  %7228 = vmatprep.mubr.msk.bf16.mxu0 %vm8212_vm1, %v8211_v19 }
 0x6f6   :  { %7226 = vmatprep.subr.bf16.mxu0 %v8211_v19 }
 0x6f9   :  { %7227 = vmatpush3.bf16.msra.mxu0 %v8028_v37  ;;  %v1980_v38 = vpop.f32.mrb[56].mxu1 }
 0x6fa   :  { %7240 = vmatprep.subr.bf16.mxu0 %v8211_v19  ;;  %v7238_v51 = vpop.f32.mrb[57].mxu1  ;;  %v1986_v18 = vpack.c.bf16 %v1980_v38, %v1980_v38 }
 0x6fb   :  { %v1983_v52 = vpop.f32.mrb[58].mxu1 }
 0x6fc   :  { %v7239_v12 = vpop.f32.mrb[59].mxu1  ;;  %v8046_v52 = vld [vmem:[%s9561_s10 + $0x38] sm:$0xff]  }
 0x6fd   :  { %v8047_v12 = vld [vmem:[%s9561_s10 + $0x40] sm:$0xff]  }
 0x700   :  { %7229 = vmatmul.mubr.msk.bf16.vlgmr.msra.gmra.mrb[16].mxu0 %vm1512_vm2, %v1880_v2 }
 0x701   :  { %7241 = vmatpush3.bf16.msra.mxu0 %v8029_v13  ;;  %7244 = vmatprep.mubr.msk.bf16.mxu0 %vm8212_vm1, %v8211_v19  ;;  %v2086_v1 = vpop.f32.mrb[60].mxu1 }
 0x702   :  { %7242 = vmatprep.subr.bf16.mxu0 %v8211_v19  ;;  %v7254_v15 = vpop.f32.mrb[61].mxu1  ;;  %v2092_v31 = vpack.c.bf16 %v2086_v1, %v2086_v1 }
 0x703   :  { %v2089_v16 = vpop.f32.mrb[62].mxu1 }
 0x704   :  { %v7255_v17 = vpop.f32.mrb[63].mxu1  ;;  %v8048_v16 = vld [vmem:[%s9561_s10 + $0x48] sm:$0xff]  }
 0x705   :  { %7243 = vmatpush3.bf16.msra.mxu0 %v8030_v14  ;;  %v8049_v17 = vld [vmem:[%s9561_s10 + $0x50] sm:$0xff]  }
 0x706   :  { %7256 = vmatprep.subr.bf16.mxu0 %v8211_v19 }
 0x709   :  { %v2192_v21 = vpop.f32.mrb[64].mxu1 }
 0x70a   :  { %v7270_v22 = vpop.f32.mrb[65].mxu1  ;;  %v2198_v41 = vpack.c.bf16 %v2192_v21, %v2192_v21 }
 0x70b   :  { %v2195_v25 = vpop.f32.mrb[66].mxu1 }
 0x70c   :  { %7245 = vmatmul.mubr.msk.bf16.vlgmr.msra.gmra.mrb[16].mxu0 %vm1512_vm2, %v1986_v18  ;;  %v7271_v26 = vpop.f32.mrb[67].mxu1  ;;  %v8050_v25 = vld [vmem:[%s9561_s10 + $0x58] sm:$0xff]  }
 0x70d   :  { %7257 = vmatpush3.bf16.msra.mxu0 %v8031_v20  ;;  %7260 = vmatprep.mubr.msk.bf16.mxu0 %vm8212_vm1, %v8211_v19 }
 0x70e   :  { %7258 = vmatprep.subr.bf16.mxu0 %v8211_v19 }
 0x711   :  { %7259 = vmatpush3.bf16.msra.mxu0 %v8032_v27  ;;  %v2298_v28 = vpop.f32.mrb[68].mxu1  ;;  %v8051_v27 = vld [vmem:[%s9561_s10 + $0x60] sm:$0xff]  }
 0x712   :  { %7272 = vmatprep.subr.bf16.mxu0 %v8211_v19  ;;  %v7286_v29 = vpop.f32.mrb[69].mxu1  ;;  %v2304_v44 = vpack.c.bf16 %v2298_v28, %v2298_v28  ;;  %v8052_v28 = vld [vmem:[%s9561_s10 + $0x68] sm:$0xff]  }
 0x713   :  { %v2301_v30 = vpop.f32.mrb[70].mxu1  ;;  %v8053_v29 = vld [vmem:[%s9561_s10 + $0x70] sm:$0xff]  }
 0x714   :  { %v7287_v32 = vpop.f32.mrb[71].mxu1  ;;  %v8054_v30 = vld [vmem:[%s9561_s10 + $0x78] sm:$0xff]   ;;  %s8213_s10 = smov 32  }
 0x715   :  { %v8055_v32 = vld [vmem:[%s9565_s12 + $0x10] sm:$0xff]  }
 0x718   :  { %7261 = vmatmul.mubr.msk.bf16.vlgmr.msra.gmra.mrb[16].mxu0 %vm1512_vm2, %v2092_v31 }
 0x719   :  { %7273 = vmatpush3.bf16.msra.mxu0 %v8033_v33  ;;  %7276 = vmatprep.mubr.msk.bf16.mxu0 %vm8212_vm1, %v8211_v19  ;;  %v2404_v35 = vpop.f32.mrb[72].mxu1  ;;  %v6184_v33 = vld [vmem:[%s9564_s11] ss:$0 sm:$0xff] }
 0x71a   :  { %7274 = vmatprep.subr.bf16.mxu0 %v8211_v19  ;;  %v7302_v36 = vpop.f32.mrb[73].mxu1  ;;  %v2410_v47 = vpack.c.bf16 %v2404_v35, %v2404_v35 }
 0x71b   :  { %v2407_v39 = vpop.f32.mrb[74].mxu1 }
 0x71c   :  { %v7303_v40 = vpop.f32.mrb[75].mxu1 }
 0x71d   :  { %7275 = vmatpush3.bf16.msra.mxu0 %v8034_v34 }
 0x71e   :  { %7288 = vmatprep.subr.bf16.mxu0 %v8211_v19 }
 0x724   :  { %7277 = vmatmul.mubr.msk.bf16.vlgmr.msra.gmra.mrb[16].mxu0 %vm1512_vm2, %v2198_v41 }
 0x725   :  { %7289 = vmatpush3.bf16.msra.mxu0 %v8035_v42  ;;  %7292 = vmatprep.mubr.msk.bf16.mxu0 %vm8212_vm1, %v8211_v19 }
 0x726   :  { %7290 = vmatprep.subr.bf16.mxu0 %v8211_v19 }
 0x729   :  { %7291 = vmatpush3.bf16.msra.mxu0 %v8036_v43 }
 0x72a   :  { %7304 = vmatprep.subr.bf16.mxu0 %v8211_v19 }
 0x730   :  { %7293 = vmatmul.mubr.msk.bf16.vlgmr.msra.gmra.mrb[16].mxu0 %vm1512_vm2, %v2304_v44  ;;  %v8056_v44 = vld [vmem:[%s9565_s12 + $0x18] sm:$0xff]  }
 0x731   :  { %7305 = vmatpush3.bf16.msra.mxu0 %v8037_v45  ;;  %7308 = vmatprep.mubr.msk.bf16.mxu0 %vm8212_vm1, %v8211_v19  ;;  %v8057_v45 = vld [vmem:[%s9565_s12] sm:$0xff]  }
 0x732   :  { %7306 = vmatprep.subr.bf16.mxu0 %v8211_v19 }
 0x735   :  { %7307 = vmatpush3.bf16.msra.mxu0 %v8038_v46 }
 0x736   :  { %7318 = vmatprep.subr.bf16.mxu0 %v8211_v19 }
 0x73c   :  { %7309 = vmatmul.mubr.msk.bf16.vlgmr.msra.gmra.mrb[16].mxu0 %vm1512_vm2, %v2410_v47 }
 0x73d   :  { %7326 = vmatprep.mubr.msk.bf16.mxu0 %vm8212_vm1, %v8211_v19  ;;  %7319 = vmatpush3.bf16.msra.mxu0 %v8039_v48  ;;  %v8058_v48 = vld [vmem:[%s9565_s12 + $0x8] sm:$0xff]  }
 0x73e   :  { %7320 = vmatprep.subr.bf16.mxu0 %v8211_v19 }
 0x741   :  { %7321 = vmatpush3.bf16.msra.mxu0 %v8040_v49  ;;  %v8059_v49 = vld [vmem:[%s9565_s12 + $0x20] sm:$0xff]  }
 0x742   :  { %7322 = vmatprep.subr.bf16.mxu0 %v8211_v19 }
 0x745   :  { %7323 = vmatpush3.bf16.msra.mxu0 %v8041_v50 }
 0x746   :  { %7324 = vmatprep.subr.bf16.mxu0 %v8211_v19 }
 0x749   :  { %7325 = vmatpush3.bf16.msra.mxu0 %v8042_v53 }
 0x74a   :  { %7336 = vmatprep.subr.bf16.mxu0 %v8211_v19 }
 0x80f   :  { %v2464_v55 = vpop.f32.mrb[16].mxu0 }
 0x810   :  { %v7756_v56 = vadd.f32 %v6137_v54, %v2464_v55  ;;  %v7310_v57 = vpop.f32.mrb[17].mxu0  ;;  %v8060_v54 = vld [vmem:[%s9565_s12 + $0x28] sm:$0xff]   ;;  %v8061_v55 = vld [vmem:[%s9565_s12 + $0x30] sm:$0xff]  }
 0x811   :  { %v2467_v58 = vpop.f32.mrb[18].mxu0  ;;  %v8062_v57 = vld [vmem:[%s9565_s12 + $0x38] sm:$0xff]  }
 0x812   :  { %v2471_v59 = vmax.f32 %v7756_v56, 0.0  ;;  %v7311_v60 = vpop.f32.mrb[19].mxu0  ;;  %v8063_v58 = vld [vmem:[%s9566_s13] sm:$0xff]  }
 0x814   :  { %v2472_v61 = vpack.c.bf16 %v2471_v59, %v2471_v59  ;;  %v8071_v59 = vld [vmem:[%s9567_s14] sm:$0xff]  }
 0x816   :  { %v2481_v62 = vsel %vm2479_vm3, %v2472_v61, 0 }
 0x817   :  { %7313 = vmatpush3.bf16.msra.mxu1 %v2481_v62 }
 0x818   :  { %7330 = vmatprep.subr.bf16.mxu1 %v8211_v19 }
 0x81a   :  { %7315 = vmatmul.mubr.msk.bf16.vlgmr.msra.gmra.mrb[76].mxu1 %vm2475_vm4, %v2474_v63 }
 0x81b   :  { %7331 = vmatpush3.bf16.msra.mxu1 %v2481_v62  ;;  %7332 = vmatprep.mubr.msk.bf16.mxu1 %vm8212_vm1, %v8211_v19 }
 0x81c   :  { %7348 = vmatprep.subr.bf16.mxu1 %v8211_v19 }
 0x822   :  { %7333 = vmatmul.mubr.msk.bf16.vlgmr.msra.gmra.mrb[80].mxu1 %vm2475_vm4, %v6185_v0 }
 0x823   :  { %7349 = vmatpush3.bf16.msra.mxu1 %v2481_v62  ;;  %7350 = vmatprep.mubr.msk.bf16.mxu1 %vm8212_vm1, %v8211_v19 }
 0x824   :  { %7366 = vmatprep.subr.bf16.mxu1 %v8211_v19 }
 0x82a   :  { %7351 = vmatmul.mubr.msk.bf16.vlgmr.msra.gmra.mrb[84].mxu1 %vm2475_vm4, %v6192_v3 }
 0x82b   :  { %7367 = vmatpush3.bf16.msra.mxu1 %v2481_v62  ;;  %7368 = vmatprep.mubr.msk.bf16.mxu1 %vm8212_vm1, %v8211_v19 }
 0x832   :  { %7369 = vmatmul.mubr.msk.bf16.vlgmr.msra.gmra.mrb[88].mxu1 %vm2475_vm4, %v6199_v4  ;;  %v8064_v4 = vld [vmem:[%s9566_s13 + $0x8] sm:$0xff]  }
 0x833   :  { %7386 = vmatprep.mubr.msk.bf16.mxu1 %vm2475_vm4, %v8055_v32 }
 0x8ed   :  { %v2517_v5 = vpop.f32.mrb[76].mxu1 }
 0x8ee   :  { %v2523_v7 = vpack.c.bf16 %v2517_v5, %v2517_v5  ;;  %v7316_v8 = vpop.f32.mrb[77].mxu1  ;;  %v8065_v5 = vld [vmem:[%s9566_s13 + $0x10] sm:$0xff]  }
 0x8ef   :  { %v2520_v9 = vpop.f32.mrb[78].mxu1  ;;  %v8068_v8 = vld [vmem:[%s9566_s13 + $0x28] sm:$0xff]  }
 0x8f0   :  { %v7317_v10 = vpop.f32.mrb[79].mxu1  ;;  %7327 = vmatmul.mubr.msk.bf16.vlgmr.msra.gmra.mrb[20].mxu0 %vm2556_vm5, %v2523_v7  ;;  %v8067_v7 = vld [vmem:[%s9566_s13 + $0x20] sm:$0xff]   ;;  %v8069_v9 = vld [vmem:[%s9566_s13 + $0x30] sm:$0xff]  }
 0x8f1   :  { %7337 = vmatpush3.bf16.msra.mxu0 %v8043_v6  ;;  %7344 = vmatprep.mubr.msk.bf16.mxu0 %vm8212_vm1, %v8211_v19  ;;  %v8066_v6 = vld [vmem:[%s9566_s13 + $0x18] sm:$0xff]  }
 0x8f2   :  { %7338 = vmatprep.subr.bf16.mxu0 %v8211_v19  ;;  %v8070_v10 = vld [vmem:[%s9566_s13 + $0x38] sm:$0xff]  }
 0x8f5   :  { %7339 = vmatpush3.bf16.msra.mxu0 %v8044_v11  ;;  %v2646_v24 = vpop.f32.mrb[80].mxu1  ;;  %v8072_v11 = vld [vmem:[%s9567_s14 + $0x8] sm:$0xff]  }
 0x8f6   :  { %7340 = vmatprep.subr.bf16.mxu0 %v8211_v19  ;;  %v7334_v37 = vpop.f32.mrb[81].mxu1  ;;  %v2652_v2 = vpack.c.bf16 %v2646_v24, %v2646_v24 }
 0x8f7   :  { %v2649_v38 = vpop.f32.mrb[82].mxu1 }
 0x8f8   :  { %v7335_v51 = vpop.f32.mrb[83].mxu1 }
 0x8f9   :  { %7341 = vmatpush3.bf16.msra.mxu0 %v8045_v23  ;;  %v8073_v23 = vld [vmem:[%s9567_s14 + $0x10] sm:$0xff]  }
 0x8fa   :  { %7342 = vmatprep.subr.bf16.mxu0 %v8211_v19 }
 0x8fd   :  { %7343 = vmatpush3.bf16.msra.mxu0 %v8046_v52  ;;  %v2768_v13 = vpop.f32.mrb[84].mxu1 }
 0x8fe   :  { %7354 = vmatprep.subr.bf16.mxu0 %v8211_v19  ;;  %v7352_v14 = vpop.f32.mrb[85].mxu1  ;;  %v2774_v26 = vpack.c.bf16 %v2768_v13, %v2768_v13 }
 0x8ff   :  { %v2771_v1 = vpop.f32.mrb[86].mxu1 }
 0x900   :  { %7345 = vmatmul.mubr.msk.bf16.vlgmr.msra.gmra.mrb[20].mxu0 %vm2556_vm5, %v2652_v2  ;;  %v7353_v15 = vpop.f32.mrb[87].mxu1  ;;  %v8075_v1 = vld [vmem:[%s9567_s14 + $0x20] sm:$0xff]  }
 0x901   :  { %7355 = vmatpush3.bf16.msra.mxu0 %v8047_v12  ;;  %7362 = vmatprep.mubr.msk.bf16.mxu0 %vm8212_vm1, %v8211_v19  ;;  %v8074_v12 = vld [vmem:[%s9567_s14 + $0x18] sm:$0xff]  }
 0x902   :  { %7356 = vmatprep.subr.bf16.mxu0 %v8211_v19 }
 0x905   :  { %7357 = vmatpush3.bf16.msra.mxu0 %v8048_v16  ;;  %v2890_v18 = vpop.f32.mrb[88].mxu1 }
 0x906   :  { %7358 = vmatprep.subr.bf16.mxu0 %v8211_v19  ;;  %v7370_v20 = vpop.f32.mrb[89].mxu1  ;;  %v2896_v31 = vpack.c.bf16 %v2890_v18, %v2890_v18 }
 0x907   :  { %v2893_v21 = vpop.f32.mrb[90].mxu1 }
 0x908   :  { %v7371_v22 = vpop.f32.mrb[91].mxu1 }
 0x909   :  { %7359 = vmatpush3.bf16.msra.mxu0 %v8049_v17  ;;  %v8076_v22 = vld [vmem:[%s9567_s14 + $0x28] sm:$0xff]  }
 0x90a   :  { %7360 = vmatprep.subr.bf16.mxu0 %v8211_v19 }
 0x90d   :  { %7361 = vmatpush3.bf16.msra.mxu0 %v8050_v25 }
 0x90e   :  { %7372 = vmatprep.subr.bf16.mxu0 %v8211_v19 }
 0x910   :  { %7363 = vmatmul.mubr.msk.bf16.vlgmr.msra.gmra.mrb[20].mxu0 %vm2556_vm5, %v2774_v26 }
 0x911   :  { %7373 = vmatpush3.bf16.msra.mxu0 %v8051_v27  ;;  %7380 = vmatprep.mubr.msk.bf16.mxu0 %vm8212_vm1, %v8211_v19 }
 0x912   :  { %7374 = vmatprep.subr.bf16.mxu0 %v8211_v19 }
 0x915   :  { %7375 = vmatpush3.bf16.msra.mxu0 %v8052_v28 }
 0x916   :  { %7376 = vmatprep.subr.bf16.mxu0 %v8211_v19 }
 0x919   :  { %7377 = vmatpush3.bf16.msra.mxu0 %v8053_v29  ;;  %v8077_v29 = vld [vmem:[%s9567_s14 + $0x30] sm:$0xff]  }
 0x91a   :  { %7378 = vmatprep.subr.bf16.mxu0 %v8211_v19 }
 0x91d   :  { %7379 = vmatpush3.bf16.msra.mxu0 %v8054_v30 }
 0x91e   :  { %7416 = vmatprep.subr.bf16.mxu0 %v8071_v59 }
 0x920   :  { %7381 = vmatmul.mubr.msk.bf16.vlgmr.msra.gmra.mrb[20].mxu0 %vm2556_vm5, %v2896_v31 }
 0x921   :  { %7417 = vmatpush3.bf16.msra.mxu0 %v8071_v59  ;;  %v8081_v59 = vld [vmem:[%s9569_s16 + $0x50] sm:$0xff]  }
 0x922   :  { %7418 = vmatprep.subr.bf16.mxu0 %v8072_v11 }
 0x925   :  { %7419 = vmatpush3.bf16.msra.mxu0 %v8072_v11  ;;  %v8092_v11 = vld [vmem:[%s9569_s16 + $0x28] sm:$0xff]  }
 0x926   :  { %7432 = vmatprep.subr.bf16.mxu0 %v8073_v23 }
 0x9f3   :  { %v2966_v34 = vpop.f32.mrb[20].mxu0 }
 0x9f4   :  { %v7757_v35 = vadd.f32 %v6184_v33, %v2966_v34  ;;  %v7382_v36 = vpop.f32.mrb[21].mxu0 }
 0x9f5   :  { %v2969_v39 = vpop.f32.mrb[22].mxu0  ;;  %v8078_v36 = vld [vmem:[%s9567_s14 + $0x38] sm:$0xff]  }
 0x9f6   :  { %v2973_v40 = vmax.f32 %v7757_v35, 0.0  ;;  %v7383_v19 = vpop.f32.mrb[23].mxu0  ;;  %v6242_v39 = vld [vmem:[%s9568_s15] ss:$0 sm:$0xff]  ;;  %s8216_s15 = smov 112  }
 0x9f8   :  { %v2978_v41 = vpack.c.bf16 %v2973_v40, %v2973_v40 }
 0x9fa   :  { %3217 = vrot.lane.b32.xlu1 %v2978_v41, %s8213_s10  ;;  %2995 = vrot.lane.b32.xlu0 %v2978_v41, %s8214_s24  ;;  %v3072_v46 = vsel %vm2479_vm3, %v2978_v41, 0 }
 0x9fe   :  { %3138 = vrot.lane.b32.xlu0 %v2978_v41, %s8215_s3 }
 0xa6c   :  { %v2996_v42 = vpop.permute.xlu0 %2995  ;;  %v3218_v53 = vpop.permute.xlu1 %3217 }
 0xa6d   :  { %v3004_v43 = vsel %vm2479_vm3, %v2996_v42, 0  ;;  %7974 = vmatprep.subr.msk.bf16.mxu1 %vm2479_vm3, %v2996_v42  ;;  %v3226_v56 = vsel %vm2479_vm3, %v3218_v53, 0 }
 0xa6e   :  { %7385 = vmatpush3.bf16.msra.mxu1 %v3004_v43 }
 0xa6f   :  { %7975 = vmatprep.subr.msk.bf16.mxu1 %vm2479_vm3, %v2978_v41 }
 0xa70   :  { %v3139_v47 = vpop.permute.xlu0 %3138 }
 0xa71   :  { %7387 = vmatmul.mubr.msk.bf16.vlgmr.msra.gmra.mrb[92].mxu1 %vm2475_vm4, %v8056_v44  ;;  %v3147_v50 = vsel %vm2479_vm3, %v3139_v47, 0 }
 0xa72   :  { %7391 = vmatpush3.bf16.msra.mxu1 %v3072_v46  ;;  %7392 = vmatprep.mubr.msk.bf16.mxu1 %vm2475_vm4, %v8057_v45 }
 0xa73   :  { %7976 = vmatprep.subr.msk.bf16.mxu1 %vm2479_vm3, %v3139_v47  ;;  %v8079_v47 = vld [vmem:[%s9569_s16 + $0x40] sm:$0xff]  }
 0xa7d   :  { %7393 = vmatmul.mubr.msk.bf16.vlgmr.msra.gmra.mrb[92].mxu1 %vm2475_vm4, %v8058_v48 }
 0xa7e   :  { %7397 = vmatpush3.bf16.msra.mxu1 %v3147_v50  ;;  %7398 = vmatprep.mubr.msk.bf16.mxu1 %vm2475_vm4, %v8059_v49 }
 0xa7f   :  { %7977 = vmatprep.subr.msk.bf16.mxu1 %vm2479_vm3, %v3218_v53 }
 0xa89   :  { %7399 = vmatmul.mubr.msk.bf16.vlgmr.msra.gmra.mrb[92].mxu1 %vm2475_vm4, %v8060_v54 }
 0xa8a   :  { %7403 = vmatpush3.bf16.msra.mxu1 %v3226_v56  ;;  %7404 = vmatprep.mubr.msk.bf16.mxu1 %vm2475_vm4, %v8061_v55 }
 0xa95   :  { %7405 = vmatmul.mubr.msk.bf16.vlgmr.msra.gmra.mrb[92].mxu1 %vm2475_vm4, %v8062_v57 }
 0xa96   :  { %7412 = vmatprep.mubr.msk.bf16.mxu1 %vm1512_vm2, %v8063_v58  ;;  %v8080_v58 = vld [vmem:[%s9569_s16 + $0x48] sm:$0xff]  }
 0xb68   :  { %v7406_v60 = vpop.f32.mrb[92].mxu1 }
 0xb69   :  { %v3262_v61 = vpop.f32.mrb[93].mxu1 }
 0xb6a   :  { %v7407_v62 = vpop.f32.mrb[94].mxu1 }
 0xb6b   :  { %v3282_v63 = vpack.c.bf16 %v7407_v62, %v7406_v60  ;;  %v3265_v0 = vpop.f32.mrb[95].mxu1  ;;  %v8082_v60 = vld [vmem:[%s9569_s16 + $0x58] sm:$0xff]   ;;  %v8083_v62 = vld [vmem:[%s9569_s16 + $0x60] sm:$0xff]  }
 0xb6c   :  { %v3281_v3 = vpack.c.bf16 %v3265_v0, %v3262_v61  ;;  %v8085_v0 = vld [vmem:[%s9569_s16 + $0x70] sm:$0xff]  }
 0xb6e   :  { %7408 = vmatprep.subr.bf16.mxu1 %v3281_v3 }
 0xb6f   :  { %7409 = vmatpush3.bf16.msra.mxu1 %v3281_v3 }
 0xb70   :  { %7410 = vmatprep.subr.bf16.mxu1 %v3282_v63 }
 0xb73   :  { %7411 = vmatpush3.bf16.msra.mxu1 %v3282_v63 }
 0xb74   :  { %7424 = vmatprep.subr.bf16.mxu1 %v3281_v3 }
 0xb76   :  { %7413 = vmatmul.mubr.msk.bf16.vlgmr.msra.gmra.mrb[96].mxu1 %vm1512_vm2, %v8064_v4  ;;  %v8087_v4 = vld [vmem:[%s9569_s16] sm:$0xff]  }
 0xb77   :  { %7425 = vmatpush3.bf16.msra.mxu1 %v3281_v3  ;;  %7428 = vmatprep.mubr.msk.bf16.mxu1 %vm1512_vm2, %v8065_v5  ;;  %v8088_v5 = vld [vmem:[%s9569_s16 + $0x8] sm:$0xff]  }
 0xb78   :  { %7426 = vmatprep.subr.bf16.mxu1 %v3282_v63 }
 0xb7b   :  { %7427 = vmatpush3.bf16.msra.mxu1 %v3282_v63 }
 0xb7c   :  { %7440 = vmatprep.subr.bf16.mxu1 %v3281_v3 }
 0xb7e   :  { %7429 = vmatmul.mubr.msk.bf16.vlgmr.msra.gmra.mrb[100].mxu1 %vm1512_vm2, %v8066_v6  ;;  %v8089_v6 = vld [vmem:[%s9569_s16 + $0x10] sm:$0xff]  }
 0xb7f   :  { %7441 = vmatpush3.bf16.msra.mxu1 %v3281_v3  ;;  %7444 = vmatprep.mubr.msk.bf16.mxu1 %vm1512_vm2, %v8067_v7 }
 0xb80   :  { %7442 = vmatprep.subr.bf16.mxu1 %v3282_v63 }
 0xb83   :  { %7443 = vmatpush3.bf16.msra.mxu1 %v3282_v63 }
 0xb84   :  { %7456 = vmatprep.subr.bf16.mxu1 %v3281_v3 }
 0xb86   :  { %7445 = vmatmul.mubr.msk.bf16.vlgmr.msra.gmra.mrb[104].mxu1 %vm1512_vm2, %v8068_v8  ;;  %v8090_v8 = vld [vmem:[%s9569_s16 + $0x18] sm:$0xff]  }
 0xb87   :  { %7457 = vmatpush3.bf16.msra.mxu1 %v3281_v3  ;;  %7460 = vmatprep.mubr.msk.bf16.mxu1 %vm1512_vm2, %v8069_v9  ;;  %v8086_v3 = vld [vmem:[%s9569_s16 + $0x78] sm:$0xff]  }
 0xb88   :  { %7458 = vmatprep.subr.bf16.mxu1 %v3282_v63 }
 0xb8b   :  { %7459 = vmatpush3.bf16.msra.mxu1 %v3282_v63  ;;  %v8084_v63 = vld [vmem:[%s9569_s16 + $0x68] sm:$0xff]  }
 0xb8e   :  { %7461 = vmatmul.mubr.msk.bf16.vlgmr.msra.gmra.mrb[108].mxu1 %vm1512_vm2, %v8070_v10  ;;  %v8091_v10 = vld [vmem:[%s9569_s16 + $0x20] sm:$0xff]  }
 0xb8f   :  { %7476 = vmatprep.mubr.msk.bf16.mxu1 %vm1512_vm2, %v8079_v47 }
 0xc49   :  { %v7414_v24 = vpop.f32.mrb[96].mxu1 }
 0xc4a   :  { %v3338_v37 = vpop.f32.mrb[97].mxu1 }
 0xc4b   :  { %v7415_v38 = vpop.f32.mrb[98].mxu1 }
 0xc4c   :  { %v3354_v51 = vpack.c.bf16 %v7415_v38, %v7414_v24  ;;  %v3341_v52 = vpop.f32.mrb[99].mxu1  ;;  %v8094_v24 = vld [vmem:[%s9569_s16 + $0x38] sm:$0xff]   ;;  %v8096_v38 = vld [vmem:[%s9569_s16 + $0x88] sm:$0xff]  }
 0xc4d   :  { %v3353_v2 = vpack.c.bf16 %v3341_v52, %v3338_v37  ;;  %v8095_v37 = vld [vmem:[%s9569_s16 + $0x80] sm:$0xff]  }
 0xc4f   :  { %7420 = vmatprep.mubr.msk.bf16.mxu0 %vm1512_vm2, %v3353_v2  ;;  %v8098_v2 = vld [vmem:[%s9569_s16 + $0x98] sm:$0xff]  }
 0xc50   :  { %7421 = vmatmul.mubr.msk.bf16.vlgmr.msra.gmra.mrb[24].mxu0 %vm1512_vm2, %v3354_v51  ;;  %v8097_v51 = vld [vmem:[%s9569_s16 + $0x90] sm:$0xff]  }
 0xc51   :  { %v7430_v13 = vpop.f32.mrb[100].mxu1  ;;  %7433 = vmatpush3.bf16.msra.mxu0 %v8073_v23  ;;  %v8093_v23 = vld [vmem:[%s9569_s16 + $0x30] sm:$0xff]  }
 0xc52   :  { %v3491_v14 = vpop.f32.mrb[101].mxu1  ;;  %7434 = vmatprep.subr.bf16.mxu0 %v8074_v12 }
 0xc53   :  { %v7431_v15 = vpop.f32.mrb[102].mxu1 }
 0xc54   :  { %v3507_v16 = vpack.c.bf16 %v7431_v15, %v7430_v13  ;;  %v3494_v17 = vpop.f32.mrb[103].mxu1  ;;  %v8100_v13 = vld [vmem:[%s9569_s16 + $0xa8] sm:$0xff]   ;;  %v8103_v15 = vld [vmem:[%s9569_s16 + $0xc0] sm:$0xff]  }
 0xc55   :  { %v3506_v18 = vpack.c.bf16 %v3494_v17, %v3491_v14  ;;  %7435 = vmatpush3.bf16.msra.mxu0 %v8074_v12  ;;  %v8099_v12 = vld [vmem:[%s9569_s16 + $0xa0] sm:$0xff]   ;;  %v8101_v14 = vld [vmem:[%s9569_s16 + $0xb0] sm:$0xff]  }
 0xc56   :  { %7448 = vmatprep.subr.bf16.mxu0 %v8075_v1  ;;  %v8105_v17 = vld [vmem:[%s9569_s16 + $0xd0] sm:$0xff]  }
 0xc57   :  { %7436 = vmatprep.mubr.msk.bf16.mxu0 %vm1512_vm2, %v3506_v18  ;;  %v8106_v18 = vld [vmem:[%s9569_s16 + $0xd8] sm:$0xff]  }
 0xc59   :  { %v7446_v20 = vpop.f32.mrb[104].mxu1 }
 0xc5a   :  { %v3638_v21 = vpop.f32.mrb[105].mxu1 }
 0xc5b   :  { %v7447_v25 = vpop.f32.mrb[106].mxu1 }
 0xc5c   :  { %7437 = vmatmul.mubr.msk.bf16.vlgmr.msra.gmra.mrb[24].mxu0 %vm1512_vm2, %v3507_v16  ;;  %v3654_v26 = vpack.c.bf16 %v7447_v25, %v7446_v20  ;;  %v3641_v27 = vpop.f32.mrb[107].mxu1  ;;  %v8104_v16 = vld [vmem:[%s9569_s16 + $0xc8] sm:$0xff]   ;;  %v8107_v20 = vld [vmem:[%s9569_s16 + $0xe0] sm:$0xff]   ;;  %v8110_v25 = vld [vmem:[%s9569_s16 + $0xf8] sm:$0xff]  }
 0xc5d   :  { %7449 = vmatpush3.bf16.msra.mxu0 %v8075_v1  ;;  %v3653_v28 = vpack.c.bf16 %v3641_v27, %v3638_v21  ;;  %v8102_v1 = vld [vmem:[%s9569_s16 + $0xb8] sm:$0xff]   ;;  %v8108_v21 = vld [vmem:[%s9569_s16 + $0xe8] sm:$0xff]   ;;  %v8114_v27 = vld [vmem:[%s9570_s17 + $0x80] sm:$0xff]  }
 0xc5e   :  { %7450 = vmatprep.subr.bf16.mxu0 %v8076_v22 }
 0xc5f   :  { %7452 = vmatprep.mubr.msk.bf16.mxu0 %vm1512_vm2, %v3653_v28 }
 0xc61   :  { %7451 = vmatpush3.bf16.msra.mxu0 %v8076_v22  ;;  %v7462_v30 = vpop.f32.mrb[108].mxu1  ;;  %v8109_v22 = vld [vmem:[%s9569_s16 + $0xf0] sm:$0xff]  }
 0xc62   :  { %7464 = vmatprep.subr.bf16.mxu0 %v8077_v29  ;;  %v3785_v31 = vpop.f32.mrb[109].mxu1 }
 0xc63   :  { %v7463_v32 = vpop.f32.mrb[110].mxu1 }
 0xc64   :  { %v3801_v33 = vpack.c.bf16 %v7463_v32, %v7462_v30  ;;  %v3788_v34 = vpop.f32.mrb[111].mxu1 }
 0xc65   :  { %v3800_v35 = vpack.c.bf16 %v3788_v34, %v3785_v31 }
 0xc68   :  { %7453 = vmatmul.mubr.msk.bf16.vlgmr.msra.gmra.mrb[24].mxu0 %vm1512_vm2, %v3654_v26  ;;  %v8111_v26 = vld [vmem:[%s9570_s17] sm:$0xff]  }
 0xc69   :  { %7465 = vmatpush3.bf16.msra.mxu0 %v8077_v29  ;;  %7468 = vmatprep.mubr.msk.bf16.mxu0 %vm1512_vm2, %v3800_v35 }
 0xc6a   :  { %7466 = vmatprep.subr.bf16.mxu0 %v8078_v36 }
 0xc6d   :  { %7467 = vmatpush3.bf16.msra.mxu0 %v8078_v36 }
 0xc74   :  { %7469 = vmatmul.mubr.msk.bf16.vlgmr.msra.gmra.mrb[24].mxu0 %vm1512_vm2, %v3801_v33 }
 0xc75   :  { %7568 = vmatprep.mubr.bf16.mxu0 %v8111_v26 }
 0xd47   :  { %v7470_v40 = vpop.f32.mrb[24].mxu0 }
 0xd48   :  { %v7758_v19 = vadd.f32 %v7470_v40, %v6242_v39  ;;  %v3858_v41 = vpop.f32.mrb[25].mxu0 }
 0xd49   :  { %v7759_v42 = vadd.f32 %v6242_v39, %v3858_v41  ;;  %v7471_v43 = vpop.f32.mrb[26].mxu0 }
 0xd4a   :  { %v7760_v44 = vadd.f32 %v7471_v43, %v6242_v39  ;;  %v3861_v45 = vpop.f32.mrb[27].mxu0  ;;  %v3879_v48 = vmax.f32 %v7758_v19, 0.0 }
 0xd4b   :  { %v7761_v46 = vadd.f32 %v6242_v39, %v3861_v45  ;;  %v3877_v50 = vmax.f32 %v7759_v42, 0.0 }
 0xd4c   :  { %v3880_v49 = vmax.f32 %v7760_v44, 0.0 }
 0xd4d   :  { %v3878_v53 = vmax.f32 %v7761_v46, 0.0 }
 0xd4e   :  { %v3898_v54 = vpack.c.bf16 %v3880_v49, %v3879_v48 }
 0xd4f   :  { %v3897_v55 = vpack.c.bf16 %v3878_v53, %v3877_v50 }
 0xd50   :  { %3960 = vrot.lane.b32.xlu0 %v3898_v54, %s8216_s15 }
 0xd51   :  { %3958 = vrot.lane.b32.xlu1 %v3897_v55, %s8216_s15 }
 0xd54   :  { %4305 = vrot.lane.b32.xlu0 %v3898_v54, %s8214_s24 }
 0xd55   :  { %4303 = vrot.lane.b32.xlu1 %v3897_v55, %s8214_s24 }
 0xd58   :  { %4505 = vrot.lane.b32.xlu0 %v3898_v54, %s8217_s4 }
 0xd59   :  { %4503 = vrot.lane.b32.xlu1 %v3897_v55, %s8217_s4 }
 0xdc2   :  { %v3961_v57 = vpop.permute.xlu0 %3960 }
 0xdc3   :  { %v3959_v56 = vpop.permute.xlu1 %3958 }
 0xdc4   :  { %7472 = vmatprep.subr.bf16.mxu1 %v3959_v56 }
 0xdc5   :  { %7473 = vmatpush3.bf16.msra.mxu1 %v3959_v56  ;;  %v8112_v56 = vld [vmem:[%s9570_s17 + $0x8] sm:$0xff]  }
 0xdc6   :  { %7474 = vmatprep.subr.bf16.mxu1 %v3961_v57  ;;  %v4306_v7 = vpop.permute.xlu0 %4305 }
 0xdc7   :  { %v4304_v61 = vpop.permute.xlu1 %4303 }
 0xdc9   :  { %7475 = vmatpush3.bf16.msra.mxu1 %v3961_v57  ;;  %v8115_v57 = vld [vmem:[%s9570_s17 + $0x88] sm:$0xff]  }
 0xdca   :  { %7492 = vmatprep.subr.bf16.mxu1 %v3897_v55  ;;  %v4506_v52 = vpop.permute.xlu0 %4505 }
 0xdcb   :  { %v4504_v9 = vpop.permute.xlu1 %4503 }
 0xdcc   :  { %7477 = vmatmul.mubr.msk.bf16.vlgmr.msra.gmra.mrb[112].mxu1 %vm1512_vm2, %v8080_v58  ;;  %v8116_v58 = vld [vmem:[%s9570_s17 + $0x10] sm:$0xff]  }
 0xdcd   :  { %7493 = vmatpush3.bf16.msra.mxu1 %v3897_v55  ;;  %7480 = vmatprep.mubr.msk.bf16.mxu1 %vm1512_vm2, %v8081_v59  ;;  %v8113_v55 = vld [vmem:[%s9571_s18] sm:$0xff]   ;;  %v8117_v59 = vld [vmem:[%s9570_s17 + $0x18] sm:$0xff]  }
 0xdce   :  { %7494 = vmatprep.subr.bf16.mxu1 %v3898_v54 }
 0xdd1   :  { %7495 = vmatpush3.bf16.msra.mxu1 %v3898_v54 }
 0xdd2   :  { %7512 = vmatprep.subr.bf16.mxu1 %v4304_v61 }
 0xdd4   :  { %7481 = vmatmul.mubr.msk.bf16.gmra.mrb[116].mxu1 %vm1512_vm2, %v8082_v60  ;;  %v8118_v60 = vld [vmem:[%s9570_s17 + $0x20] sm:$0xff]  }
 0xdd5   :  { %7484 = vmatprep.mubr.msk.bf16.mxu1 %vm1512_vm2, %v8083_v62  ;;  %v8120_v62 = vld [vmem:[%s9570_s17 + $0x30] sm:$0xff]  }
 0xddc   :  { %7485 = vmatmul.mubr.msk.bf16.gmra.mrb[120].mxu1 %vm1512_vm2, %v8084_v63  ;;  %v8121_v63 = vld [vmem:[%s9570_s17 + $0x38] sm:$0xff]  }
 0xddd   :  { %7488 = vmatprep.mubr.msk.bf16.mxu1 %vm1512_vm2, %v8085_v0  ;;  %v8130_v0 = vld [vmem:[%s9570_s17 + $0x90] sm:$0xff]  }
 0xde4   :  { %7489 = vmatmul.mubr.msk.bf16.gmra.mrb[124].mxu1 %vm1512_vm2, %v8086_v3  ;;  %v8131_v3 = vld [vmem:[%s9570_s17 + $0x98] sm:$0xff]  }
 0xde5   :  { %7496 = vmatprep.mubr.msk.bf16.mxu1 %vm1512_vm2, %v8087_v4  ;;  %v8132_v4 = vld [vmem:[%s9570_s17 + $0xa0] sm:$0xff]  }
 0xdec   :  { %7497 = vmatmul.mubr.msk.bf16.vlgmr.msra.gmra.mrb[112].mxu1 %vm1512_vm2, %v8088_v5  ;;  %v8133_v5 = vld [vmem:[%s9570_s17 + $0xa8] sm:$0xff]  }
 0xded   :  { %7513 = vmatpush3.bf16.msra.mxu1 %v4304_v61  ;;  %7500 = vmatprep.mubr.msk.bf16.mxu1 %vm1512_vm2, %v8089_v6  ;;  %v8119_v61 = vld [vmem:[%s9570_s17 + $0x28] sm:$0xff]   ;;  %v8134_v6 = vld [vmem:[%s9570_s17 + $0xb0] sm:$0xff]  }
 0xdee   :  { %7514 = vmatprep.subr.bf16.mxu1 %v4306_v7 }
 0xdf1   :  { %7515 = vmatpush3.bf16.msra.mxu1 %v4306_v7  ;;  %v8135_v7 = vld [vmem:[%s9570_s17 + $0xb8] sm:$0xff]  }
 0xdf2   :  { %7532 = vmatprep.subr.bf16.mxu1 %v4504_v9 }
 0xdf4   :  { %7501 = vmatmul.mubr.msk.bf16.gmra.mrb[116].mxu1 %vm1512_vm2, %v8090_v8  ;;  %v8136_v8 = vld [vmem:[%s9570_s17 + $0xc0] sm:$0xff]  }
 0xdf5   :  { %7504 = vmatprep.mubr.msk.bf16.mxu1 %vm1512_vm2, %v8091_v10  ;;  %v8138_v10 = vld [vmem:[%s9570_s17 + $0xd0] sm:$0xff]  }
 0xdfc   :  { %7505 = vmatmul.mubr.msk.bf16.gmra.mrb[120].mxu1 %vm1512_vm2, %v8092_v11  ;;  %v8139_v11 = vld [vmem:[%s9570_s17 + $0xd8] sm:$0xff]  }
 0xdfd   :  { %7508 = vmatprep.mubr.msk.bf16.mxu1 %vm1512_vm2, %v8093_v23  ;;  %v8140_v23 = vld [vmem:[%s9570_s17 + $0xe0] sm:$0xff]  }
 0xe04   :  { %7509 = vmatmul.mubr.msk.bf16.gmra.mrb[124].mxu1 %vm1512_vm2, %v8094_v24  ;;  %v8141_v24 = vld [vmem:[%s9570_s17 + $0xe8] sm:$0xff]  }
 0xe05   :  { %7516 = vmatprep.mubr.msk.bf16.mxu1 %vm1512_vm2, %v8095_v37  ;;  %v8142_v37 = vld [vmem:[%s9570_s17 + $0xf0] sm:$0xff]  }
 0xe0c   :  { %7517 = vmatmul.mubr.msk.bf16.vlgmr.msra.gmra.mrb[112].mxu1 %vm1512_vm2, %v8096_v38  ;;  %v8143_v38 = vld [vmem:[%s9570_s17 + $0xf8] sm:$0xff]  }
 0xe0d   :  { %7533 = vmatpush3.bf16.msra.mxu1 %v4504_v9  ;;  %7520 = vmatprep.mubr.msk.bf16.mxu1 %vm1512_vm2, %v8097_v51  ;;  %v8137_v9 = vld [vmem:[%s9570_s17 + $0xc8] sm:$0xff]  }
 0xe0e   :  { %7534 = vmatprep.subr.bf16.mxu1 %v4506_v52 }
 0xe11   :  { %7535 = vmatpush3.bf16.msra.mxu1 %v4506_v52 }
 0xe14   :  { %7521 = vmatmul.mubr.msk.bf16.gmra.mrb[116].mxu1 %vm1512_vm2, %v8098_v2 }
 0xe15   :  { %7524 = vmatprep.mubr.msk.bf16.mxu1 %vm1512_vm2, %v8099_v12 }
 0xe1c   :  { %7525 = vmatmul.mubr.msk.bf16.gmra.mrb[120].mxu1 %vm1512_vm2, %v8100_v13 }
 0xe1d   :  { %7528 = vmatprep.mubr.msk.bf16.mxu1 %vm1512_vm2, %v8101_v14 }
 0xe24   :  { %7529 = vmatmul.mubr.msk.bf16.gmra.mrb[124].mxu1 %vm1512_vm2, %v8102_v1 }
 0xe25   :  { %7536 = vmatprep.mubr.msk.bf16.mxu1 %vm1512_vm2, %v8103_v15 }
 0xe2c   :  { %7537 = vmatmul.mubr.msk.bf16.vlgmr.msra.gmra.mrb[112].mxu1 %vm1512_vm2, %v8104_v16 }
 0xe2d   :  { %7540 = vmatprep.mubr.msk.bf16.mxu1 %vm1512_vm2, %v8105_v17 }
 0xe34   :  { %7541 = vmatmul.mubr.msk.bf16.gmra.mrb[116].mxu1 %vm1512_vm2, %v8106_v18 }
 0xe35   :  { %7544 = vmatprep.mubr.msk.bf16.mxu1 %vm1512_vm2, %v8107_v20 }
 0xe3c   :  { %7545 = vmatmul.mubr.msk.bf16.gmra.mrb[120].mxu1 %vm1512_vm2, %v8108_v21 }
 0xe3d   :  { %7548 = vmatprep.mubr.msk.bf16.mxu1 %vm1512_vm2, %v8109_v22 }
 0xe44   :  { %7549 = vmatmul.mubr.msk.bf16.gmra.mrb[124].mxu1 %vm1512_vm2, %v8110_v25 }
 0xe45   :  { %7668 = vmatprep.mubr.bf16.mxu1 %v8114_v27 }
 0xeff   :  { %v7538_v28 = vpop.f32.mrb[112].mxu1 }
 0xf00   :  { %v4567_v29 = vpop.f32.mrb[113].mxu1 }
 0xf01   :  { %v7539_v30 = vpop.f32.mrb[114].mxu1 }
 0xf02   :  { %v9155_v31 = vpack.c.bf16 %v7539_v30, %v7538_v28  ;;  %v4570_v32 = vpop.f32.mrb[115].mxu1 }
 0xf03   :  { %v9157_v33 = vpack.c.bf16 %v4570_v32, %v4567_v29 }
 0xf05   :  { %7552 = vmatprep.subr.bf16.mxu0 %v9157_v33  ;;  %7652 = vmatprep.subr.bf16.mxu1 %v9157_v33 }
 0xf06   :  { %7553 = vmatpush3.bf16.msra.mxu0 %v9157_v33  ;;  %7653 = vmatpush3.bf16.msra.mxu1 %v9157_v33 }
 0xf07   :  { %v7542_v34 = vpop.f32.mrb[116].mxu1  ;;  %7554 = vmatprep.subr.bf16.mxu0 %v9155_v31  ;;  %7654 = vmatprep.subr.bf16.mxu1 %v9155_v31 }
 0xf08   :  { %v4583_v35 = vpop.f32.mrb[117].mxu1 }
 0xf09   :  { %v7543_v36 = vpop.f32.mrb[118].mxu1 }
 0xf0a   :  { %v9165_v39 = vpack.c.bf16 %v7543_v36, %v7542_v34  ;;  %v4586_v40 = vpop.f32.mrb[119].mxu1  ;;  %7555 = vmatpush3.bf16.msra.mxu0 %v9155_v31  ;;  %7655 = vmatpush3.bf16.msra.mxu1 %v9155_v31  ;;  %v8144_v36 = vld [vmem:[%s9571_s18 + $0x8] sm:$0xff]  }
 0xf0b   :  { %v9169_v19 = vpack.c.bf16 %v4586_v40, %v4583_v35  ;;  %v8122_v35 = vld [vmem:[%s9570_s17 + $0x40] sm:$0xff]   ;;  %v8124_v40 = vld [vmem:[%s9570_s17 + $0x50] sm:$0xff]  }
 0xf0d   :  { %7556 = vmatprep.subr.bf16.mxu0 %v9169_v19  ;;  %7656 = vmatprep.subr.bf16.mxu1 %v9169_v19 }
 0xf0e   :  { %7557 = vmatpush3.bf16.msra.mxu0 %v9169_v19  ;;  %7657 = vmatpush3.bf16.msra.mxu1 %v9169_v19 }
 0xf0f   :  { %v7546_v41 = vpop.f32.mrb[120].mxu1  ;;  %7558 = vmatprep.subr.bf16.mxu0 %v9165_v39  ;;  %7658 = vmatprep.subr.bf16.mxu1 %v9165_v39 }
 0xf10   :  { %v4599_v42 = vpop.f32.mrb[121].mxu1 }
 0xf11   :  { %v7547_v43 = vpop.f32.mrb[122].mxu1 }
 0xf12   :  { %v9177_v44 = vpack.c.bf16 %v7547_v43, %v7546_v41  ;;  %v4602_v45 = vpop.f32.mrb[123].mxu1  ;;  %7559 = vmatpush3.bf16.msra.mxu0 %v9165_v39  ;;  %7659 = vmatpush3.bf16.msra.mxu1 %v9165_v39  ;;  %v8126_v41 = vld [vmem:[%s9570_s17 + $0x60] sm:$0xff]   ;;  %v8128_v43 = vld [vmem:[%s9570_s17 + $0x70] sm:$0xff]  }
 0xf13   :  { %v9181_v46 = vpack.c.bf16 %v4602_v45, %v4599_v42  ;;  %v8127_v42 = vld [vmem:[%s9570_s17 + $0x68] sm:$0xff]   ;;  %v8145_v45 = vld [vmem:[%s9571_s18 + $0x10] sm:$0xff]  }
 0xf15   :  { %7560 = vmatprep.subr.bf16.mxu0 %v9181_v46  ;;  %7660 = vmatprep.subr.bf16.mxu1 %v9181_v46 }
 0xf16   :  { %7561 = vmatpush3.bf16.msra.mxu0 %v9181_v46  ;;  %7661 = vmatpush3.bf16.msra.mxu1 %v9181_v46 }
 0xf17   :  { %v7550_v47 = vpop.f32.mrb[124].mxu1  ;;  %7562 = vmatprep.subr.bf16.mxu0 %v9177_v44  ;;  %7662 = vmatprep.subr.bf16.mxu1 %v9177_v44 }
 0xf18   :  { %v4615_v48 = vpop.f32.mrb[125].mxu1 }
 0xf19   :  { %v7551_v49 = vpop.f32.mrb[126].mxu1 }
 0xf1a   :  { %v9189_v50 = vpack.c.bf16 %v7551_v49, %v7550_v47  ;;  %v4618_v53 = vpop.f32.mrb[127].mxu1  ;;  %7563 = vmatpush3.bf16.msra.mxu0 %v9177_v44  ;;  %7663 = vmatpush3.bf16.msra.mxu1 %v9177_v44 }
 0xf1b   :  { %v9193_v54 = vpack.c.bf16 %v4618_v53, %v4615_v48 }
 0xf1d   :  { %7564 = vmatprep.subr.bf16.mxu0 %v9193_v54  ;;  %7664 = vmatprep.subr.bf16.mxu1 %v9193_v54 }
 0xf1e   :  { %7565 = vmatpush3.bf16.msra.mxu0 %v9193_v54  ;;  %7665 = vmatpush3.bf16.msra.mxu1 %v9193_v54 }
 0xf1f   :  { %7566 = vmatprep.subr.bf16.mxu0 %v9189_v50  ;;  %7666 = vmatprep.subr.bf16.mxu1 %v9189_v50 }
 0xf22   :  { %7567 = vmatpush3.bf16.msra.mxu0 %v9189_v50  ;;  %7667 = vmatpush3.bf16.msra.mxu1 %v9189_v50 }
 0xf23   :  { %7702 = vmatprep.subr.bf16.mxu1 %v9157_v33  ;;  %7584 = vmatprep.subr.bf16.mxu0 %v8113_v55 }
 0xf25   :  { %7569 = vmatmul.mubr.bf16.vlgmr.msra.gmra.mrb[28].mxu0 %v8112_v56  ;;  %7669 = vmatmul.mubr.bf16.vlgmr.msra.gmra.mrb[128].mxu1 %v8115_v57 }
 0xf26   :  { %7585 = vmatpush3.bf16.msra.mxu0 %v8113_v55  ;;  %7703 = vmatpush3.bf16.msra.mxu1 %v9157_v33 }
 0xf27   :  { %7602 = vmatprep.subr.bf16.mxu0 %v9157_v33  ;;  %7704 = vmatprep.subr.bf16.mxu1 %v9155_v31 }
 0xf28   :  { %7572 = vmatprep.mubr.bf16.mxu0 %v8116_v58  ;;  %7672 = vmatprep.mubr.bf16.mxu1 %v8130_v0 }
 0xf2a   :  { %7705 = vmatpush3.bf16.msra.mxu1 %v9155_v31 }
 0xf2b   :  { %7706 = vmatprep.subr.bf16.mxu1 %v9169_v19 }
 0xf2d   :  { %7573 = vmatmul.mubr.bf16.gmra.mrb[32].mxu0 %v8117_v59  ;;  %7673 = vmatmul.mubr.bf16.gmra.mrb[132].mxu1 %v8131_v3 }
 0xf2e   :  { %7707 = vmatpush3.bf16.msra.mxu1 %v9169_v19  ;;  %7576 = vmatprep.mubr.bf16.mxu0 %v8118_v60 }
 0xf2f   :  { %7708 = vmatprep.subr.bf16.mxu1 %v9165_v39  ;;  %7676 = vmatprep.mubr.bf16.mxu1 %v8132_v4 }
 0xf32   :  { %7709 = vmatpush3.bf16.msra.mxu1 %v9165_v39 }
 0xf33   :  { %7710 = vmatprep.subr.bf16.mxu1 %v9181_v46 }
 0xf35   :  { %7577 = vmatmul.mubr.bf16.gmra.mrb[36].mxu0 %v8119_v61  ;;  %7677 = vmatmul.mubr.bf16.gmra.mrb[136].mxu1 %v8133_v5 }
 0xf36   :  { %7711 = vmatpush3.bf16.msra.mxu1 %v9181_v46  ;;  %7580 = vmatprep.mubr.bf16.mxu0 %v8120_v62 }
 0xf37   :  { %7712 = vmatprep.subr.bf16.mxu1 %v9177_v44  ;;  %7680 = vmatprep.mubr.bf16.mxu1 %v8134_v6 }
 0xf3a   :  { %7713 = vmatpush3.bf16.msra.mxu1 %v9177_v44 }
 0xf3b   :  { %7714 = vmatprep.subr.bf16.mxu1 %v9193_v54 }
 0xf3d   :  { %7581 = vmatmul.mubr.bf16.gmra.mrb[40].mxu0 %v8121_v63  ;;  %7681 = vmatmul.mubr.bf16.gmra.mrb[140].mxu1 %v8135_v7 }
 0xf3e   :  { %7715 = vmatpush3.bf16.msra.mxu1 %v9193_v54  ;;  %7718 = vmatprep.mubr.bf16.mxu1 %v8136_v8 }
 0xf3f   :  { %7716 = vmatprep.subr.bf16.mxu1 %v9189_v50 }
 0xf42   :  { %7717 = vmatpush3.bf16.msra.mxu1 %v9189_v50 }
 0xf45   :  { %7719 = vmatmul.mubr.bf16.vlgmr.msra.gmra.mrb[144].mxu1 %v8137_v9 }
 0xf46   :  { %7722 = vmatprep.mubr.bf16.mxu1 %v8138_v10 }
 0xf4d   :  { %7723 = vmatmul.mubr.bf16.gmra.mrb[148].mxu1 %v8139_v11 }
 0xf4e   :  { %7726 = vmatprep.mubr.bf16.mxu1 %v8140_v23 }
 0xf55   :  { %7727 = vmatmul.mubr.bf16.gmra.mrb[152].mxu1 %v8141_v24 }
 0xf56   :  { %7730 = vmatprep.mubr.bf16.mxu1 %v8142_v37 }
 0xf5d   :  { %7731 = vmatmul.mubr.bf16.gmra.mrb[156].mxu1 %v8143_v38 }
 0xff8   :  { %v7570_v51 = vpop.f32.mrb[28].mxu0 }
 0xff9   :  { %v4753_v52 = vpop.f32.mrb[29].mxu0 }
 0xffa   :  { %v7571_v2 = vpop.f32.mrb[30].mxu0 }
 0xffb   :  { %v4817_v12 = vpack.c.bf16 %v7571_v2, %v7570_v51  ;;  %v4756_v13 = vpop.f32.mrb[31].mxu0 }
 0xffc   :  { %v4816_v14 = vpack.c.bf16 %v4756_v13, %v4753_v52 }
 0xffe   :  { %7586 = vmatprep.mubr.msk.bf16.mxu0 %vm137_vm0, %v4816_v14 }
 0xfff   :  { %7587 = vmatmul.mubr.msk.bf16.vlgmr.msra.gmra.mrb[44].mxu0 %vm137_vm0, %v4817_v12 }
0x1000   :  { %7603 = vmatpush3.bf16.msra.mxu0 %v9157_v33  ;;  %v7574_v1 = vpop.f32.mrb[32].mxu0 }
0x1001   :  { %7604 = vmatprep.subr.bf16.mxu0 %v9155_v31  ;;  %v4769_v15 = vpop.f32.mrb[33].mxu0 }
0x1002   :  { %v7575_v16 = vpop.f32.mrb[34].mxu0 }
0x1003   :  { %v4819_v17 = vpack.c.bf16 %v7575_v16, %v7574_v1  ;;  %v4772_v18 = vpop.f32.mrb[35].mxu0 }
0x1004   :  { %v4818_v20 = vpack.c.bf16 %v4772_v18, %v4769_v15  ;;  %7605 = vmatpush3.bf16.msra.mxu0 %v9155_v31 }
0x1005   :  { %7606 = vmatprep.subr.bf16.mxu0 %v9169_v19 }
0x1006   :  { %7590 = vmatprep.mubr.msk.bf16.mxu0 %vm137_vm0, %v4818_v20 }
0x1007   :  { %7591 = vmatmul.mubr.msk.bf16.gmra.mrb[48].mxu0 %vm137_vm0, %v4819_v17 }
0x1008   :  { %7607 = vmatpush3.bf16.msra.mxu0 %v9169_v19  ;;  %v7578_v21 = vpop.f32.mrb[36].mxu0  ;;  %v8125_v19 = vld [vmem:[%s9570_s17 + $0x58] sm:$0xff]  }
0x1009   :  { %7608 = vmatprep.subr.bf16.mxu0 %v9165_v39  ;;  %v4785_v22 = vpop.f32.mrb[37].mxu0 }
0x100a   :  { %v7579_v25 = vpop.f32.mrb[38].mxu0 }
0x100b   :  { %v4821_v26 = vpack.c.bf16 %v7579_v25, %v7578_v21  ;;  %v4788_v27 = vpop.f32.mrb[39].mxu0 }
0x100c   :  { %v4820_v28 = vpack.c.bf16 %v4788_v27, %v4785_v22  ;;  %7609 = vmatpush3.bf16.msra.mxu0 %v9165_v39  ;;  %v8123_v39 = vld [vmem:[%s9570_s17 + $0x48] sm:$0xff]  }
0x100d   :  { %7610 = vmatprep.subr.bf16.mxu0 %v9181_v46 }
0x100e   :  { %7594 = vmatprep.mubr.msk.bf16.mxu0 %vm137_vm0, %v4820_v28 }
0x100f   :  { %7595 = vmatmul.mubr.msk.bf16.gmra.mrb[52].mxu0 %vm137_vm0, %v4821_v26 }
0x1010   :  { %7611 = vmatpush3.bf16.msra.mxu0 %v9181_v46  ;;  %v7582_v29 = vpop.f32.mrb[40].mxu0  ;;  %v9342_v46 = vpop.f32.mrb[128].mxu1 }
0x1011   :  { %7612 = vmatprep.subr.bf16.mxu0 %v9177_v44  ;;  %v4801_v30 = vpop.f32.mrb[41].mxu0  ;;  %v9344_v47 = vpop.f32.mrb[129].mxu1 }
0x1012   :  { %v7583_v31 = vpop.f32.mrb[42].mxu0  ;;  %v9346_v48 = vpop.f32.mrb[130].mxu1 }
0x1013   :  { %v4823_v32 = vpack.c.bf16 %v7583_v31, %v7582_v29  ;;  %v4804_v33 = vpop.f32.mrb[43].mxu0  ;;  %v5453_v49 = vpack.c.bf16 %v9346_v48, %v9342_v46  ;;  %v9471_v46 = vld [vmem:[%s9572_s19] ss:$0 sm:$0xff] }
0x1014   :  { %v4822_v34 = vpack.c.bf16 %v4804_v33, %v4801_v30  ;;  %7613 = vmatpush3.bf16.msra.mxu0 %v9177_v44  ;;  %v8129_v44 = vld [vmem:[%s9570_s17 + $0x78] sm:$0xff]  }
0x1015   :  { %7614 = vmatprep.subr.bf16.mxu0 %v9193_v54 }
0x1016   :  { %7598 = vmatprep.mubr.msk.bf16.mxu0 %vm137_vm0, %v4822_v34 }
0x1017   :  { %7599 = vmatmul.mubr.msk.bf16.gmra.mrb[56].mxu0 %vm137_vm0, %v4823_v32 }
0x1018   :  { %7615 = vmatpush3.bf16.msra.mxu0 %v9193_v54  ;;  %7618 = vmatprep.mubr.bf16.mxu0 %v8122_v35  ;;  %v8146_v35 = vld [vmem:[%s9571_s18 + $0x18] sm:$0xff]  }
0x1019   :  { %7616 = vmatprep.subr.bf16.mxu0 %v9189_v50 }
0x101c   :  { %7617 = vmatpush3.bf16.msra.mxu0 %v9189_v50  ;;  %v9350_v50 = vpop.f32.mrb[131].mxu1 }
0x101d   :  { %7634 = vmatprep.subr.bf16.mxu0 %v8144_v36  ;;  %v5452_v53 = vpack.c.bf16 %v9350_v50, %v9344_v47  ;;  %v9354_v54 = vpop.f32.mrb[132].mxu1 }
0x101e   :  { %v9356_v55 = vpop.f32.mrb[133].mxu1 }
0x101f   :  { %7619 = vmatmul.mubr.bf16.vlgmr.msra.gmra.mrb[60].mxu0 %v8123_v39  ;;  %v9358_v56 = vpop.f32.mrb[134].mxu1 }
0x1020   :  { %7622 = vmatprep.mubr.bf16.mxu0 %v8124_v40  ;;  %7635 = vmatpush3.bf16.msra.mxu0 %v8144_v36  ;;  %v5455_v57 = vpack.c.bf16 %v9358_v56, %v9354_v54  ;;  %v9362_v58 = vpop.f32.mrb[135].mxu1 }
0x1021   :  { %7684 = vmatprep.subr.bf16.mxu0 %v8145_v45  ;;  %v5454_v59 = vpack.c.bf16 %v9362_v58, %v9356_v55  ;;  %v9366_v60 = vpop.f32.mrb[136].mxu1 }
0x1022   :  { %v9368_v61 = vpop.f32.mrb[137].mxu1 }
0x1023   :  { %v9370_v62 = vpop.f32.mrb[138].mxu1 }
0x1024   :  { %v5457_v63 = vpack.c.bf16 %v9370_v62, %v9366_v60  ;;  %v9374_v0 = vpop.f32.mrb[139].mxu1 }
0x1025   :  { %v5456_v3 = vpack.c.bf16 %v9374_v0, %v9368_v61  ;;  %v9378_v4 = vpop.f32.mrb[140].mxu1 }
0x1026   :  { %v9380_v5 = vpop.f32.mrb[141].mxu1 }
0x1027   :  { %7623 = vmatmul.mubr.bf16.gmra.mrb[64].mxu0 %v8125_v19  ;;  %v9382_v6 = vpop.f32.mrb[142].mxu1 }
0x1028   :  { %7626 = vmatprep.mubr.bf16.mxu0 %v8126_v41  ;;  %v5459_v7 = vpack.c.bf16 %v9382_v6, %v9378_v4  ;;  %v9386_v8 = vpop.f32.mrb[143].mxu1 }
0x1029   :  { %v5458_v9 = vpack.c.bf16 %v9386_v8, %v9380_v5  ;;  %v9390_v10 = vpop.f32.mrb[144].mxu1 }
0x102a   :  { %v9392_v11 = vpop.f32.mrb[145].mxu1 }
0x102b   :  { %v9394_v23 = vpop.f32.mrb[146].mxu1 }
0x102c   :  { %v5768_v24 = vpack.c.bf16 %v9394_v23, %v9390_v10  ;;  %v9398_v37 = vpop.f32.mrb[147].mxu1 }
0x102d   :  { %v5767_v38 = vpack.c.bf16 %v9398_v37, %v9392_v11  ;;  %v9402_v51 = vpop.f32.mrb[148].mxu1 }
0x102e   :  { %v9404_v52 = vpop.f32.mrb[149].mxu1 }
0x102f   :  { %7627 = vmatmul.mubr.bf16.gmra.mrb[68].mxu0 %v8127_v42  ;;  %v9406_v2 = vpop.f32.mrb[150].mxu1 }
0x1030   :  { %7630 = vmatprep.mubr.bf16.mxu0 %v8128_v43  ;;  %v5770_v12 = vpack.c.bf16 %v9406_v2, %v9402_v51  ;;  %v5723_v13 = vpop.f32.mrb[151].mxu1 }
0x1031   :  { %v5769_v14 = vpack.c.bf16 %v5723_v13, %v9404_v52  ;;  %v7728_v1 = vpop.f32.mrb[152].mxu1 }
0x1032   :  { %v5736_v15 = vpop.f32.mrb[153].mxu1 }
0x1033   :  { %v7729_v16 = vpop.f32.mrb[154].mxu1 }
0x1034   :  { %v5772_v17 = vpack.c.bf16 %v7729_v16, %v7728_v1  ;;  %v5739_v18 = vpop.f32.mrb[155].mxu1 }
0x1035   :  { %v5771_v20 = vpack.c.bf16 %v5739_v18, %v5736_v15  ;;  %v7732_v21 = vpop.f32.mrb[156].mxu1 }
0x1036   :  { %v5752_v22 = vpop.f32.mrb[157].mxu1 }
0x1037   :  { %7631 = vmatmul.mubr.bf16.gmra.mrb[72].mxu0 %v8129_v44  ;;  %v7733_v25 = vpop.f32.mrb[158].mxu1 }
0x1038   :  { %v5774_v26 = vpack.c.bf16 %v7733_v25, %v7732_v21  ;;  %v5755_v27 = vpop.f32.mrb[159].mxu1 }
0x1039   :  { %v5773_v28 = vpack.c.bf16 %v5755_v27, %v5752_v22 }
0x10f2   :  { %v7620_v29 = vpop.f32.mrb[60].mxu0 }
0x10f3   :  { %v5074_v30 = vpop.f32.mrb[61].mxu0 }
0x10f4   :  { %v7621_v31 = vpop.f32.mrb[62].mxu0 }
0x10f5   :  { %v5138_v32 = vpack.c.bf16 %v7621_v31, %v7620_v29  ;;  %v5077_v33 = vpop.f32.mrb[63].mxu0 }
0x10f6   :  { %v5137_v34 = vpack.c.bf16 %v5077_v33, %v5074_v30 }
0x10f8   :  { %7636 = vmatprep.mubr.msk.bf16.mxu0 %vm137_vm0, %v5137_v34 }
0x10f9   :  { %7637 = vmatmul.mubr.msk.bf16.vlgmr.msra.gmra.mrb[44].mxu0 %vm137_vm0, %v5138_v32 }
0x10fa   :  { %v7624_v36 = vpop.f32.mrb[64].mxu0  ;;  %7685 = vmatpush3.bf16.msra.mxu0 %v8145_v45 }
0x10fb   :  { %v5090_v39 = vpop.f32.mrb[65].mxu0  ;;  %7734 = vmatprep.subr.bf16.mxu0 %v8146_v35 }
0x10fc   :  { %v7625_v40 = vpop.f32.mrb[66].mxu0 }
0x10fd   :  { %v5140_v19 = vpack.c.bf16 %v7625_v40, %v7624_v36  ;;  %v5093_v41 = vpop.f32.mrb[67].mxu0 }
0x10fe   :  { %v5139_v42 = vpack.c.bf16 %v5093_v41, %v5090_v39 }
0x1100   :  { %7640 = vmatprep.mubr.msk.bf16.mxu0 %vm137_vm0, %v5139_v42 }
0x1101   :  { %7641 = vmatmul.mubr.msk.bf16.gmra.mrb[48].mxu0 %vm137_vm0, %v5140_v19 }
0x1102   :  { %v7628_v43 = vpop.f32.mrb[68].mxu0 }
0x1103   :  { %v5106_v44 = vpop.f32.mrb[69].mxu0 }
0x1104   :  { %v7629_v51 = vpop.f32.mrb[70].mxu0 }
0x1105   :  { %v5142_v52 = vpack.c.bf16 %v7629_v51, %v7628_v43  ;;  %v5109_v2 = vpop.f32.mrb[71].mxu0 }
0x1106   :  { %v5141_v13 = vpack.c.bf16 %v5109_v2, %v5106_v44 }
0x1108   :  { %7644 = vmatprep.mubr.msk.bf16.mxu0 %vm137_vm0, %v5141_v13 }
0x1109   :  { %7645 = vmatmul.mubr.msk.bf16.gmra.mrb[52].mxu0 %vm137_vm0, %v5142_v52 }
0x110a   :  { %v7632_v45 = vpop.f32.mrb[72].mxu0 }
0x110b   :  { %v5122_v1 = vpop.f32.mrb[73].mxu0 }
0x110c   :  { %v7633_v15 = vpop.f32.mrb[74].mxu0 }
0x110d   :  { %v5144_v16 = vpack.c.bf16 %v7633_v15, %v7632_v45  ;;  %v5125_v18 = vpop.f32.mrb[75].mxu0 }
0x110e   :  { %v5143_v21 = vpack.c.bf16 %v5125_v18, %v5122_v1 }
0x1110   :  { %7648 = vmatprep.mubr.msk.bf16.mxu0 %vm137_vm0, %v5143_v21 }
0x1111   :  { %7649 = vmatmul.mubr.msk.bf16.gmra.mrb[56].mxu0 %vm137_vm0, %v5144_v16 }
0x1112   :  { %7686 = vmatprep.mubr.msk.bf16.mxu0 %vm137_vm0, %v5452_v53 }
0x1119   :  { %7687 = vmatmul.mubr.msk.bf16.vlgmr.msra.gmra.mrb[44].mxu0 %vm137_vm0, %v5453_v49 }
0x111a   :  { %7735 = vmatpush3.bf16.msra.mxu0 %v8146_v35  ;;  %7690 = vmatprep.mubr.msk.bf16.mxu0 %vm137_vm0, %v5454_v59 }
0x1121   :  { %7691 = vmatmul.mubr.msk.bf16.gmra.mrb[48].mxu0 %vm137_vm0, %v5455_v57 }
0x1122   :  { %7694 = vmatprep.mubr.msk.bf16.mxu0 %vm137_vm0, %v5456_v3 }
0x1129   :  { %7695 = vmatmul.mubr.msk.bf16.gmra.mrb[52].mxu0 %vm137_vm0, %v5457_v63 }
0x112a   :  { %7698 = vmatprep.mubr.msk.bf16.mxu0 %vm137_vm0, %v5458_v9 }
0x1131   :  { %7699 = vmatmul.mubr.msk.bf16.gmra.mrb[56].mxu0 %vm137_vm0, %v5459_v7 }
0x1132   :  { %7736 = vmatprep.mubr.msk.bf16.mxu0 %vm137_vm0, %v5767_v38 }
0x1139   :  { %7737 = vmatmul.mubr.msk.bf16.vlgmr.msra.gmra.mrb[44].mxu0 %vm137_vm0, %v5768_v24 }
0x113a   :  { %7740 = vmatprep.mubr.msk.bf16.mxu0 %vm137_vm0, %v5769_v14 }
0x1141   :  { %7741 = vmatmul.mubr.msk.bf16.gmra.mrb[48].mxu0 %vm137_vm0, %v5770_v12 }
0x1142   :  { %7744 = vmatprep.mubr.msk.bf16.mxu0 %vm137_vm0, %v5771_v20 }
0x1149   :  { %7745 = vmatmul.mubr.msk.bf16.gmra.mrb[52].mxu0 %vm137_vm0, %v5772_v17 }
0x114a   :  { %7748 = vmatprep.mubr.msk.bf16.mxu0 %vm137_vm0, %v5773_v28 }
0x1151   :  { %7749 = vmatmul.mubr.msk.bf16.gmra.mrb[56].mxu0 %vm137_vm0, %v5774_v26 }
0x120c   :  { %v7738_v47 = vpop.f32.mrb[44].mxu0 }
0x120d   :  { %v7762_v48 = vadd.f32 %v7738_v47, %v9471_v46  ;;  %v5841_v49 = vpop.f32.mrb[45].mxu0 }
0x120e   :  { %v7763_v50 = vadd.f32 %v9471_v46, %v5841_v49  ;;  %v7739_v53 = vpop.f32.mrb[46].mxu0 }
0x120f   :  { %v6510_v54 = vmul.f32 -1.442695, %v7762_v48  ;;  %v7764_v55 = vadd.f32 %v7739_v53, %v9471_v46  ;;  %v5844_v56 = vpop.f32.mrb[47].mxu0 }
0x1210   :  { %v6508_v57 = vmul.f32 -1.442695, %v7763_v50  ;;  %v7765_v58 = vadd.f32 %v9471_v46, %v5844_v56 }
0x1211   :  { %8147 = vpow2.f32 %v6510_v54  ;;  %v6511_v59 = vmul.f32 -1.442695, %v7764_v55 }
0x1212   :  { %8149 = vpow2.f32 %v6508_v57  ;;  %v6509_v60 = vmul.f32 -1.442695, %v7765_v58 }
0x1213   :  { %8151 = vpow2.f32 %v6511_v59 }
0x1214   :  { %8153 = vpow2.f32 %v6509_v60  ;;  %v7742_v61 = vpop.f32.mrb[48].mxu0 }
0x1215   :  { %v7766_v62 = vadd.f32 %v7742_v61, %v9471_v46  ;;  %v5857_v63 = vpop.f32.mrb[49].mxu0 }
0x1216   :  { %v7767_v0 = vadd.f32 %v9471_v46, %v5857_v63  ;;  %v7743_v3 = vpop.f32.mrb[50].mxu0 }
0x1217   :  { %v6514_v4 = vmul.f32 -1.442695, %v7766_v62  ;;  %v7768_v5 = vadd.f32 %v7743_v3, %v9471_v46  ;;  %v5860_v6 = vpop.f32.mrb[51].mxu0 }
0x1218   :  { %v6512_v7 = vmul.f32 -1.442695, %v7767_v0  ;;  %v7769_v8 = vadd.f32 %v9471_v46, %v5860_v6 }
0x1219   :  { %8155 = vpow2.f32 %v6514_v4  ;;  %v6515_v9 = vmul.f32 -1.442695, %v7768_v5 }
0x121a   :  { %8157 = vpow2.f32 %v6512_v7  ;;  %v6513_v10 = vmul.f32 -1.442695, %v7769_v8 }
0x121b   :  { %v8148_v11 = vpop.eup %8147  ;;  %8159 = vpow2.f32 %v6515_v9 }
0x121c   :  { %v8150_v23 = vpop.eup %8149  ;;  %v5970_v24 = vadd.f32 1.0, %v8148_v11  ;;  %8161 = vpow2.f32 %v6513_v10  ;;  %v7746_v37 = vpop.f32.mrb[52].mxu0 }
0x121d   :  { %v8152_v38 = vpop.eup %8151  ;;  %v5968_v12 = vadd.f32 1.0, %v8150_v23  ;;  %v7770_v14 = vadd.f32 %v7746_v37, %v9471_v46  ;;  %v5873_v17 = vpop.f32.mrb[53].mxu0 }
0x121e   :  { %v8154_v20 = vpop.eup %8153  ;;  %8163 = vrcp.f32 %v5970_v24  ;;  %v5971_v22 = vadd.f32 1.0, %v8152_v38  ;;  %v7771_v25 = vadd.f32 %v9471_v46, %v5873_v17  ;;  %v7747_v26 = vpop.f32.mrb[54].mxu0 }
0x121f   :  { %8165 = vrcp.f32 %v5968_v12  ;;  %v5969_v27 = vadd.f32 1.0, %v8154_v20  ;;  %v6518_v28 = vmul.f32 -1.442695, %v7770_v14  ;;  %v7772_v29 = vadd.f32 %v7747_v26, %v9471_v46  ;;  %v5876_v30 = vpop.f32.mrb[55].mxu0 }
0x1220   :  { %8167 = vrcp.f32 %v5971_v22  ;;  %v6516_v31 = vmul.f32 -1.442695, %v7771_v25  ;;  %v7773_v32 = vadd.f32 %v9471_v46, %v5876_v30 }
0x1221   :  { %8169 = vrcp.f32 %v5969_v27  ;;  %v6519_v33 = vmul.f32 -1.442695, %v7772_v29 }
0x1222   :  { %8171 = vpow2.f32 %v6518_v28  ;;  %v6517_v34 = vmul.f32 -1.442695, %v7773_v32 }
0x1223   :  { %v8156_v35 = vpop.eup %8155  ;;  %8173 = vpow2.f32 %v6516_v31 }
0x1224   :  { %v8158_v36 = vpop.eup %8157  ;;  %v5974_v39 = vadd.f32 1.0, %v8156_v35  ;;  %8175 = vpow2.f32 %v6519_v33  ;;  %v7750_v40 = vpop.f32.mrb[56].mxu0 }
0x1225   :  { %v8160_v19 = vpop.eup %8159  ;;  %v5972_v41 = vadd.f32 1.0, %v8158_v36  ;;  %8177 = vpow2.f32 %v6517_v34  ;;  %v7774_v42 = vadd.f32 %v7750_v40, %v9471_v46  ;;  %v5889_v43 = vpop.f32.mrb[57].mxu0 }
0x1226   :  { %v8162_v44 = vpop.eup %8161  ;;  %8179 = vrcp.f32 %v5974_v39  ;;  %v5975_v51 = vadd.f32 1.0, %v8160_v19  ;;  %v7775_v52 = vadd.f32 %v9471_v46, %v5889_v43  ;;  %v7751_v2 = vpop.f32.mrb[58].mxu0 }
0x1227   :  { %8181 = vrcp.f32 %v5972_v41  ;;  %v5973_v13 = vadd.f32 1.0, %v8162_v44  ;;  %v6522_v45 = vmul.f32 -1.442695, %v7774_v42  ;;  %v7776_v1 = vadd.f32 %v7751_v2, %v9471_v46  ;;  %v5892_v15 = vpop.f32.mrb[59].mxu0 }
0x1228   :  { %v8164_v16 = vpop.eup %8163  ;;  %8183 = vrcp.f32 %v5975_v51  ;;  %v6520_v18 = vmul.f32 -1.442695, %v7775_v52  ;;  %v7777_v21 = vadd.f32 %v9471_v46, %v5892_v15 }
0x1229   :  { %v8166_v47 = vpop.eup %8165  ;;  %6019 = vst.msk [vmem:[%s9573_s20 + $0x10] sm:$0xff] %vm6016_vm6, %v8164_v16  ;;  %8185 = vrcp.f32 %v5973_v13  ;;  %v6523_v48 = vmul.f32 -1.442695, %v7776_v1 }
0x122a   :  { %v8168_v49 = vpop.eup %8167  ;;  %6017 = vst.msk [vmem:[%s9573_s20] sm:$0xff] %vm6016_vm6, %v8166_v47  ;;  %8187 = vpow2.f32 %v6522_v45  ;;  %v6521_v50 = vmul.f32 -1.442695, %v7777_v21 }
0x122b   :  { %v8170_v53 = vpop.eup %8169  ;;  %6020 = vst.msk [vmem:[%s9573_s20 + $0x18] sm:$0xff] %vm6016_vm6, %v8168_v49  ;;  %8189 = vpow2.f32 %v6520_v18 }
0x122c   :  { %v8172_v46 = vpop.eup %8171  ;;  %6018 = vst.msk [vmem:[%s9573_s20 + $0x8] sm:$0xff] %vm6016_vm6, %v8170_v53  ;;  %8191 = vpow2.f32 %v6523_v48 }
0x122d   :  { %v8174_v54 = vpop.eup %8173  ;;  %v5978_v55 = vadd.f32 1.0, %v8172_v46  ;;  %8193 = vpow2.f32 %v6521_v50 }
0x122e   :  { %v8176_v56 = vpop.eup %8175  ;;  %v5976_v57 = vadd.f32 1.0, %v8174_v54 }
0x122f   :  { %v8178_v58 = vpop.eup %8177  ;;  %8195 = vrcp.f32 %v5978_v55  ;;  %v5979_v59 = vadd.f32 1.0, %v8176_v56 }
0x1230   :  { %v8180_v60 = vpop.eup %8179  ;;  %8197 = vrcp.f32 %v5976_v57  ;;  %v5977_v61 = vadd.f32 1.0, %v8178_v58 }
0x1231   :  { %v8182_v62 = vpop.eup %8181  ;;  %6023 = vst.msk [vmem:[%s9573_s20 + $0x30] sm:$0xff] %vm6016_vm6, %v8180_v60  ;;  %8199 = vrcp.f32 %v5979_v59 }
0x1232   :  { %v8184_v63 = vpop.eup %8183  ;;  %6021 = vst.msk [vmem:[%s9573_s20 + $0x20] sm:$0xff] %vm6016_vm6, %v8182_v62  ;;  %8201 = vrcp.f32 %v5977_v61 }
0x1233   :  { %v8186_v0 = vpop.eup %8185  ;;  %6024 = vst.msk [vmem:[%s9573_s20 + $0x38] sm:$0xff] %vm6016_vm6, %v8184_v63 }
0x1234   :  { %v8188_v3 = vpop.eup %8187  ;;  %6022 = vst.msk [vmem:[%s9573_s20 + $0x28] sm:$0xff] %vm6016_vm6, %v8186_v0 }
0x1235   :  { %v8190_v4 = vpop.eup %8189  ;;  %v5982_v5 = vadd.f32 1.0, %v8188_v3 }
0x1236   :  { %v8192_v6 = vpop.eup %8191  ;;  %v5980_v7 = vadd.f32 1.0, %v8190_v4 }
0x1237   :  { %v8194_v8 = vpop.eup %8193  ;;  %8203 = vrcp.f32 %v5982_v5  ;;  %v5983_v9 = vadd.f32 1.0, %v8192_v6 }
0x1238   :  { %8205 = vrcp.f32 %v5980_v7  ;;  %v5981_v10 = vadd.f32 1.0, %v8194_v8 }
0x1239   :  { %v8196_v11 = vpop.eup %8195  ;;  %8207 = vrcp.f32 %v5983_v9 }
0x123a   :  { %v8198_v23 = vpop.eup %8197  ;;  %6027 = vst.msk [vmem:[%s9573_s20 + $0x50] sm:$0xff] %vm6016_vm6, %v8196_v11  ;;  %8209 = vrcp.f32 %v5981_v10 }
0x123b   :  { %v8200_v24 = vpop.eup %8199  ;;  %6025 = vst.msk [vmem:[%s9573_s20 + $0x40] sm:$0xff] %vm6016_vm6, %v8198_v23 }
0x123c   :  { %v8202_v37 = vpop.eup %8201  ;;  %6028 = vst.msk [vmem:[%s9573_s20 + $0x58] sm:$0xff] %vm6016_vm6, %v8200_v24 }
0x123d   :  { %6026 = vst.msk [vmem:[%s9573_s20 + $0x48] sm:$0xff] %vm6016_vm6, %v8202_v37 }
0x1241   :  { %v8204_v38 = vpop.eup %8203 }
0x1242   :  { %v8206_v12 = vpop.eup %8205  ;;  %6031 = vst.msk [vmem:[%s9573_s20 + $0x70] sm:$0xff] %vm6016_vm6, %v8204_v38 }
0x1243   :  { %v8208_v14 = vpop.eup %8207  ;;  %6029 = vst.msk [vmem:[%s9573_s20 + $0x60] sm:$0xff] %vm6016_vm6, %v8206_v12 }
0x1244   :  { %v8210_v17 = vpop.eup %8209  ;;  %6032 = vst.msk [vmem:[%s9573_s20 + $0x78] sm:$0xff] %vm6016_vm6, %v8208_v14 }
0x1245   :  { %6030 = vst.msk [vmem:[%s9573_s20 + $0x68] sm:$0xff] %vm6016_vm6, %v8210_v17 }

</bundles_post_ra>
